<compile_context>
chip_gen: v5e
topology: v5e:2x2
jax: 0.10.0
libtpu: 0.0.40
codegen_flags: <defaults>
</compile_context>

<pallas_src>
import functools
import math

import jax
import jax.numpy as jnp
from jax import lax
from jax.experimental import pallas as pl
from jax.experimental.pallas import tpu as pltpu


def _round_up(x, m):
    return (x + m - 1) // m * m


def _epilogue(y, act):
    if act == "silu":
        return y * pl.reciprocal(1.0 + jnp.exp(-y), approx=True)
    if act == "sigmoid":
        return pl.reciprocal(1.0 + jnp.exp(-y), approx=True)
    return y


# ============================================================================
# Pallas kernel 1: fused matmul   y = act((x @ w) * scale + bias)
#   bf16 operands on the MXU, fp32 accumulation, scale/bias packed into one
#   (2, N) operand.  Single-K-block specialization skips the accumulator
#   scratch and the pl.when init/finalize entirely.
# ============================================================================
def _mm_kernel_1k(x_ref, w_ref, sb_ref, o_ref, *, act):
    y = jnp.dot(x_ref[...], w_ref[...], preferred_element_type=jnp.float32)
    sb = sb_ref[...]
    y = y * sb[0:1, :] + sb[1:2, :]
    o_ref[...] = _epilogue(y, act).astype(o_ref.dtype)


def _mm_kernel_multik(x_ref, w_ref, sb_ref, o_ref, acc_ref, *, act):
    @pl.when(pl.program_id(2) == 0)
    def _():
        acc_ref[...] = jnp.zeros_like(acc_ref)

    acc_ref[...] += jnp.dot(x_ref[...], w_ref[...],
                            preferred_element_type=jnp.float32)

    @pl.when(pl.program_id(2) == pl.num_programs(2) - 1)
    def _():
        sb = sb_ref[...]
        y = acc_ref[...] * sb[0:1, :] + sb[1:2, :]
        o_ref[...] = _epilogue(y, act).astype(o_ref.dtype)


@functools.lru_cache(maxsize=None)
def _make_matmul_fn(Mp, Kp, Np, tm, tk, tn, act, out_dtype):
    vmem_cap = 32 * 1024 * 1024
    if tk == Kp:  # single K step: no accumulator scratch needed
        return pl.pallas_call(
            functools.partial(_mm_kernel_1k, act=act),
            out_shape=jax.ShapeDtypeStruct((Mp, Np), out_dtype),
            grid_spec=pltpu.PrefetchScalarGridSpec(
                num_scalar_prefetch=0,
                grid=(Mp // tm, Np // tn),
                in_specs=[
                    pl.BlockSpec((tm, Kp), lambda i, j: (i, 0)),
                    pl.BlockSpec((Kp, tn), lambda i, j: (0, j)),
                    pl.BlockSpec((2, tn), lambda i, j: (0, j)),
                ],
                out_specs=pl.BlockSpec((tm, tn), lambda i, j: (i, j)),
            ),
            compiler_params=pltpu.CompilerParams(
                dimension_semantics=("parallel", "parallel"),
                vmem_limit_bytes=vmem_cap),
        )
    return pl.pallas_call(
        functools.partial(_mm_kernel_multik, act=act),
        out_shape=jax.ShapeDtypeStruct((Mp, Np), out_dtype),
        grid_spec=pltpu.PrefetchScalarGridSpec(
            num_scalar_prefetch=0,
            grid=(Mp // tm, Np // tn, Kp // tk),
            in_specs=[
                pl.BlockSpec((tm, tk), lambda i, j, k: (i, k)),
                pl.BlockSpec((tk, tn), lambda i, j, k: (k, j)),
                pl.BlockSpec((2, tn), lambda i, j, k: (0, j)),
            ],
            out_specs=pl.BlockSpec((tm, tn), lambda i, j, k: (i, j)),
            scratch_shapes=[pltpu.VMEM((tm, tn), jnp.float32)],
        ),
        compiler_params=pltpu.CompilerParams(
            dimension_semantics=("parallel", "parallel", "arbitrary"),
            vmem_limit_bytes=vmem_cap),
    )


def fused_matmul(x, w, sb, act="none", out_dtype=jnp.float32):
    """y = act((x @ w) * sb[0] + sb[1]);  x:[M,K], w:[K,N], sb:[2,N]."""
    M, K = x.shape
    _, N = w.shape
    # M tile: 16-row unit (bf16 packs 16 rows/vreg); keep >=2 parallel blocks when possible.
    Mp = _round_up(M, 16)
    if Mp <= 256:
        tm = Mp // 2 if (Mp >= 128 and Mp % 32 == 0) else Mp
    else:
        tm = 256
        Mp = _round_up(M, tm)
    # N tile: one (or two) 128-lane MXU tiles.
    Np = _round_up(N, 128)
    tn = 256 if (Np > 128 and Np % 256 == 0) else 128
    # K: single full-extent block (no HBM zero-padding, no dead MXU passes) when it fits.
    if K <= 2048:
        tk, Kp = K, K
    else:
        tk = 512
        Kp = _round_up(K, tk)
    xp = x.astype(jnp.bfloat16)
    wp = w.astype(jnp.bfloat16)
    if (Mp, Kp) != (M, K):
        xp = jnp.pad(xp, ((0, Mp - M), (0, Kp - K)))
    if (Kp, Np) != (K, N):
        wp = jnp.pad(wp, ((0, Kp - K), (0, Np - N)))
    sbp = jnp.pad(sb.astype(jnp.float32), ((0, 0), (0, Np - N)))
    out = _make_matmul_fn(Mp, Kp, Np, tm, tk, tn, act, out_dtype)(xp, wp, sbp)
    return out[:M, :N] if (Mp, Np) != (M, N) else out


# ============================================================================
# Pallas kernel 2: direct stride-1 'same' conv (no im2col), NHWC.
#   Per-batch padded image stays VMEM-resident; 9 taps are static shifted
#   slices -> MXU matmuls; conv bias (and folded BN) fused in the epilogue.
# ============================================================================
def _conv_direct_kernel(x_ref, w_ref, sb_ref, o_ref, *, kh, kw, Ho, Wo, act):
    x = x_ref[0]                                    # (Ho+kh-1, Wo+kw-1, C)
    C = x.shape[-1]
    acc = None
    for t in range(kh * kw):                        # statically unrolled tap loop
        di, dj = t // kw, t % kw
        xt = x[di:di + Ho, dj:dj + Wo, :].reshape(Ho * Wo, C)
        p = jnp.dot(xt, w_ref[t], preferred_element_type=jnp.float32)
        acc = p if acc is None else acc + p
    sb = sb_ref[...]
    y = acc * sb[0:1, :] + sb[1:2, :]
    o_ref[0] = _epilogue(y, act).astype(o_ref.dtype)


@functools.lru_cache(maxsize=None)
def _make_conv_direct_fn(B, Hp, Wp, C, kh, kw, Cout, act, out_dtype):
    # TODO(synk): for very large H*W*C the per-batch block should be row-tiled
    # (overlapping windows) instead of a full-image VMEM block.
    Ho, Wo = Hp - kh + 1, Wp - kw + 1
    return pl.pallas_call(
        functools.partial(_conv_direct_kernel, kh=kh, kw=kw, Ho=Ho, Wo=Wo, act=act),
        out_shape=jax.ShapeDtypeStruct((B, Ho * Wo, Cout), out_dtype),
        grid_spec=pltpu.PrefetchScalarGridSpec(
            num_scalar_prefetch=0,
            grid=(B,),
            in_specs=[
                pl.BlockSpec((1, Hp, Wp, C), lambda b: (b, 0, 0, 0)),
                pl.BlockSpec((kh * kw, C, Cout), lambda b: (0, 0, 0)),
                pl.BlockSpec((2, Cout), lambda b: (0, 0)),
            ],
            out_specs=pl.BlockSpec((1, Ho * Wo, Cout), lambda b: (b, 0, 0)),
        ),
        compiler_params=pltpu.CompilerParams(
            dimension_semantics=("parallel",),
            vmem_limit_bytes=32 * 1024 * 1024),
    )


def pallas_conv_direct(x, p, out_dtype=jnp.float32):
    """Direct (no-im2col) stride-1 'same' conv with fused bias/BN + activation."""
    B, H, W, C = x.shape
    kh, kw, ph, pw = p["kh"], p["kw"], p["ph"], p["pw"]
    xp = jnp.pad(x.astype(jnp.bfloat16), ((0, 0), (ph, ph), (pw, pw), (0, 0)))
    Cout = p["wtap"].shape[-1]
    f = _make_conv_direct_fn(B, H + 2 * ph, W + 2 * pw, C, kh, kw, Cout,
                             p["act"], out_dtype)
    y = f(xp, p["wtap"], p["sb"])
    Ho, Wo = H + 2 * ph - kh + 1, W + 2 * pw - kw + 1
    return y.reshape(B, Ho, Wo, Cout)


def _im2col_conv(x, p):
    # TODO(synk): strided convs fall back to XLA im2col + Pallas matmul (not hit at s=1).
    kh, kw, s, ph, pw = p["kh"], p["kw"], p["s"], p["ph"], p["pw"]
    B, H, W, C = x.shape
    Ho = (H + 2 * ph - kh) // s + 1
    Wo = (W + 2 * pw - kw) // s + 1
    xp = jnp.pad(x.astype(jnp.bfloat16), ((0, 0), (ph, ph), (pw, pw), (0, 0)))
    cols = [lax.slice(xp, (0, i, j, 0),
                      (B, i + (Ho - 1) * s + 1, j + (Wo - 1) * s + 1, C),
                      (1, s, s, 1))
            for i in range(kh) for j in range(kw)]
    patches = jnp.stack(cols, axis=3).reshape(B * Ho * Wo, kh * kw * C)
    y = fused_matmul(patches, p["wflat"], p["sb"], act=p["act"], out_dtype=jnp.float32)
    return y.reshape(B, Ho, Wo, -1)


# ============================================================================
# Parameter construction (deterministic, in-script; eval-mode BN folded)
# ============================================================================
class _Keys:
    def __init__(self, seed):
        self._key = jax.random.PRNGKey(seed)

    def __call__(self):
        self._key, k = jax.random.split(self._key)
        return k


def make_conv(kg, cin, cout, k=1, s=1, p=None, act="silu",
              with_bn=True, with_bias=False):
    kh, kw = (k, k) if isinstance(k, int) else k
    if p is None:
        ph, pw = kh // 2, kw // 2           # autopad
    else:
        ph, pw = (p, p) if isinstance(p, int) else p
    fan = cin * kh * kw
    w4 = jax.random.normal(kg(), (kh, kw, cin, cout), jnp.float32) / math.sqrt(fan)
    cb = (jax.random.normal(kg(), (cout,), jnp.float32) * 0.05
          if with_bias else jnp.zeros((cout,), jnp.float32))
    if with_bn:   # eval-mode BatchNorm folded into a per-channel scale/bias
        gamma = jax.random.uniform(kg(), (cout,), jnp.float32, 0.8, 1.2)
        beta = jax.random.normal(kg(), (cout,), jnp.float32) * 0.1
        mean = jax.random.normal(kg(), (cout,), jnp.float32) * 0.1
        var = jax.random.uniform(kg(), (cout,), jnp.float32, 0.5, 1.5)
        inv = gamma / jnp.sqrt(var + 1e-5)
        scale = inv
        bias = (cb - mean) * inv + beta
    else:
        scale = jnp.ones((cout,), jnp.float32)
        bias = cb
    return dict(
        w4=w4,                                                       # [kh,kw,cin,cout] f32 (XLA path)
        wtap=w4.reshape(kh * kw, cin, cout).astype(jnp.bfloat16),    # Pallas direct conv
        wflat=w4.reshape(kh * kw * cin, cout).astype(jnp.bfloat16),  # Pallas matmul
        sb=jnp.stack([scale, bias]),                                 # [2,cout] packed scale/bias
        kh=kh, kw=kw, s=s, ph=ph, pw=pw, act=act)


# ============================================================================
# MPCA — tiny convs stay in XLA so they fuse with the surrounding elementwise ops
# ============================================================================
def _xla_conv(x, p):
    kh, kw, ph, pw = p["kh"], p["kw"], p["ph"], p["pw"]
    xp = jnp.pad(x, ((0, 0), (ph, ph), (pw, pw), (0, 0)))
    Ho = xp.shape[1] - kh + 1
    Wo = xp.shape[2] - kw + 1
    y = 0.0
    for i in range(kh):
        for j in range(kw):
            y = y + jnp.einsum("bhwc,cd->bhwd",
                               xp[:, i:i + Ho, j:j + Wo, :], p["w4"][i, j])
    y = y * p["sb"][0] + p["sb"][1]
    return y * jax.nn.sigmoid(y) if p["act"] == "silu" else y


def make_mpca(kg, c):
    return dict(gap=make_conv(kg, c, c, 1),
                conv_hw=make_conv(kg, c, c, (3, 1)),
                conv_pool_hw=make_conv(kg, c, c, 1))


def apply_mpca(x, p):
    B, H, W, C = x.shape
    x_pool_h = jnp.mean(x, axis=2, keepdims=True)                               # [B,H,1,C]
    x_pool_w = jnp.transpose(jnp.mean(x, axis=1, keepdims=True), (0, 2, 1, 3))  # [B,W,1,C]
    x_pool_ch = _xla_conv(jnp.mean(x, axis=(1, 2), keepdims=True), p["gap"])    # [B,1,1,C]
    x_pool_hw = jnp.concatenate([x_pool_h, x_pool_w], axis=1)                   # [B,H+W,1,C]
    x_pool_hw = _xla_conv(x_pool_hw, p["conv_hw"])
    hw_w = jax.nn.sigmoid(_xla_conv(x_pool_hw, p["conv_pool_hw"]))
    x_pool_h = x_pool_hw[:, :H] * hw_w[:, :H]
    x_pool_w = x_pool_hw[:, H:] * hw_w[:, H:]
    x_pool_ch = x_pool_ch * jnp.mean(hw_w, axis=1, keepdims=True)
    sig_h = jax.nn.sigmoid(x_pool_h)                                # [B,H,1,C]
    sig_w = jnp.transpose(jax.nn.sigmoid(x_pool_w), (0, 2, 1, 3))   # [B,1,W,C]
    sig_c = jax.nn.sigmoid(x_pool_ch)                               # [B,1,1,C]
    return x * sig_h * sig_w * sig_c + x


# ============================================================================
# DCNv2_Dynamic (torchvision deform_conv2d semantics, offset/mask layout)
# ============================================================================
def make_dcn(kg, cin, cout, k=3, s=1):
    oc = 3 * k * k   # deformable_groups(=1) * 3 * k * k
    return dict(
        off=make_conv(kg, cin, oc, k, s, None, act="none",
                      with_bn=False, with_bias=True),
        mpca=make_mpca(kg, oc),
        main=make_conv(kg, cin, cout, k, s, None, act="silu",
                       with_bn=True, with_bias=True),
        k=k, s=s, pad=k // 2)


def deform_sample(x, offset, mask, k, s, pad):
    # TODO(synk): fusing this data-dependent gather into the Pallas main matmul needs a
    # general in-VMEM gather primitive Mosaic does not expose; it stays XLA-side, but all
    # gathers / corner weighting / sums now run in bf16 with pre-combined corner weights.
    B, H, W, C = x.shape
    _, Ho, Wo, _ = offset.shape
    nt = k * k
    base_y = ((jnp.arange(Ho) * s - pad)[:, None, None]
              + jnp.repeat(jnp.arange(k), k)[None, None, :])          # [Ho,1,nt]
    base_x = ((jnp.arange(Wo) * s - pad)[None, :, None]
              + jnp.tile(jnp.arange(k), k)[None, None, :])            # [1,Wo,nt]
    py = base_y[None] + offset[..., 0::2]       # channel 2t   = dy_t
    px = base_x[None] + offset[..., 1::2]       # channel 2t+1 = dx_t
    # torchvision: whole sample is zero iff y<=-1 | y>=H | x<=-1 | x>=W; otherwise
    # fractional bilinear weights are kept and only out-of-bounds corners are zeroed.
    valid = (py > -1.0) & (py < H) & (px > -1.0) & (px < W)
    y0 = jnp.floor(py)
    x0 = jnp.floor(px)
    ly = py - y0
    lx = px - x0
    hy = 1.0 - ly
    hx = 1.0 - lx
    base_w = mask * valid.astype(jnp.float32)    # modulation * sample validity
    xf = x.astype(jnp.bfloat16).reshape(B, H * W, C)

    def corner(yc, xc, w):
        inb = (yc >= 0) & (yc <= H - 1) & (xc >= 0) & (xc <= W - 1)
        cw = (w * base_w * inb.astype(jnp.float32)).astype(jnp.bfloat16)  # [B,Ho,Wo,nt]
        yi = jnp.clip(yc, 0, H - 1).astype(jnp.int32)
        xi = jnp.clip(xc, 0, W - 1).astype(jnp.int32)
        idx = (yi * W + xi).reshape(B, -1)
        g = jax.vmap(lambda a, i: jnp.take(a, i, axis=0))(xf, idx)        # bf16 gather
        return g.reshape(B, Ho, Wo, nt, C) * cw[..., None]

    val = (corner(y0, x0, hy * hx) + corner(y0, x0 + 1.0, hy * lx)
           + corner(y0 + 1.0, x0, ly * hx) + corner(y0 + 1.0, x0 + 1.0, ly * lx))
    return val.reshape(B * Ho * Wo, nt * C), (B, Ho, Wo)


def apply_dcn(x, p):
    k, s, pad = p["k"], p["s"], p["pad"]
    nt = k * k
    # DCNv2_Offset_Attention: 3x3 offset/mask conv (direct Pallas conv) + MPCA (XLA).
    om = (pallas_conv_direct(x, p["off"]) if s == 1 else _im2col_conv(x, p["off"]))
    om = apply_mpca(om, p["mpca"])
    offset = om[..., :2 * nt]                 # == torch.cat(torch.chunk(om,3,1)[:2], 1)
    mask = jax.nn.sigmoid(om[..., 2 * nt:])
    patches, (B, Ho, Wo) = deform_sample(x, offset, mask, k, s, pad)
    m = p["main"]   # deform weight matmul + conv bias + BN + SiLU fused in Pallas
    y = fused_matmul(patches, m["wflat"], m["sb"], act="silu", out_dtype=jnp.bfloat16)
    return y.reshape(B, Ho, Wo, -1)


def dcnv2_dynamic_forward(x_nchw, params):
    x = jnp.transpose(x_nchw, (0, 2, 3, 1)).astype(jnp.float32)   # NCHW -> NHWC
    y = apply_dcn(x, params)
    return jnp.transpose(y, (0, 3, 1, 2)).astype(jnp.float32)     # NHWC -> NCHW


if __name__ == "__main__":
    B, Cin, Cout, H, W = 2, 16, 32, 16, 16
    x = jax.random.normal(jax.random.PRNGKey(0), (B, Cin, H, W), jnp.float32)
    kg = _Keys(1)
    params = make_dcn(kg, Cin, Cout, k=3, s=1)
    fwd = jax.jit(lambda inp: dcnv2_dynamic_forward(inp, params))
    y = fwd(x)
    jax.block_until_ready(y)
    assert y.shape == (B, Cout, H, W)
    assert bool(jnp.isfinite(y).all())
    print("KERNEL_OK")
</pallas_src>

<mosaic_0001>
module attributes {stable_mosaic.version = 11 : i64} {
  func.func @_conv_direct_kernel(%arg0: i32, %arg1: memref<1x18x18x16xbf16, #tpu.memory_space<vmem>>, %arg2: memref<9x16x27xbf16, #tpu.memory_space<vmem>>, %arg3: memref<2x27xf32, #tpu.memory_space<vmem>>, %arg4: memref<1x256x27xf32, #tpu.memory_space<vmem>>) attributes {dimension_semantics = [#tpu.dimension_semantics<parallel>], iteration_bounds = array<i64: 2>, scalar_prefetch = 0 : i64, scratch_operands = 0 : i64, tpu.core_type = #tpu.core_type<tc>, window_params = [{transform_indices = @transform_0, window_bounds = array<i64: 1, 18, 18, 16>}, {pipeline_mode = #tpu.pipeline_mode<synchronous>, transform_indices = @transform_1, window_bounds = array<i64: 9, 16, 27>}, {pipeline_mode = #tpu.pipeline_mode<synchronous>, transform_indices = @transform_2, window_bounds = array<i64: 2, 27>}, {transform_indices = @transform_3, window_bounds = array<i64: 1, 256, 27>}]} {
    %c0 = arith.constant 0 : index
    %c0_0 = arith.constant 0 : index
    %c0_1 = arith.constant 0 : index
    %c0_2 = arith.constant 0 : index
    %0 = vector.load %arg1[%c0, %c0_0, %c0_1, %c0_2] : memref<1x18x18x16xbf16, #tpu.memory_space<vmem>>, vector<1x18x18x16xbf16>
    %1 = vector.shape_cast %0 : vector<1x18x18x16xbf16> to vector<18x18x16xbf16>
    %2 = vector.extract_strided_slice %1 {offsets = [0, 0, 0], sizes = [16, 16, 16], strides = [1, 1, 1]} : vector<18x18x16xbf16> to vector<16x16x16xbf16>
    %3 = vector.shape_cast %2 : vector<16x16x16xbf16> to vector<256x16xbf16>
    %c0_3 = arith.constant 0 : index
    %c0_4 = arith.constant 0 : index
    %c0_5 = arith.constant 0 : index
    %4 = vector.load %arg2[%c0_3, %c0_4, %c0_5] : memref<9x16x27xbf16, #tpu.memory_space<vmem>>, vector<1x16x27xbf16>
    %5 = vector.shape_cast %4 : vector<1x16x27xbf16> to vector<16x27xbf16>
    %cst = arith.constant dense<0.000000e+00> : vector<256x27xf32>
    %6 = tpu.matmul %3, %5, %cst {dimension_numbers = #tpu.dot_dimension_numbers<[1], [0], [0], [1], [0, 0, 1, 1], [], []>} : vector<256x16xbf16>, vector<16x27xbf16>, vector<256x27xf32> -> vector<256x27xf32>
    %7 = vector.extract_strided_slice %1 {offsets = [0, 1, 0], sizes = [16, 16, 16], strides = [1, 1, 1]} : vector<18x18x16xbf16> to vector<16x16x16xbf16>
    %8 = vector.shape_cast %7 : vector<16x16x16xbf16> to vector<256x16xbf16>
    %c1 = arith.constant 1 : index
    %c0_6 = arith.constant 0 : index
    %c0_7 = arith.constant 0 : index
    %9 = vector.load %arg2[%c1, %c0_6, %c0_7] : memref<9x16x27xbf16, #tpu.memory_space<vmem>>, vector<1x16x27xbf16>
    %10 = vector.shape_cast %9 : vector<1x16x27xbf16> to vector<16x27xbf16>
    %cst_8 = arith.constant dense<0.000000e+00> : vector<256x27xf32>
    %11 = tpu.matmul %8, %10, %cst_8 {dimension_numbers = #tpu.dot_dimension_numbers<[1], [0], [0], [1], [0, 0, 1, 1], [], []>} : vector<256x16xbf16>, vector<16x27xbf16>, vector<256x27xf32> -> vector<256x27xf32>
    %12 = arith.addf %6, %11 : vector<256x27xf32>
    %13 = vector.extract_strided_slice %1 {offsets = [0, 2, 0], sizes = [16, 16, 16], strides = [1, 1, 1]} : vector<18x18x16xbf16> to vector<16x16x16xbf16>
    %14 = vector.shape_cast %13 : vector<16x16x16xbf16> to vector<256x16xbf16>
    %c2 = arith.constant 2 : index
    %c0_9 = arith.constant 0 : index
    %c0_10 = arith.constant 0 : index
    %15 = vector.load %arg2[%c2, %c0_9, %c0_10] : memref<9x16x27xbf16, #tpu.memory_space<vmem>>, vector<1x16x27xbf16>
    %16 = vector.shape_cast %15 : vector<1x16x27xbf16> to vector<16x27xbf16>
    %cst_11 = arith.constant dense<0.000000e+00> : vector<256x27xf32>
    %17 = tpu.matmul %14, %16, %cst_11 {dimension_numbers = #tpu.dot_dimension_numbers<[1], [0], [0], [1], [0, 0, 1, 1], [], []>} : vector<256x16xbf16>, vector<16x27xbf16>, vector<256x27xf32> -> vector<256x27xf32>
    %18 = arith.addf %12, %17 : vector<256x27xf32>
    %19 = vector.extract_strided_slice %1 {offsets = [1, 0, 0], sizes = [16, 16, 16], strides = [1, 1, 1]} : vector<18x18x16xbf16> to vector<16x16x16xbf16>
    %20 = vector.shape_cast %19 : vector<16x16x16xbf16> to vector<256x16xbf16>
    %c3 = arith.constant 3 : index
    %c0_12 = arith.constant 0 : index
    %c0_13 = arith.constant 0 : index
    %21 = vector.load %arg2[%c3, %c0_12, %c0_13] : memref<9x16x27xbf16, #tpu.memory_space<vmem>>, vector<1x16x27xbf16>
    %22 = vector.shape_cast %21 : vector<1x16x27xbf16> to vector<16x27xbf16>
    %cst_14 = arith.constant dense<0.000000e+00> : vector<256x27xf32>
    %23 = tpu.matmul %20, %22, %cst_14 {dimension_numbers = #tpu.dot_dimension_numbers<[1], [0], [0], [1], [0, 0, 1, 1], [], []>} : vector<256x16xbf16>, vector<16x27xbf16>, vector<256x27xf32> -> vector<256x27xf32>
    %24 = arith.addf %18, %23 : vector<256x27xf32>
    %25 = vector.extract_strided_slice %1 {offsets = [1, 1, 0], sizes = [16, 16, 16], strides = [1, 1, 1]} : vector<18x18x16xbf16> to vector<16x16x16xbf16>
    %26 = vector.shape_cast %25 : vector<16x16x16xbf16> to vector<256x16xbf16>
    %c4 = arith.constant 4 : index
    %c0_15 = arith.constant 0 : index
    %c0_16 = arith.constant 0 : index
    %27 = vector.load %arg2[%c4, %c0_15, %c0_16] : memref<9x16x27xbf16, #tpu.memory_space<vmem>>, vector<1x16x27xbf16>
    %28 = vector.shape_cast %27 : vector<1x16x27xbf16> to vector<16x27xbf16>
    %cst_17 = arith.constant dense<0.000000e+00> : vector<256x27xf32>
    %29 = tpu.matmul %26, %28, %cst_17 {dimension_numbers = #tpu.dot_dimension_numbers<[1], [0], [0], [1], [0, 0, 1, 1], [], []>} : vector<256x16xbf16>, vector<16x27xbf16>, vector<256x27xf32> -> vector<256x27xf32>
    %30 = arith.addf %24, %29 : vector<256x27xf32>
    %31 = vector.extract_strided_slice %1 {offsets = [1, 2, 0], sizes = [16, 16, 16], strides = [1, 1, 1]} : vector<18x18x16xbf16> to vector<16x16x16xbf16>
    %32 = vector.shape_cast %31 : vector<16x16x16xbf16> to vector<256x16xbf16>
    %c5 = arith.constant 5 : index
    %c0_18 = arith.constant 0 : index
    %c0_19 = arith.constant 0 : index
    %33 = vector.load %arg2[%c5, %c0_18, %c0_19] : memref<9x16x27xbf16, #tpu.memory_space<vmem>>, vector<1x16x27xbf16>
    %34 = vector.shape_cast %33 : vector<1x16x27xbf16> to vector<16x27xbf16>
    %cst_20 = arith.constant dense<0.000000e+00> : vector<256x27xf32>
    %35 = tpu.matmul %32, %34, %cst_20 {dimension_numbers = #tpu.dot_dimension_numbers<[1], [0], [0], [1], [0, 0, 1, 1], [], []>} : vector<256x16xbf16>, vector<16x27xbf16>, vector<256x27xf32> -> vector<256x27xf32>
    %36 = arith.addf %30, %35 : vector<256x27xf32>
    %37 = vector.extract_strided_slice %1 {offsets = [2, 0, 0], sizes = [16, 16, 16], strides = [1, 1, 1]} : vector<18x18x16xbf16> to vector<16x16x16xbf16>
    %38 = vector.shape_cast %37 : vector<16x16x16xbf16> to vector<256x16xbf16>
    %c6 = arith.constant 6 : index
    %c0_21 = arith.constant 0 : index
    %c0_22 = arith.constant 0 : index
    %39 = vector.load %arg2[%c6, %c0_21, %c0_22] : memref<9x16x27xbf16, #tpu.memory_space<vmem>>, vector<1x16x27xbf16>
    %40 = vector.shape_cast %39 : vector<1x16x27xbf16> to vector<16x27xbf16>
    %cst_23 = arith.constant dense<0.000000e+00> : vector<256x27xf32>
    %41 = tpu.matmul %38, %40, %cst_23 {dimension_numbers = #tpu.dot_dimension_numbers<[1], [0], [0], [1], [0, 0, 1, 1], [], []>} : vector<256x16xbf16>, vector<16x27xbf16>, vector<256x27xf32> -> vector<256x27xf32>
    %42 = arith.addf %36, %41 : vector<256x27xf32>
    %43 = vector.extract_strided_slice %1 {offsets = [2, 1, 0], sizes = [16, 16, 16], strides = [1, 1, 1]} : vector<18x18x16xbf16> to vector<16x16x16xbf16>
    %44 = vector.shape_cast %43 : vector<16x16x16xbf16> to vector<256x16xbf16>
    %c7 = arith.constant 7 : index
    %c0_24 = arith.constant 0 : index
    %c0_25 = arith.constant 0 : index
    %45 = vector.load %arg2[%c7, %c0_24, %c0_25] : memref<9x16x27xbf16, #tpu.memory_space<vmem>>, vector<1x16x27xbf16>
    %46 = vector.shape_cast %45 : vector<1x16x27xbf16> to vector<16x27xbf16>
    %cst_26 = arith.constant dense<0.000000e+00> : vector<256x27xf32>
    %47 = tpu.matmul %44, %46, %cst_26 {dimension_numbers = #tpu.dot_dimension_numbers<[1], [0], [0], [1], [0, 0, 1, 1], [], []>} : vector<256x16xbf16>, vector<16x27xbf16>, vector<256x27xf32> -> vector<256x27xf32>
    %48 = arith.addf %42, %47 : vector<256x27xf32>
    %49 = vector.extract_strided_slice %1 {offsets = [2, 2, 0], sizes = [16, 16, 16], strides = [1, 1, 1]} : vector<18x18x16xbf16> to vector<16x16x16xbf16>
    %50 = vector.shape_cast %49 : vector<16x16x16xbf16> to vector<256x16xbf16>
    %c8 = arith.constant 8 : index
    %c0_27 = arith.constant 0 : index
    %c0_28 = arith.constant 0 : index
    %51 = vector.load %arg2[%c8, %c0_27, %c0_28] : memref<9x16x27xbf16, #tpu.memory_space<vmem>>, vector<1x16x27xbf16>
    %52 = vector.shape_cast %51 : vector<1x16x27xbf16> to vector<16x27xbf16>
    %cst_29 = arith.constant dense<0.000000e+00> : vector<256x27xf32>
    %53 = tpu.matmul %50, %52, %cst_29 {dimension_numbers = #tpu.dot_dimension_numbers<[1], [0], [0], [1], [0, 0, 1, 1], [], []>} : vector<256x16xbf16>, vector<16x27xbf16>, vector<256x27xf32> -> vector<256x27xf32>
    %54 = arith.addf %48, %53 : vector<256x27xf32>
    %c0_30 = arith.constant 0 : index
    %c0_31 = arith.constant 0 : index
    %55 = vector.load %arg3[%c0_30, %c0_31] : memref<2x27xf32, #tpu.memory_space<vmem>>, vector<2x27xf32>
    %56 = vector.extract_strided_slice %55 {offsets = [0, 0], sizes = [1, 27], strides = [1, 1]} : vector<2x27xf32> to vector<1x27xf32>
    %57 = vector.broadcast %56 : vector<1x27xf32> to vector<256x27xf32>
    %58 = arith.mulf %54, %57 : vector<256x27xf32>
    %59 = vector.extract_strided_slice %55 {offsets = [1, 0], sizes = [1, 27], strides = [1, 1]} : vector<2x27xf32> to vector<1x27xf32>
    %60 = vector.broadcast %59 : vector<1x27xf32> to vector<256x27xf32>
    %61 = arith.addf %58, %60 : vector<256x27xf32>
    %c0_32 = arith.constant 0 : index
    %c0_33 = arith.constant 0 : index
    %c0_34 = arith.constant 0 : index
    %62 = vector.load %arg4[%c0_32, %c0_33, %c0_34] : memref<1x256x27xf32, #tpu.memory_space<vmem>>, vector<1x256x27xf32>
    %63 = vector.shape_cast %62 : vector<1x256x27xf32> to vector<256x27xf32>
    %64 = vector.shape_cast %61 : vector<256x27xf32> to vector<1x256x27xf32>
    tpu.vector_store %arg4[%c0_32, %c0_33, %c0_34], %64 {strides = array<i32>} : memref<1x256x27xf32, #tpu.memory_space<vmem>>, vector<1x256x27xf32>,
    return
  }
  func.func @transform_0(%arg0: i32) -> (i32, i32, i32, i32) {
    %c0_i32 = arith.constant 0 : i32
    %c0_i32_0 = arith.constant 0 : i32
    %c0_i32_1 = arith.constant 0 : i32
    %c0_i32_2 = arith.constant 0 : i32
    return %arg0, %c0_i32, %c0_i32_0, %c0_i32_1 : i32, i32, i32, i32
  }
  func.func @transform_1(%arg0: i32) -> (i32, i32, i32) {
    %c0_i32 = arith.constant 0 : i32
    %c0_i32_0 = arith.constant 0 : i32
    %c0_i32_1 = arith.constant 0 : i32
    %c0_i32_2 = arith.constant 0 : i32
    return %c0_i32, %c0_i32_0, %c0_i32_1 : i32, i32, i32
  }
  func.func @transform_2(%arg0: i32) -> (i32, i32) {
    %c0_i32 = arith.constant 0 : i32
    %c0_i32_0 = arith.constant 0 : i32
    %c0_i32_1 = arith.constant 0 : i32
    return %c0_i32, %c0_i32_0 : i32, i32
  }
  func.func @transform_3(%arg0: i32) -> (i32, i32, i32) {
    %c0_i32 = arith.constant 0 : i32
    %c0_i32_0 = arith.constant 0 : i32
    %c0_i32_1 = arith.constant 0 : i32
    return %arg0, %c0_i32, %c0_i32_0 : i32, i32, i32
  }
}

module attributes {stable_mosaic.version = 11 : i64} {
  func.func @_mm_kernel_1k(%arg0: i32, %arg1: i32, %arg2: memref<256x144xbf16, #tpu.memory_space<vmem>>, %arg3: memref<144x128xbf16, #tpu.memory_space<vmem>>, %arg4: memref<2x128xf32, #tpu.memory_space<vmem>>, %arg5: memref<256x128xbf16, #tpu.memory_space<vmem>>) attributes {dimension_semantics = [#tpu.dimension_semantics<parallel>, #tpu.dimension_semantics<parallel>], iteration_bounds = array<i64: 2, 1>, scalar_prefetch = 0 : i64, scratch_operands = 0 : i64, tpu.core_type = #tpu.core_type<tc>, window_params = [{transform_indices = @transform_0, window_bounds = array<i64: 256, 144>}, {transform_indices = @transform_1, window_bounds = array<i64: 144, 128>}, {transform_indices = @transform_2, window_bounds = array<i64: 2, 128>}, {transform_indices = @transform_3, window_bounds = array<i64: 256, 128>}]} {
    %c0 = arith.constant 0 : index
    %c0_0 = arith.constant 0 : index
    %0 = vector.load %arg2[%c0, %c0_0] : memref<256x144xbf16, #tpu.memory_space<vmem>>, vector<256x144xbf16>
    %c0_1 = arith.constant 0 : index
    %c0_2 = arith.constant 0 : index
    %1 = vector.load %arg3[%c0_1, %c0_2] : memref<144x128xbf16, #tpu.memory_space<vmem>>, vector<144x128xbf16>
    %cst = arith.constant dense<0.000000e+00> : vector<256x128xf32>
    %2 = tpu.matmul %0, %1, %cst {dimension_numbers = #tpu.dot_dimension_numbers<[1], [0], [0], [1], [0, 0, 1, 1], [], []>} : vector<256x144xbf16>, vector<144x128xbf16>, vector<256x128xf32> -> vector<256x128xf32>
    %c0_3 = arith.constant 0 : index
    %c0_4 = arith.constant 0 : index
    %3 = vector.load %arg4[%c0_3, %c0_4] : memref<2x128xf32, #tpu.memory_space<vmem>>, vector<2x128xf32>
    %4 = vector.extract_strided_slice %3 {offsets = [0, 0], sizes = [1, 128], strides = [1, 1]} : vector<2x128xf32> to vector<1x128xf32>
    %5 = vector.broadcast %4 : vector<1x128xf32> to vector<256x128xf32>
    %6 = arith.mulf %2, %5 : vector<256x128xf32>
    %7 = vector.extract_strided_slice %3 {offsets = [1, 0], sizes = [1, 128], strides = [1, 1]} : vector<2x128xf32> to vector<1x128xf32>
    %8 = vector.broadcast %7 : vector<1x128xf32> to vector<256x128xf32>
    %9 = arith.addf %6, %8 : vector<256x128xf32>
    %cst_5 = arith.constant 0.000000e+00 : f32
    %10 = vector.broadcast %cst_5 : f32 to vector<256x128xf32>
    %11 = arith.subf %10, %9 : vector<256x128xf32>
    %12 = math.exp %11 : vector<256x128xf32>
    %cst_6 = arith.constant 1.000000e+00 : f32
    %13 = vector.broadcast %cst_6 : f32 to vector<256x128xf32>
    %14 = arith.addf %13, %12 : vector<256x128xf32>
    %15 = tpu.reciprocal %14 {approx = true} : vector<256x128xf32> -> vector<256x128xf32>
    %16 = arith.mulf %9, %15 : vector<256x128xf32>
    %17 = arith.truncf %16 : vector<256x128xf32> to vector<256x128xbf16>
    %c0_7 = arith.constant 0 : index
    %c0_8 = arith.constant 0 : index
    %18 = vector.load %arg5[%c0_7, %c0_8] : memref<256x128xbf16, #tpu.memory_space<vmem>>, vector<256x128xbf16>
    tpu.vector_store %arg5[%c0_7, %c0_8], %17 {strides = array<i32>} : memref<256x128xbf16, #tpu.memory_space<vmem>>, vector<256x128xbf16>,
    return
  }
  func.func @transform_0(%arg0: i32, %arg1: i32) -> (i32, i32) {
    %c0_i32 = arith.constant 0 : i32
    %c0_i32_0 = arith.constant 0 : i32
    return %arg0, %c0_i32 : i32, i32
  }
  func.func @transform_1(%arg0: i32, %arg1: i32) -> (i32, i32) {
    %c0_i32 = arith.constant 0 : i32
    %c0_i32_0 = arith.constant 0 : i32
    return %c0_i32, %arg1 : i32, i32
  }
  func.func @transform_2(%arg0: i32, %arg1: i32) -> (i32, i32) {
    %c0_i32 = arith.constant 0 : i32
    %c0_i32_0 = arith.constant 0 : i32
    return %c0_i32, %arg1 : i32, i32
  }
  func.func @transform_3(%arg0: i32, %arg1: i32) -> (i32, i32) {
    %c0_i32 = arith.constant 0 : i32
    return %arg0, %arg1 : i32, i32
  }
}

</mosaic_0001>

<bundles_post_ra>
// kernel: _lambda_.2
= control target key start
LH: loop header
LB: loop body
LE: loop exit
PB: predicated region body
PF: predicated region fallthrough
CT: control target
= control target key end

     0   :  { %8 = vsyncpa [#allocation3], 0  ;;  %s4120_s0 = inlined_call_operand.vmem [shape: bf16[2,18,18,16], index: 0, kind: input, shape index: {}]   ;;  %s4121_s1 = inlined_call_operand.hbm [shape: bf16[9,16,27], index: 1, kind: input, shape index: {}]   ;;  %s4122_s2 = inlined_call_operand.hbm [shape: f32[2,27], index: 2, kind: input, shape index: {}]   ;;  %s4123_s3 = inlined_call_operand.vmem [shape: f32[2,256,27], index: 3, kind: output, shape index: {}]  }
   0x1   :  { %9 = vsyncpa [#allocation5], 0  ;;  %s2938_s12 = smov 0  }
   0x2 LB: > { %s125_s15 = sshll.u32 %s4121_s1, 4  ;;  %s2483_s16 = sadd.s32 4294967295, %s2912_s12   ;;  %s2912_s12 = sphi %s2938_s12, %s15_s12   ;;  %s126_s15 = int_to_ptr.hbm [resolvable:$true] %s125_s15 }
   0x3   : > { %p2485_p0 = scmp.ge.s32.totalorder %s2912_s12, 1  ;;  %p114_p1 = scmp.lt.s32.totalorder %s2912_s12, 3 }
   0x4   : > { %p2814_p2 = scmp.eq.s32.totalorder %s2483_s16, 0  ;;  %s2914_s18 = smov [#allocation2]  }
   0x5   : > { %p2949_p3 = pnand %p2485_p0, %p114_p1  ;;  %s127_s19 = sshll.u32 %s2914_s18, 4  ;;  %s128_s19 = int_to_ptr.vmem [resolvable:$true] %s127_s19 }
   0x6   : > { %s140_s22 = sshll.u32 %s4122_s2, 4  ;;  %s2915_s23 = smov [#allocation4]   ;;  %s141_s22 = int_to_ptr.hbm [resolvable:$true] %s140_s22 }
   0x7   : > { %p2807_p4 = pneg %p2949_p3  ;;  %s142_s24 = sshll.u32 %s2915_s23, 4  ;;  %s143_s24 = int_to_ptr.vmem [resolvable:$true] %s142_s24 }
   0x8   : > { %s2916_s25 = smov 64   ;;  %s2917_s26 = smov 4  }
   0x9   : > { %p2808_p5 = pnand %p2814_p2, %p2807_p4  ;;  %163 = sbr.rel (%p2949_p3) target bundleno = 764 (0x2fc), region = 32 }
   0xb   : > { %2810 = dma.hbm_to_vmem [thread:$0]  (!%p2808_p5), %s126_s15, 1152, %s128_s19, [#allocation3], %s2916_s25, %s2916_s25, %s2917_s26  }
   0xc   : > { %2813 = dma.hbm_to_vmem [thread:$0]  (!%p2808_p5), %s141_s22, 32, %s143_s24, [#allocation5]  }
   0xe   : > { %2903 = dma.done.wait (%p2814_p2), [#allocation3], 1152  }
   0xf   : > { %2905 = vsyncadd (%p2814_p2), [#allocation3], 4294966144 }
  0x10   : > { %2907 = dma.done.wait (%p2814_p2), [#allocation5], 32  }
  0x11   : > { %2909 = vsyncadd (%p2814_p2), [#allocation5], 4294967264  ;;  %p193_p6 = scmp.lt.s32.totalorder %s2483_s16, 1  ;;  %vm260_vm0 = vsmask.f32 3328  ;;  %v2787_v0 = vld [vmem:[#allocation2 + $0x8] sm:$0xff] }
  0x12   : > { %vm261_vm1 = vsmask.f32 7440  ;;  %2795 = vmatpush.bf16.msra.mxu1 %v2787_v0  ;;  %2796 = vmatpush.bf16.msra.mxu2 %v2787_v0  ;;  %v2788_v11 = vld [vmem:[#allocation2 + $0x10] sm:$0xff]  ;;  %vm704_vm3 = vcmask 130048   ;;  %v2789_v39 = vld [vmem:[#allocation2 + $0x18] sm:$0xff]  ;;  %v2786_v45 = vld [vmem:[#allocation2] sm:$0xff] }
  0x13   : > { %s4267_s16 = smov (!%p193_p6, %s2483_s16), 1  ;;  %2797 = vmatpush.bf16.msra.mxu3 %v2787_v0  ;;  %760 = vmatpush.bf16.msra.mxu0 %v2787_v0  ;;  %vm2997_vm2 = vmor %vm260_vm0, %vm261_vm1  ;;  %v2790_v46 = vld [vmem:[#allocation2 + $0x20] sm:$0xff]  ;;  %vm1081_vm4 = vcmask 1042432   ;;  %vm1082_vm5 = vcmask 1046532   ;;  %vm2373_vm7 = vcmask 220160  }
  0x14   : > { %s2798_s27 = smul.u32 216, %s4267_s16  ;;  %vm3287_vm6 = vmor %vm1081_vm4, %vm1082_vm5  ;;  %s2767_s4 = sshll.u32 %s4267_s16, 8 }
  0x15   : > { %s3880_s7 = scalar_lea.vmem %s4123_s3, %s2767_s4 }
  0x16   : > { %s2971_s30 = scalar_lea.vmem %s4120_s0, %s2798_s27  ;;  %1308 = vmatpush.bf16.msrb.mxu2 %v2788_v11  ;;  %983 = vmatpush.bf16.msrb.mxu1 %v2786_v45 }
  0x17   : > { %v2974_v1 = vld [vmem:[%s2971_s30 + $0x30] sm:$0xf]  ;;  %v2977_v2 = vld [vmem:[%s2971_s30 + $0x34] sm:$0xf]  ;;  %v2980_v3 = vld [vmem:[%s2971_s30 + $0x38] sm:$0x1]  ;;  %1446 = vmatpush.bf16.msrb.mxu3 %v2789_v39  ;;  %1606 = vmatpush.bf16.msrb.mxu0 %v2790_v46 }
  0x18   : > { %v360_v4 = vshrl.u32 %v2974_v1, 16  ;;  %v363_v5 = vshll.u32 %v2974_v1, 16  ;;  %v369_v6 = vshll.u32 %v2977_v2, 16  ;;  %v373_v7 = vshrl.u32 %v2977_v2, 16  ;;  %v228_v9 = vld [vmem:[%s2971_s30 + $0x60] sm:$0xf] }
  0x19   : > { %v379_v8 = vshll.u32 %v2980_v3, 16  ;;  %v229_v10 = vld [vmem:[%s2971_s30 + $0x64] sm:$0xf]  ;;  %v2990_v16 = vld [vmem:[%s2971_s30 + $0x68] sm:$0x1]  ;;  %v456_v18 = vshrl.u32 %v228_v9, 16 }
  0x1a   : > { %v362_v12 = vrot.slane %v360_v4, 4  ;;  %v365_v13 = vrot.slane %v363_v5, 5  ;;  %v371_v14 = vrot.slane %v369_v6, 5  ;;  %v375_v15 = vrot.slane %v373_v7, 4  ;;  %v240_v25 = vld [vmem:[%s2971_s30 + $0x90] sm:$0xf] }
  0x1b   : > { %v381_v17 = vrot.slane %v379_v8, 5  ;;  %v459_v19 = vshll.u32 %v228_v9, 16  ;;  %v465_v20 = vshll.u32 %v229_v10, 16  ;;  %v469_v23 = vshrl.u32 %v229_v10, 16  ;;  %v241_v26 = vld [vmem:[%s2971_s30 + $0x94] sm:$0xf] }
  0x1c   : > { %v366_v21 = vor.u32 %v365_v13, %v362_v12  ;;  %v376_v22 = vor.u32 %v375_v15, %v371_v14  ;;  %v475_v24 = vshll.u32 %v2990_v16, 16  ;;  %v458_v28 = vrot.slane %v456_v18, 4  ;;  %v242_v43 = vld [vmem:[%s2971_s30 + $0x98] sm:$0x1]  ;;  %v3007_v55 = vld [vmem:[%s2971_s30] sm:$0xf] }
  0x1d   : > { %v461_v29 = vrot.slane %v459_v19, 5  ;;  %v467_v30 = vrot.slane %v465_v20, 5  ;;  %v471_v33 = vrot.slane %v469_v23, 4  ;;  %v552_v36 = vshrl.u32 %v240_v25, 16  ;;  %v3014_v59 = vld [vmem:[%s2971_s30 + $0x4] sm:$0xf] }
  0x1e   : > { %v367_v31 = vrot.slane %v366_v21, 4  ;;  %v377_v32 = vrot.slane %v376_v22, 4  ;;  %v477_v34 = vrot.slane %v475_v24, 5  ;;  %v555_v37 = vshll.u32 %v240_v25, 16  ;;  %v3019_v0 = vld [vmem:[%s2971_s30 + $0x8] sm:$0x1] }
  0x1f   : > { %v462_v35 = vor.u32 %v461_v29, %v458_v28  ;;  %v561_v38 = vshll.u32 %v241_v26, 16  ;;  %v472_v42 = vor.u32 %v471_v33, %v467_v30  ;;  %v565_v44 = vshrl.u32 %v241_v26, 16  ;;  %v3038_v22 = vld [vmem:[%s2971_s30 + $0x40] sm:$0xf]  ;;  %v3043_v26 = vld [vmem:[%s2971_s30 + $0x44] sm:$0x1] }
  0x20   : > { %v372_v40 = vsel %vm2997_vm2, %v367_v31, %v371_v14  ;;  %v382_v41 = vsel %vm2997_vm2, %v377_v32, %v381_v17  ;;  %v554_v50 = vrot.slane %v552_v36, 4  ;;  %v557_v52 = vrot.slane %v555_v37, 5  ;;  %v3031_v17 = vld [vmem:[%s2971_s30 + $0x3c] sm:$0xf]  ;;  %v3048_v32 = vld [vmem:[%s2971_s30 + $0x6c] sm:$0xf] }
  0x21   : > { %v658_v47 = vunpack.c.l.b16 %v372_v40  ;;  %v659_v48 = vunpack.c.l.b16 %v382_v41  ;;  %v463_v49 = vrot.slane %v462_v35, 4  ;;  %v473_v51 = vrot.slane %v472_v42, 4  ;;  %v3056_v41 = vld [vmem:[%s2971_s30 + $0x70] sm:$0xf]  ;;  %v3063_v45 = vld [vmem:[%s2971_s30 + $0x74] sm:$0x1] }
  0x22   : > { %v563_v53 = vrot.slane %v561_v38, 5  ;;  %v567_v54 = vrot.slane %v565_v44, 4  ;;  %v571_v58 = vshll.u32 %v242_v43, 16  ;;  %v558_v62 = vor.u32 %v557_v52, %v554_v50 }
  0x23   : > { %v3009_v56 = vpack.c.b16 %v659_v48, %v658_v47  ;;  %v468_v57 = vsel %vm2997_vm2, %v463_v49, %v467_v30  ;;  %v478_v60 = vsel %vm2997_vm2, %v473_v51, %v477_v34  ;;  %v264_v6 = vshrl.u32 %v3007_v55, 16 }
  0x24   : > { %v666_v61 = vunpack.c.l.b16 %v468_v57  ;;  %v568_v63 = vor.u32 %v567_v54, %v563_v53  ;;  %v667_v4 = vunpack.c.l.b16 %v478_v60  ;;  %v573_v5 = vrot.slane %v571_v58, 5 }
  0x25   : > { %2503 = vmatmul.msk.bf16.vlgmr.msra.gmra.mxu1 %vm704_vm3, %v3009_v56  ;;  %v267_v7 = vshll.u32 %v3007_v55, 16  ;;  %v559_v8 = vrot.slane %v558_v62, 4  ;;  %v273_v10 = vshll.u32 %v3014_v59, 16  ;;  %v277_v11 = vshrl.u32 %v3014_v59, 16  ;;  %v243_v62 = vld [vmem:[%s2971_s30 + $0x9c] sm:$0xf] }
  0x26   : > { %v569_v9 = vrot.slane %v568_v63, 4  ;;  %v3027_v12 = vpack.c.b16 %v667_v4, %v666_v61  ;;  %v266_v13 = vrot.slane %v264_v6, 4  ;;  %v283_v15 = vshll.u32 %v3019_v0, 16  ;;  %v244_v6 = vld [vmem:[%s2971_s30 + $0xa0] sm:$0xf] }
  0x27   : > { %v269_v14 = vrot.slane %v267_v7, 5  ;;  %v564_v18 = vsel %vm2997_vm2, %v559_v8, %v563_v53  ;;  %v275_v20 = vrot.slane %v273_v10, 5  ;;  %v279_v21 = vrot.slane %v277_v11, 4  ;;  %v245_v11 = vld [vmem:[%s2971_s30 + $0xa4] sm:$0x1] }
  0x28   : > { %4167 = vst [vmem:[#allocation8_spill] sm:$0xff] %v3027_v12  ;;  %v574_v19 = vsel %vm2997_vm2, %v569_v9, %v573_v5  ;;  %2507 = vmatmul.msk.bf16.vlgmr.msra.gmra.mxu2 %vm704_vm3, %v3027_v12  ;;  %v674_v23 = vunpack.c.l.b16 %v564_v18  ;;  %v285_v29 = vrot.slane %v283_v15, 5  ;;  %v384_v30 = vshrl.u32 %v3031_v17, 16 }
  0x29   : > { %v675_v24 = vunpack.c.l.b16 %v574_v19  ;;  %v270_v25 = vor.u32 %v269_v14, %v266_v13  ;;  %v280_v28 = vor.u32 %v279_v21, %v275_v20  ;;  %v387_v31 = vshll.u32 %v3031_v17, 16 }
  0x2a   : > { %v393_v35 = vshll.u32 %v3038_v22, 16  ;;  %v397_v36 = vshrl.u32 %v3038_v22, 16  ;;  %v386_v38 = vrot.slane %v384_v30, 4  ;;  %v403_v40 = vshll.u32 %v3043_v26, 16  ;;  %v3081_v30 = vld [vmem:[%s2971_s30 + $0xc] sm:$0xf] }
  0x2b   : > { %v3050_v33 = vpack.c.b16 %v675_v24, %v674_v23  ;;  %v271_v34 = vrot.slane %v270_v25, 4  ;;  %v281_v37 = vrot.slane %v280_v28, 4  ;;  %v389_v39 = vrot.slane %v387_v31, 5 }
  0x2c   : > { %v395_v43 = vrot.slane %v393_v35, 5  ;;  %v399_v44 = vrot.slane %v397_v36, 4  ;;  %v480_v46 = vshrl.u32 %v3048_v32, 16  ;;  %v405_v50 = vrot.slane %v403_v40, 5 }
  0x2d   : > { %4168 = vst [vmem:[#allocation9_spill] sm:$0xff] %v3050_v33  ;;  %2511 = vmatmul.msk.bf16.vlgmr.msra.gmra.mxu3 %vm704_vm3, %v3050_v33  ;;  %v276_v42 = vsel %vm2997_vm2, %v271_v34, %v275_v20  ;;  %v286_v47 = vsel %vm2997_vm2, %v281_v37, %v285_v29  ;;  %v390_v49 = vor.u32 %v389_v39, %v386_v38  ;;  %v483_v54 = vshll.u32 %v3048_v32, 16  ;;  %v3086_v37 = vld [vmem:[%s2971_s30 + $0x10] sm:$0xf] }
  0x2e   : > { %v650_v48 = vunpack.c.l.b16 %v276_v42  ;;  %v651_v51 = vunpack.c.l.b16 %v286_v47  ;;  %v400_v52 = vor.u32 %v399_v44, %v395_v43  ;;  %v482_v53 = vrot.slane %v480_v46, 4  ;;  %v3091_v42 = vld [vmem:[%s2971_s30 + $0x14] sm:$0x1] }
  0x2f   : > { %v391_v57 = vrot.slane %v390_v49, 4  ;;  %v489_v58 = vshll.u32 %v3056_v41, 16  ;;  %v493_v60 = vshrl.u32 %v3056_v41, 16  ;;  %v499_v61 = vshll.u32 %v3063_v45, 16 }
  0x30   : > { %v682_v63 = vpack.c.b16 %v651_v51, %v650_v48  ;;  %v401_v4 = vrot.slane %v400_v52, 4  ;;  %v485_v5 = vrot.slane %v483_v54, 5  ;;  %v576_v18 = vshrl.u32 %v243_v62, 16  ;;  %v3101_v52 = vld [vmem:[%s2971_s30 + $0x48] sm:$0xf] }
  0x31   : > { %v396_v7 = vsel %vm2997_vm2, %v391_v57, %v395_v43  ;;  %v491_v8 = vrot.slane %v489_v58, 5  ;;  %v495_v9 = vrot.slane %v493_v60, 4  ;;  %v501_v10 = vrot.slane %v499_v61, 5 }
  0x32   : > { %2499 = vmatmul.msk.bf16.vlgmr.msra.gmra.mxu0 %vm704_vm3, %v682_v63  ;;  %v406_v13 = vsel %vm2997_vm2, %v401_v4, %v405_v50  ;;  %v660_v14 = vunpack.c.l.b16 %v396_v7  ;;  %v486_v15 = vor.u32 %v485_v5, %v482_v53  ;;  %v579_v21 = vshll.u32 %v243_v62, 16  ;;  %v3108_v4 = vld [vmem:[%s2971_s30 + $0x4c] sm:$0xf] }
  0x33   : > { %v661_v19 = vunpack.c.l.b16 %v406_v13  ;;  %v496_v20 = vor.u32 %v495_v9, %v491_v8  ;;  %v585_v23 = vshll.u32 %v244_v6, 16  ;;  %v578_v25 = vrot.slane %v576_v18, 4 }
  0x34   : > { %v487_v24 = vrot.slane %v486_v15, 4  ;;  %v589_v28 = vshrl.u32 %v244_v6, 16  ;;  %v595_v29 = vshll.u32 %v245_v11, 16  ;;  %v581_v35 = vrot.slane %v579_v21, 5  ;;  %v3122_v15 = vld [vmem:[%s2971_s30 + $0x78] sm:$0xf] }
  0x35   : > { %v3083_v31 = vpack.c.b16 %v661_v19, %v660_v14  ;;  %v497_v34 = vrot.slane %v496_v20, 4  ;;  %v587_v36 = vrot.slane %v585_v23, 5  ;;  %v288_v47 = vshrl.u32 %v3081_v30, 16 }
  0x36   : > { %v492_v38 = vsel %vm2997_vm2, %v487_v24, %v491_v8  ;;  %v591_v39 = vrot.slane %v589_v28, 4  ;;  %v597_v40 = vrot.slane %v595_v29, 5  ;;  %v582_v46 = vor.u32 %v581_v35, %v578_v25  ;;  %v3113_v8 = vld [vmem:[%s2971_s30 + $0x50] sm:$0x1] }
  0x37   : > { %2504 = vmatmul.msk.bf16.gmra.mxu1 %vm704_vm3, %v3083_v31  ;;  %v502_v43 = vsel %vm2997_vm2, %v497_v34, %v501_v10  ;;  %v668_v44 = vunpack.c.l.b16 %v492_v38  ;;  %v291_v50 = vshll.u32 %v3081_v30, 16  ;;  %v297_v51 = vshll.u32 %v3086_v37, 16 }
  0x38   : > { %v669_v48 = vunpack.c.l.b16 %v502_v43  ;;  %v592_v49 = vor.u32 %v591_v39, %v587_v36  ;;  %v583_v53 = vrot.slane %v582_v46, 4  ;;  %v290_v54 = vrot.slane %v288_v47, 4  ;;  %v3136_v46 = vld [vmem:[%s2971_s30 + $0x80] sm:$0x1] }
  0x39   : > { %v301_v57 = vshrl.u32 %v3086_v37, 16  ;;  %v307_v58 = vshll.u32 %v3091_v42, 16  ;;  %v293_v62 = vrot.slane %v291_v50, 5  ;;  %v299_v63 = vrot.slane %v297_v51, 5 }
  0x3a   : > { %v3105_v60 = vpack.c.b16 %v669_v48, %v668_v44  ;;  %v593_v61 = vrot.slane %v592_v49, 4  ;;  %v588_v5 = vsel %vm2997_vm2, %v583_v53, %v587_v36  ;;  %v408_v9 = vshrl.u32 %v3101_v52, 16  ;;  %v3130_v36 = vld [vmem:[%s2971_s30 + $0x7c] sm:$0xf] }
  0x3b   : > { %v303_v6 = vrot.slane %v301_v57, 4  ;;  %v309_v7 = vrot.slane %v307_v58, 5  ;;  %v676_v11 = vunpack.c.l.b16 %v588_v5  ;;  %v294_v13 = vor.u32 %v293_v62, %v290_v54  ;;  %v3145_v58 = vld [vmem:[%s2971_s30 + $0xa8] sm:$0xf]  ;;  %v3150_v5 = vld [vmem:[%s2971_s30 + $0xac] sm:$0xf] }
  0x3c   : > { %2508 = vmatmul.msk.bf16.gmra.mxu2 %vm704_vm3, %v3105_v60  ;;  %v598_v10 = vsel %vm2997_vm2, %v593_v61, %v597_v40  ;;  %v411_v14 = vshll.u32 %v3101_v52, 16  ;;  %v410_v20 = vrot.slane %v408_v9, 4  ;;  %v417_v21 = vshll.u32 %v3108_v4, 16  ;;  %4170 = vst [vmem:[#allocation11_spill] sm:$0xff] %v3145_v58 }
  0x3d   : > { %v677_v18 = vunpack.c.l.b16 %v598_v10  ;;  %v304_v19 = vor.u32 %v303_v6, %v299_v63  ;;  %v295_v23 = vrot.slane %v294_v13, 4  ;;  %v421_v25 = vshrl.u32 %v3108_v4, 16  ;;  %4171 = vst [vmem:[#allocation12_spill] sm:$0xff] %v3150_v5 }
  0x3e   : > { %v413_v24 = vrot.slane %v411_v14, 5  ;;  %v427_v28 = vshll.u32 %v3113_v8, 16  ;;  %v419_v35 = vrot.slane %v417_v21, 5  ;;  %v504_v38 = vshrl.u32 %v3122_v15, 16 }
  0x3f   : > { %v3127_v29 = vpack.c.b16 %v677_v18, %v676_v11  ;;  %v305_v34 = vrot.slane %v304_v19, 4  ;;  %v300_v39 = vsel %vm2997_vm2, %v295_v23, %v299_v63  ;;  %v423_v43 = vrot.slane %v421_v25, 4  ;;  %v3157_v19 = vld [vmem:[%s2971_s30 + $0xb0] sm:$0x1] }
  0x40   : > { %v414_v40 = vor.u32 %v413_v24, %v410_v20  ;;  %v429_v44 = vrot.slane %v427_v28, 5  ;;  %v652_v48 = vunpack.c.l.b16 %v300_v39  ;;  %v506_v49 = vrot.slane %v504_v38, 4  ;;  %4172 = vst [vmem:[#allocation13_spill] sm:$0xff] %v3157_v19 }
  0x41   : > { %4169 = vst [vmem:[#allocation10_spill] sm:$0xff] %v3127_v29  ;;  %2512 = vmatmul.msk.bf16.gmra.mxu3 %vm704_vm3, %v3127_v29  ;;  %v310_v47 = vsel %vm2997_vm2, %v305_v34, %v309_v7  ;;  %v507_v50 = vshll.u32 %v3122_v15, 16  ;;  %v424_v54 = vor.u32 %v423_v43, %v419_v35  ;;  %v513_v57 = vshll.u32 %v3130_v36, 16 }
  0x42   : > { %v653_v51 = vunpack.c.l.b16 %v310_v47  ;;  %v415_v53 = vrot.slane %v414_v40, 4  ;;  %v517_v62 = vshrl.u32 %v3130_v36, 16  ;;  %v523_v63 = vshll.u32 %v3136_v46, 16  ;;  %v3169_v47 = vld [vmem:[%s2971_s30 + $0x18] sm:$0xf] }
  0x43   : > { %v509_v61 = vrot.slane %v507_v50, 5  ;;  %v425_v9 = vrot.slane %v424_v54, 4  ;;  %v515_v10 = vrot.slane %v513_v57, 5  ;;  %v600_v21 = vshrl.u32 %v3145_v58, 16 }
  0x44   : > { %v3152_v6 = vpack.c.b16 %v653_v51, %v652_v48  ;;  %v420_v7 = vsel %vm2997_vm2, %v415_v53, %v419_v35  ;;  %v519_v14 = vrot.slane %v517_v62, 4  ;;  %v525_v18 = vrot.slane %v523_v63, 5  ;;  %v3176_v51 = vld [vmem:[%s2971_s30 + $0x1c] sm:$0xf] }
  0x45   : > { %v662_v11 = vunpack.c.l.b16 %v420_v7  ;;  %v510_v13 = vor.u32 %v509_v61, %v506_v49  ;;  %v430_v20 = vsel %vm2997_vm2, %v425_v9, %v429_v44  ;;  %v603_v23 = vshll.u32 %v3145_v58, 16  ;;  %v3179_v61 = vld [vmem:[%s2971_s30 + $0x20] sm:$0x1]  ;;  %v3235_v58 = vld [vmem:[%s2971_s30 + $0xb4] sm:$0xf] }
  0x46   : > { %2500 = vmatmul.msk.bf16.gmra.mxu0 %vm704_vm3, %v3152_v6  ;;  %v609_v24 = vshll.u32 %v3150_v5, 16  ;;  %v663_v25 = vunpack.c.l.b16 %v430_v20  ;;  %v520_v34 = vor.u32 %v519_v14, %v515_v10  ;;  %v613_v35 = vshrl.u32 %v3150_v5, 16  ;;  %4178 = vst [vmem:[#allocation19_spill] sm:$0xff] %v3235_v58 }
  0x47   : > { %v511_v28 = vrot.slane %v510_v13, 4  ;;  %v602_v38 = vrot.slane %v600_v21, 4  ;;  %v605_v39 = vrot.slane %v603_v23, 5  ;;  %v619_v43 = vshll.u32 %v3157_v19, 16  ;;  %v2792_v19 = vld [vmem:[#allocation2 + $0x30] sm:$0xff] }
  0x48   : > { %v611_v40 = vrot.slane %v609_v24, 5  ;;  %v3171_v44 = vpack.c.b16 %v663_v25, %v662_v11  ;;  %v521_v49 = vrot.slane %v520_v34, 4  ;;  %v615_v50 = vrot.slane %v613_v35, 4  ;;  %v3191_v25 = vld [vmem:[%s2971_s30 + $0x54] sm:$0xf]  ;;  %1888 = vmatpush.bf16.msra.mxu2 %v2792_v19 }
  0x49   : > { %v516_v48 = vsel %vm2997_vm2, %v511_v28, %v515_v10  ;;  %v606_v54 = vor.u32 %v605_v39, %v602_v38  ;;  %v621_v57 = vrot.slane %v619_v43, 5  ;;  %v312_v7 = vshrl.u32 %v3169_v47, 16  ;;  %v3198_v38 = vld [vmem:[%s2971_s30 + $0x58] sm:$0xf]  ;;  %v3201_v39 = vld [vmem:[%s2971_s30 + $0x5c] sm:$0x1] }
  0x4a   : > { %4173 = vst [vmem:[#allocation14_spill] sm:$0xff] %v3171_v44  ;;  %v670_v53 = vunpack.c.l.b16 %v516_v48  ;;  %2505 = vmatmul.msk.bf16.gmra.mxu1 %vm704_vm3, %v3171_v44  ;;  %v526_v62 = vsel %vm2997_vm2, %v521_v49, %v525_v18  ;;  %v616_v63 = vor.u32 %v615_v50, %v611_v40  ;;  %v315_v9 = vshll.u32 %v3169_v47, 16 }
  0x4b   : > { %v671_v10 = vunpack.c.l.b16 %v526_v62  ;;  %v607_v11 = vrot.slane %v606_v54, 4  ;;  %v321_v13 = vshll.u32 %v3176_v51, 16  ;;  %v325_v14 = vshrl.u32 %v3176_v51, 16 }
  0x4c   : > { %v617_v20 = vrot.slane %v616_v63, 4  ;;  %v314_v21 = vrot.slane %v312_v7, 4  ;;  %v317_v23 = vrot.slane %v315_v9, 5  ;;  %v331_v24 = vshll.u32 %v3179_v61, 16 }
  0x4d   : > { %v3193_v18 = vpack.c.b16 %v671_v10, %v670_v53  ;;  %v612_v28 = vsel %vm2997_vm2, %v607_v11, %v611_v40  ;;  %v323_v34 = vrot.slane %v321_v13, 5  ;;  %v327_v35 = vrot.slane %v325_v14, 4  ;;  %v3213_v10 = vld [vmem:[%s2971_s30 + $0x84] sm:$0xf] }
  0x4e   : > { %v622_v43 = vsel %vm2997_vm2, %v617_v20, %v621_v57  ;;  %v678_v48 = vunpack.c.l.b16 %v612_v28  ;;  %v318_v49 = vor.u32 %v317_v23, %v314_v21  ;;  %v333_v50 = vrot.slane %v331_v24, 5  ;;  %4174 = vst [vmem:[#allocation15_spill] sm:$0xff] %v3213_v10  ;;  %v3218_v21 = vld [vmem:[%s2971_s30 + $0x88] sm:$0xf] }
  0x4f   : > { %2509 = vmatmul.msk.bf16.gmra.mxu2 %vm704_vm3, %v3193_v18  ;;  %v679_v53 = vunpack.c.l.b16 %v622_v43  ;;  %v328_v54 = vor.u32 %v327_v35, %v323_v34  ;;  %v432_v40 = vshrl.u32 %v3191_v25, 16  ;;  %v435_v62 = vshll.u32 %v3191_v25, 16  ;;  %4176 = vst [vmem:[#allocation17_spill] sm:$0xff] %v3218_v21  ;;  %v3223_v43 = vld [vmem:[%s2971_s30 + $0x8c] sm:$0x1] }
  0x50   : > { %v319_v63 = vrot.slane %v318_v49, 4  ;;  %v441_v7 = vshll.u32 %v3198_v38, 16  ;;  %v445_v9 = vshrl.u32 %v3198_v38, 16  ;;  %v451_v57 = vshll.u32 %v3201_v39, 16  ;;  %4177 = vst [vmem:[#allocation18_spill] sm:$0xff] %v3223_v43 }
  0x51   : > { %v3215_v11 = vpack.c.b16 %v679_v53, %v678_v48  ;;  %v329_v13 = vrot.slane %v328_v54, 4  ;;  %v434_v14 = vrot.slane %v432_v40, 4  ;;  %v437_v20 = vrot.slane %v435_v62, 5 }
  0x52   : > { %v324_v23 = vsel %vm2997_vm2, %v319_v63, %v323_v34  ;;  %v443_v24 = vrot.slane %v441_v7, 5  ;;  %v447_v28 = vrot.slane %v445_v9, 4  ;;  %v453_v35 = vrot.slane %v451_v57, 5 }
  0x53   : > { %4175 = vst [vmem:[#allocation16_spill] sm:$0xff] %v3215_v11  ;;  %2513 = vmatmul.msk.bf16.gmra.mxu3 %vm704_vm3, %v3215_v11  ;;  %v334_v48 = vsel %vm2997_vm2, %v329_v13, %v333_v50  ;;  %v654_v49 = vunpack.c.l.b16 %v324_v23  ;;  %v438_v53 = vor.u32 %v437_v20, %v434_v14  ;;  %v528_v54 = vshrl.u32 %v3213_v10, 16  ;;  %v3240_v23 = vld [vmem:[%s2971_s30 + $0xb8] sm:$0xf] }
  0x54   : > { %v655_v40 = vunpack.c.l.b16 %v334_v48  ;;  %v448_v62 = vor.u32 %v447_v28, %v443_v24  ;;  %v531_v34 = vshll.u32 %v3213_v10, 16  ;;  %v537_v63 = vshll.u32 %v3218_v21, 16  ;;  %4179 = vst [vmem:[#allocation20_spill] sm:$0xff] %v3240_v23  ;;  %v2793_v10 = vld [vmem:[#allocation2 + $0x38] sm:$0xff] }
  0x55   : > { %v439_v7 = vrot.slane %v438_v53, 4  ;;  %v530_v9 = vrot.slane %v528_v54, 4  ;;  %v541_v57 = vshrl.u32 %v3218_v21, 16  ;;  %v547_v11 = vshll.u32 %v3223_v43, 16  ;;  %v3245_v54 = vld [vmem:[%s2971_s30 + $0xbc] sm:$0x1]  ;;  %2048 = vmatpush.bf16.msra.mxu3 %v2793_v10 }
  0x56   : > { %v3237_v50 = vpack.c.b16 %v655_v40, %v654_v49  ;;  %v449_v13 = vrot.slane %v448_v62, 4  ;;  %v533_v14 = vrot.slane %v531_v34, 5  ;;  %v539_v20 = vrot.slane %v537_v63, 5  ;;  %4180 = vst [vmem:[#allocation21_spill] sm:$0xff] %v3245_v54  ;;  %v2794_v43 = vld [vmem:[#allocation2 + $0x40] sm:$0xff] }
  0x57   : > { %v444_v28 = vsel %vm2997_vm2, %v439_v7, %v443_v24  ;;  %v543_v48 = vrot.slane %v541_v57, 4  ;;  %v549_v53 = vrot.slane %v547_v11, 5  ;;  %v624_v34 = vshrl.u32 %v3235_v58, 16  ;;  %v3255_v7 = vld [vmem:[%s2971_s30 + $0x24] sm:$0xf]  ;;  %2192 = vmatpush.bf16.msra.mxu0 %v2794_v43 }
  0x58   : > { %2501 = vmatmul.msk.bf16.gmra.mxu0 %vm704_vm3, %v3237_v50  ;;  %v454_v49 = vsel %vm2997_vm2, %v449_v13, %v453_v35  ;;  %v664_v40 = vunpack.c.l.b16 %v444_v28  ;;  %v534_v62 = vor.u32 %v533_v14, %v530_v9  ;;  %v627_v24 = vshll.u32 %v3235_v58, 16  ;;  %v3260_v13 = vld [vmem:[%s2971_s30 + $0x28] sm:$0xf] }
  0x59   : > { %v665_v63 = vunpack.c.l.b16 %v454_v49  ;;  %v544_v5 = vor.u32 %v543_v48, %v539_v20  ;;  %v633_v11 = vshll.u32 %v3240_v23, 16  ;;  %v626_v29 = vrot.slane %v624_v34, 4  ;;  %v3265_v49 = vld [vmem:[%s2971_s30 + $0x2c] sm:$0x1] }
  0x5a   : > { %v535_v57 = vrot.slane %v534_v62, 4  ;;  %v637_v33 = vshrl.u32 %v3240_v23, 16  ;;  %v643_v35 = vshll.u32 %v3245_v54, 16  ;;  %v629_v28 = vrot.slane %v627_v24, 5  ;;  %v2791_v23 = vld [vmem:[#allocation2 + $0x28] sm:$0xff] }
  0x5b   : > { %v3262_v9 = vpack.c.b16 %v665_v63, %v664_v40  ;;  %v545_v14 = vrot.slane %v544_v5, 4  ;;  %v635_v48 = vrot.slane %v633_v11, 5  ;;  %v1089_v58 = vrot.slane %v3019_v0, 5  ;;  %1750 = vmatpush.bf16.msra.mxu1 %v2791_v23 }
  0x5c   : > { %v540_v19 = vsel %vm2997_vm2, %v535_v57, %v539_v20  ;;  %v639_v62 = vrot.slane %v637_v33, 4  ;;  %v645_v34 = vrot.slane %v643_v35, 5  ;;  %v630_v63 = vor.u32 %v629_v28, %v626_v29 }
  0x5d   : > { %4181 = vst [vmem:[#allocation22_spill] sm:$0xff] %v3262_v9  ;;  %2506 = vmatmul.msk.bf16.gmra.mxu1 %vm704_vm3, %v3262_v9  ;;  %v550_v5 = vsel %vm2997_vm2, %v545_v14, %v549_v53  ;;  %v672_v40 = vunpack.c.l.b16 %v540_v19  ;;  %v336_v24 = vshrl.u32 %v3255_v7, 16  ;;  %v339_v54 = vshll.u32 %v3255_v7, 16 }
  0x5e   : > { %v673_v11 = vunpack.c.l.b16 %v550_v5  ;;  %v640_v0 = vor.u32 %v639_v62, %v635_v48  ;;  %v345_v33 = vshll.u32 %v3260_v13, 16  ;;  %v631_v20 = vrot.slane %v630_v63, 4 }
  0x5f   : > { %v338_v57 = vrot.slane %v336_v24, 4  ;;  %v349_v35 = vshrl.u32 %v3260_v13, 16  ;;  %v355_v21 = vshll.u32 %v3265_v49, 16  ;;  %v341_v14 = vrot.slane %v339_v54, 5 }
  0x60   : > { %v3279_v53 = vpack.c.b16 %v673_v11, %v672_v40  ;;  %v641_v29 = vrot.slane %v640_v0, 4  ;;  %v347_v28 = vrot.slane %v345_v33, 5  ;;  %v636_v19 = vsel %vm2997_vm2, %v631_v20, %v635_v48 }
  0x61   : > { %v351_v62 = vrot.slane %v349_v35, 4  ;;  %v357_v5 = vrot.slane %v355_v21, 5  ;;  %v680_v23 = vunpack.c.l.b16 %v636_v19  ;;  %v342_v63 = vor.u32 %v341_v14, %v338_v57 }
  0x62   : > { %4182 = vst [vmem:[#allocation23_spill] sm:$0xff] %v3279_v53  ;;  %2510 = vmatmul.msk.bf16.gmra.mxu2 %vm704_vm3, %v3279_v53  ;;  %v646_v10 = vsel %vm2997_vm2, %v641_v29, %v645_v34  ;;  %v2599_v48 = vrot.slane %v3007_v55, 9  ;;  %v1086_v21 = vrot.slane %v3014_v59, 5  ;;  %v2600_v11 = vrot.slane %v3081_v30, 9 }
  0x63   : > { %v681_v43 = vunpack.c.l.b16 %v646_v10  ;;  %v352_v40 = vor.u32 %v351_v62, %v347_v28  ;;  %v343_v24 = vrot.slane %v342_v63, 4  ;;  %v1093_v0 = vrot.slane %v3086_v37, 5 }
  0x64   : > { %v1096_v34 = vrot.slane %v3091_v42, 5  ;;  %v1087_v57 = vsel %vm3287_vm6, %v2599_v48, %v1086_v21  ;;  %v1088_v35 = vrot.slane %v1086_v21, 4  ;;  %v3330_v21 = vld [vmem:[%s2971_s30 + $0x18] sm:$0xff] }
  0x65   : > { %v3296_v33 = vpack.c.b16 %v681_v43, %v680_v23  ;;  %v353_v20 = vrot.slane %v352_v40, 4  ;;  %v348_v55 = vsel %vm2997_vm2, %v343_v24, %v347_v28  ;;  %v1199_v29 = vunpack.c.l.b16 %v1087_v57  ;;  %v2768_v23 = vld [vmem:[%s2971_s30] sm:$0xff] }
  0x66   : > { %v1094_v59 = vsel %vm3287_vm6, %v2600_v11, %v1093_v0  ;;  %v1095_v30 = vrot.slane %v1093_v0, 4  ;;  %v656_v42 = vunpack.c.l.b16 %v348_v55  ;;  %v1090_v14 = vsel %vm3287_vm6, %v1088_v35, %v1089_v58  ;;  %v2769_v58 = vld [vmem:[%s2971_s30 + $0xc] sm:$0xff]  ;;  %v3350_v57 = vld [vmem:[%s2971_s30 + $0x24] sm:$0xff] }
  0x67   : > { %2514 = vmatmul.msk.bf16.gmra.mxu3 %vm704_vm3, %v3296_v33  ;;  %v358_v37 = vsel %vm2997_vm2, %v353_v20, %v357_v5  ;;  %v1201_v19 = vunpack.c.l.b16 %v1094_v59  ;;  %v1200_v10 = vunpack.c.l.b16 %v1090_v14  ;;  %v1100_v5 = vrot.slane %v3176_v51, 5  ;;  %v3372_v14 = vld [vmem:[%s2971_s30 + $0x30] sm:$0xff] }
  0x68   : > { %v657_v62 = vunpack.c.l.b16 %v358_v37  ;;  %v1097_v28 = vsel %vm3287_vm6, %v1095_v30, %v1096_v34  ;;  %v2601_v24 = vrot.slane %v3169_v47, 9  ;;  %v1103_v0 = vrot.slane %v3179_v61, 5 }
  0x69   : > { %v1202_v63 = vunpack.c.l.b16 %v1097_v28  ;;  %v1231_v40 = vpack.c.b16 %v1200_v10, %v1199_v29  ;;  %v1102_v11 = vrot.slane %v1100_v5, 4  ;;  %v1107_v61 = vrot.slane %v3260_v13, 5 }
  0x6a   : > { %v3313_v43 = vpack.c.b16 %v657_v62, %v656_v42  ;;  %v2602_v35 = vrot.slane %v3255_v7, 9  ;;  %v1110_v29 = vrot.slane %v3265_v49, 5  ;;  %v1114_v49 = vrot.slane %v2977_v2, 5 }
  0x6b   : > { %v3315_v48 = vpack.c.b16 %v1202_v63, %v1201_v19  ;;  %v1104_v51 = vsel %vm3287_vm6, %v1102_v11, %v1103_v0  ;;  %v1109_v55 = vrot.slane %v1107_v61, 4  ;;  %v2603_v19 = vrot.slane %v2974_v1, 9  ;;  %v3400_v11 = vld [vmem:[%s2971_s30 + $0x3c] sm:$0xff] }
  0x6c   : > { %2502 = vmatmul.msk.bf16.gmra.mxu0 %vm704_vm3, %v3313_v43  ;;  %v1204_v20 = vunpack.c.l.b16 %v1104_v51  ;;  %v1108_v59 = vsel %vm3287_vm6, %v2602_v35, %v1107_v61  ;;  %v1116_v62 = vrot.slane %v1114_v49, 4  ;;  %v1117_v10 = vrot.slane %v2980_v3, 5 }
  0x6d   : > { %2583 = vmatmul.msk.bf16.vlgmr.msrb.gmra.mxu1 %vm704_vm3, %v2768_v23  ;;  %v1111_v13 = vsel %vm3287_vm6, %v1109_v55, %v1110_v29  ;;  %v1205_v30 = vunpack.c.l.b16 %v1108_v59  ;;  %v1115_v28 = vsel %vm3287_vm6, %v2603_v19, %v1114_v49  ;;  %v3434_v49 = vld [vmem:[%s2971_s30 + $0x48] sm:$0xff] }
  0x6e   : > { %v1206_v37 = vunpack.c.l.b16 %v1111_v13  ;;  %v1118_v2 = vsel %vm3287_vm6, %v1116_v62, %v1117_v10  ;;  %v1207_v63 = vunpack.c.l.b16 %v1115_v28  ;;  %v2605_v62 = vrot.slane %v3101_v52, 9 }
  0x6f   : > { %v1131_v28 = vrot.slane %v3113_v8, 5 }
  0x70   : > { %v3364_v7 = vpack.c.b16 %v1206_v37, %v1205_v30  ;;  %v1128_v30 = vrot.slane %v3108_v4, 5 }
  0x72   : > { %2619 = vmatmul.msk.bf16.vlgmr.msrb.gmra.mxu2 %vm704_vm3, %v1231_v40  ;;  %v1208_v40 = vunpack.c.l.b16 %v1118_v2  ;;  %v1130_v10 = vrot.slane %v1128_v30, 4  ;;  %v1129_v4 = vsel %vm3287_vm6, %v2605_v62, %v1128_v30  ;;  %v1138_v62 = vrot.slane %v3201_v39, 5 }
  0x74   : > { %v3392_v3 = vpack.c.b16 %v1208_v40, %v1207_v63  ;;  %v1132_v63 = vsel %vm3287_vm6, %v1130_v10, %v1131_v28 }
  0x77   : > { %2643 = vmatmul.msk.bf16.vlgmr.msrb.gmra.mxu3 %vm704_vm3, %v2769_v58 }
  0x7c   : > { %2663 = vmatmul.msk.bf16.vlgmr.msrb.gmra.mxu0 %vm704_vm3, %v3152_v6  ;;  %v1101_v6 = vsel %vm3287_vm6, %v2601_v24, %v1100_v5  ;;  %v1121_v24 = vrot.slane %v3038_v22, 5 }
  0x7d   : > { %2584 = vmatmul.msk.bf16.gmra.mxu1 %vm704_vm3, %v2769_v58  ;;  %v1203_v34 = vunpack.c.l.b16 %v1101_v6  ;;  %v2604_v6 = vrot.slane %v3031_v17, 9 }
  0x7e   : > { %v1123_v51 = vrot.slane %v1121_v24, 4 }
  0x7f   : > { %v3344_v47 = vpack.c.b16 %v1204_v20, %v1203_v34  ;;  %v1124_v34 = vrot.slane %v3043_v26, 5  ;;  %v1122_v22 = vsel %vm3287_vm6, %v2604_v6, %v1121_v24  ;;  %v1211_v24 = vunpack.c.l.b16 %v1129_v4 }
  0x80   : > { %v1209_v17 = vunpack.c.l.b16 %v1122_v22  ;;  %v1212_v6 = vunpack.c.l.b16 %v1132_v63 }
  0x81   : > { %v1125_v61 = vsel %vm3287_vm6, %v1123_v51, %v1124_v34  ;;  %v1135_v34 = vrot.slane %v3198_v38, 5 }
  0x82   : > { %2620 = vmatmul.msk.bf16.gmra.mxu2 %vm704_vm3, %v3315_v48  ;;  %v1210_v29 = vunpack.c.l.b16 %v1125_v61  ;;  %v3458_v51 = vpack.c.b16 %v1212_v6, %v1211_v24 }
  0x83   : > { %v1137_v30 = vrot.slane %v1135_v34, 4 }
  0x84   : > { %v3424_v59 = vpack.c.b16 %v1210_v29, %v1209_v17  ;;  %4189 = vst [vmem:[#allocation28_spill] sm:$0xff] %v3458_v51  ;;  %v3468_v17 = vld [vmem:[%s2971_s30 + $0x54] sm:$0xff]  ;;  %v2606_v29 = vrot.slane %v3191_v25, 9 }
  0x85   : > { %4190 = vst [vmem:[#allocation29_spill] sm:$0xff] %v3468_v17  ;;  %v1139_v4 = vsel %vm3287_vm6, %v1137_v30, %v1138_v62 }
  0x86   : > { %v1136_v38 = vsel %vm3287_vm6, %v2606_v29, %v1135_v34  ;;  %v1214_v24 = vunpack.c.l.b16 %v1139_v4  ;;  %v2830_v29 = vld [vmem:[%s2971_s30 + $0x64] sm:$0xf] }
  0x87   : > { %2644 = vmatmul.msk.bf16.gmra.mxu3 %vm704_vm3, %v3330_v21  ;;  %v1213_v63 = vunpack.c.l.b16 %v1136_v38  ;;  %v1145_v38 = vrot.slane %v2990_v16, 5  ;;  %v3503_v4 = vld [vmem:[%s2971_s30 + $0x60] sm:$0xff] }
  0x88   : > { %4194 = vst [vmem:[#allocation33_spill] sm:$0xff] %v3503_v4 }
  0x89   : > { %v3490_v6 = vpack.c.b16 %v1214_v24, %v1213_v63 }
  0x8b   : > { %4192 = vst [vmem:[#allocation31_spill] sm:$0xff] %v3490_v6 }
  0x8c   : > { %2664 = vmatmul.msk.bf16.gmra.mxu0 %vm704_vm3, %v3237_v50 }
  0x8d   : > { %2585 = vmatmul.msk.bf16.gmra.mxu1 %vm704_vm3, %v3330_v21 }
  0x92   : > { %2621 = vmatmul.msk.bf16.gmra.mxu2 %vm704_vm3, %v3344_v47 }
  0x97   : > { %2645 = vmatmul.msk.bf16.gmra.mxu3 %vm704_vm3, %v3350_v57 }
  0x9c   : > { %2665 = vmatmul.msk.bf16.gmra.mxu0 %vm704_vm3, %v3313_v43 }
  0x9d   : > { %2586 = vmatmul.msk.bf16.gmra.mxu1 %vm704_vm3, %v3350_v57 }
  0xa2   : > { %v3367_v42 = vpop.f32.mrf.mxu1  ;;  %2622 = vmatmul.msk.bf16.gmra.mxu2 %vm704_vm3, %v3364_v7 }
  0xa7   : > { %2646 = vmatmul.msk.bf16.gmra.mxu3 %vm704_vm3, %v3372_v14 }
  0xaa   : > { %v3382_v23 = vpop.f32.mrf.mxu1 }
  0xab   : > { %v3384_v58 = vpop.f32.mrf.mxu2 }
  0xac   : > { %2666 = vmatmul.msk.bf16.gmra.mxu0 %vm704_vm3, %v3009_v56 }
  0xad   : > { %2587 = vmatmul.msk.bf16.gmra.mxu1 %vm704_vm3, %v3372_v14 }
  0xaf   : > { %v3390_v1 = vpop.f32.mrf.mxu0 }
  0xb0   : > { %v3394_v5 = vpop.f32.mrf.mxu3 }
  0xb1   : > { %4185 = vst [vmem:[#allocation24_spill] sm:$0xff] %v3394_v5 }
  0xb2   : > { %2623 = vmatmul.msk.bf16.gmra.mxu2 %vm704_vm3, %v3392_v3 }
  0xb3   : > { %v3406_v20 = vpop.f32.mrf.mxu2 }
  0xb4   : > { %v3402_v0 = vpop.f32.mrf.mxu1 }
  0xb7   : > { %2647 = vmatmul.msk.bf16.gmra.mxu3 %vm704_vm3, %v3400_v11  ;;  %v3414_v35 = vpop.f32.mrf.mxu0 }
  0xb8   : > { %v3416_v55 = vpop.f32.mrf.mxu3 }
  0xb9   : > { %4186 = vst [vmem:[#allocation25_spill] sm:$0xff] %v3416_v55 }
  0xbc   : > { %2667 = vmatmul.msk.bf16.gmra.mxu0 %vm704_vm3, %v3083_v31  ;;  %v3422_v26 = vpop.f32.mrf.mxu1 }
  0xbd   : > { %2588 = vmatmul.msk.bf16.gmra.mxu1 %vm704_vm3, %v3400_v11 }
  0xbf   : > { %v3426_v13 = vpop.f32.mrf.mxu2 }
  0xc2   : > { %2624 = vmatmul.msk.bf16.gmra.mxu2 %vm704_vm3, %v3424_v59 }
  0xc3   : > { %v3429_v37 = vpop.f32.mrf.mxu0 }
  0xc4   : > { %v3436_v19 = vpop.f32.mrf.mxu3 }
  0xc5   : > { %4187 = vst [vmem:[#allocation26_spill] sm:$0xff] %v3436_v19 }
  0xc7   : > { %2648 = vmatmul.msk.bf16.gmra.mxu3 %vm704_vm3, %v3434_v49  ;;  %v3442_v2 = vpop.f32.mrf.mxu1  ;;  %v3448_v40 = vpop.f32.mrf.mxu2 }
  0xcb   : > { %v3450_v52 = vpop.f32.mrf.mxu0 }
  0xcc   : > { %2668 = vmatmul.msk.bf16.gmra.mxu0 %vm704_vm3, %v3171_v44  ;;  %v3454_v8 = vpop.f32.mrf.mxu3 }
  0xcd   : > { %4188 = vst [vmem:[#allocation27_spill] sm:$0xff] %v3454_v8  ;;  %2589 = vmatmul.msk.bf16.gmra.mxu1 %vm704_vm3, %v3434_v49  ;;  %v2831_v8 = vld [vmem:[%s2971_s30 + $0x60] sm:$0xf] }
  0xcf   : > { %v3461_v22 = vpop.f32.mrf.mxu1 }
  0xd2   : > { %2625 = vmatmul.msk.bf16.gmra.mxu2 %vm704_vm3, %v3458_v51  ;;  %v3465_v61 = vpop.f32.mrf.mxu2 }
  0xd5   : > { %v3472_v10 = vpop.f32.mrf.mxu0 }
  0xd6   : > { %v3474_v28 = vpop.f32.mrf.mxu3 }
  0xd7   : > { %4191 = vst [vmem:[#allocation30_spill] sm:$0xff] %v3474_v28  ;;  %2649 = vmatmul.msk.bf16.gmra.mxu3 %vm704_vm3, %v3468_v17  ;;  %v1142_v28 = vrot.slane %v2830_v29, 5 }
  0xd9   : > { %v1144_v19 = vrot.slane %v1142_v28, 4 }
  0xda   : > { %v3482_v25 = vpop.f32.mrf.mxu1  ;;  %v3484_v39 = vpop.f32.mrf.mxu2 }
  0xdb   : > { %v1146_v29 = vsel %vm3287_vm6, %v1144_v19, %v1145_v38  ;;  %v1149_v19 = vrot.slane %v3056_v41, 5 }
  0xdc   : > { %2669 = vmatmul.msk.bf16.gmra.mxu0 %vm704_vm3, %v3262_v9  ;;  %v2607_v9 = vrot.slane %v2831_v8, 9  ;;  %v1216_v8 = vunpack.c.l.b16 %v1146_v29 }
  0xdd   : > { %2590 = vmatmul.msk.bf16.gmra.mxu1 %vm704_vm3, %v3468_v17  ;;  %v3492_v34 = vpop.f32.mrf.mxu0 }
  0xde   : > { %v3495_v30 = vpop.f32.mrf.mxu3  ;;  %v1143_v24 = vsel %vm3287_vm6, %v2607_v9, %v1142_v28 }
  0xdf   : > { %4193 = vst [vmem:[#allocation32_spill] sm:$0xff] %v3495_v30  ;;  %v1215_v17 = vunpack.c.l.b16 %v1143_v24  ;;  %v3536_v24 = vld [vmem:[%s2971_s30 + $0x6c] sm:$0xff] }
  0xe1   : > { %v3525_v9 = vpack.c.b16 %v1216_v8, %v1215_v17  ;;  %v1151_v17 = vrot.slane %v1149_v19, 4 }
  0xe2   : > { %2626 = vmatmul.msk.bf16.gmra.mxu2 %vm704_vm3, %v3490_v6  ;;  %v3499_v62 = vpop.f32.mrf.mxu1 }
  0xe3   : > { %4196 = vst [vmem:[#allocation35_spill] sm:$0xff] %v3525_v9 }
  0xe5   : > { %v3506_v63 = vpop.f32.mrf.mxu2 }
  0xe7   : > { %2650 = vmatmul.msk.bf16.gmra.mxu3 %vm704_vm3, %v3503_v4 }
  0xe9   : > { %v3514_v30 = vpop.f32.mrf.mxu0 }
  0xea   : > { %v3516_v16 = vpop.f32.mrf.mxu3  ;;  %v985_v6 = vpop.f32.mrf.mxu1 }
  0xeb   : > { %4195 = vst [vmem:[#allocation34_spill] sm:$0xff] %v3516_v16  ;;  %v986_v55 = vadd.f32 %v985_v6, %v3390_v1  ;;  %v1152_v6 = vrot.slane %v3063_v45, 5  ;;  %v2608_v16 = vrot.slane %v3048_v32, 9 }
  0xec   : > { %2670 = vmatmul.msk.bf16.gmra.mxu0 %vm704_vm3, %v3027_v12 }
  0xed   : > { %v3521_v51 = vpop.f32.mrf.mxu2  ;;  %2591 = vmatmul.msk.bf16.gmra.mxu1 %vm704_vm3, %v3503_v4  ;;  %v1150_v41 = vsel %vm3287_vm6, %v2608_v16, %v1149_v19 }
  0xee   : > { %v1217_v44 = vunpack.c.l.b16 %v1150_v41 }
  0xf1   : > { %v3528_v28 = vpop.f32.mrf.mxu0 }
  0xf2   : > { %v3530_v38 = vpop.f32.mrf.mxu3  ;;  %2627 = vmatmul.msk.bf16.gmra.mxu2 %vm704_vm3, %v3525_v9  ;;  %v987_v1 = vpop.f32.mrf.mxu1 }
  0xf3   : > { %4197 = vst [vmem:[#allocation36_spill] sm:$0xff] %v3530_v38  ;;  %v988_v29 = vadd.f32 %v987_v1, %v3414_v35  ;;  %v1153_v38 = vsel %vm3287_vm6, %v1151_v17, %v1152_v6  ;;  %v1156_v6 = vrot.slane %v3130_v36, 5 }
  0xf4   : > { %v1218_v5 = vunpack.c.l.b16 %v1153_v38  ;;  %v1159_v38 = vrot.slane %v3136_v46, 5 }
  0xf5   : > { %v1310_v8 = vpop.f32.mrf.mxu2 }
  0xf6   : > { %v1390_v12 = vadd.f32 %v1310_v8, %v986_v55  ;;  %v3553_v1 = vpack.c.b16 %v1218_v5, %v1217_v44  ;;  %v3560_v8 = vld [vmem:[%s2971_s30 + $0x78] sm:$0xff] }
  0xf7   : > { %2651 = vmatmul.msk.bf16.gmra.mxu3 %vm704_vm3, %v3536_v24 }
  0xf9   : > { %v1608_v9 = vpop.f32.mrf.mxu0 }
  0xfa   : > { %v1448_v45 = vpop.f32.mrf.mxu3  ;;  %v990_v4 = vpop.f32.mrf.mxu1 }
  0xfb   : > { %v1528_v35 = vadd.f32 %v1448_v45, %v1390_v12  ;;  %v991_v32 = vadd.f32 %v990_v4, %v3429_v37 }
  0xfc   : > { %2671 = vmatmul.msk.bf16.gmra.mxu0 %vm704_vm3, %v3105_v60 }
  0xfd   : > { %v1312_v55 = vpop.f32.mrf.mxu2  ;;  %2592 = vmatmul.msk.bf16.gmra.mxu1 %vm704_vm3, %v3536_v24  ;;  %v3551_v16 = vadd.f32 %v1608_v9, %v1528_v35  ;;  %v2609_v9 = vrot.slane %v3122_v15, 9 }
  0xfe   : > { %v1391_v19 = vadd.f32 %v1312_v55, %v988_v29  ;;  %v1158_v29 = vrot.slane %v1156_v6, 4 }
  0xff   : > { %v1157_v46 = vsel %vm3287_vm6, %v2609_v9, %v1156_v6 }
 0x100   : > { %v1160_v45 = vsel %vm3287_vm6, %v1158_v29, %v1159_v38 }
 0x101   : > { %v1610_v17 = vpop.f32.mrf.mxu0 }
 0x102   : > { %v1450_v12 = vpop.f32.mrf.mxu3  ;;  %2628 = vmatmul.msk.bf16.gmra.mxu2 %vm704_vm3, %v3553_v1  ;;  %v992_v37 = vpop.f32.mrf.mxu1 }
 0x103   : > { %v1529_v4 = vadd.f32 %v1450_v12, %v1391_v19  ;;  %v993_v41 = vadd.f32 %v992_v37, %v3450_v52  ;;  %v1219_v52 = vunpack.c.l.b16 %v1157_v46  ;;  %v1220_v12 = vunpack.c.l.b16 %v1160_v45 }
 0x105   : > { %v1315_v44 = vpop.f32.mrf.mxu2  ;;  %v3564_v5 = vadd.f32 %v1610_v17, %v1529_v4  ;;  %v3579_v38 = vpack.c.b16 %v1220_v12, %v1219_v52  ;;  %v4199_v4 = vld [vmem:[#allocation17_spill] sm:$0xff] }
 0x106   : > { %v1392_v36 = vadd.f32 %v1315_v44, %v991_v32  ;;  %v1163_v9 = vrot.slane %v4199_v4, 5  ;;  %v4200_v44 = vld [vmem:[#allocation18_spill] sm:$0xff] }
 0x107   : > { %2652 = vmatmul.msk.bf16.gmra.mxu3 %vm704_vm3, %v3560_v8  ;;  %v1166_v46 = vrot.slane %v4200_v44, 5 }
 0x109   : > { %v1613_v35 = vpop.f32.mrf.mxu0 }
 0x10a   : > { %v1453_v55 = vpop.f32.mrf.mxu3  ;;  %v995_v19 = vpop.f32.mrf.mxu1 }
 0x10b   : > { %v1530_v15 = vadd.f32 %v1453_v55, %v1392_v36  ;;  %v996_v17 = vadd.f32 %v995_v19, %v3472_v10  ;;  %v3586_v55 = vld [vmem:[%s2971_s30 + $0x84] sm:$0xff] }
 0x10c   : > { %2672 = vmatmul.msk.bf16.gmra.mxu0 %vm704_vm3, %v3193_v18 }
 0x10d   : > { %v1317_v32 = vpop.f32.mrf.mxu2  ;;  %2593 = vmatmul.msk.bf16.gmra.mxu1 %vm704_vm3, %v3560_v8  ;;  %v3577_v6 = vadd.f32 %v1613_v35, %v1530_v15  ;;  %v4201_v35 = vld [vmem:[#allocation15_spill] sm:$0xff] }
 0x10e   : > { %v1393_v37 = vadd.f32 %v1317_v32, %v993_v41  ;;  %v2610_v15 = vrot.slane %v4201_v35, 9  ;;  %v1165_v41 = vrot.slane %v1163_v9, 4 }
 0x10f   : > { %4198 = vst [vmem:[#allocation37_spill] sm:$0xff] %v3577_v6 }
 0x110   : > { %v1164_v4 = vsel %vm3287_vm6, %v2610_v15, %v1163_v9  ;;  %v2832_v15 = vld [vmem:[%s2971_s30 + $0x94] sm:$0xf] }
 0x111   : > { %v1615_v29 = vpop.f32.mrf.mxu0 }
 0x112   : > { %v1455_v36 = vpop.f32.mrf.mxu3  ;;  %2629 = vmatmul.msk.bf16.gmra.mxu2 %vm704_vm3, %v3579_v38  ;;  %v997_v10 = vpop.f32.mrf.mxu1 }
 0x113   : > { %v1531_v45 = vadd.f32 %v1455_v36, %v1393_v37  ;;  %v998_v19 = vadd.f32 %v997_v10, %v3492_v34  ;;  %v1167_v37 = vsel %vm3287_vm6, %v1165_v41, %v1166_v46  ;;  %v1221_v10 = vunpack.c.l.b16 %v1164_v4 }
 0x114   : > { %v1222_v35 = vunpack.c.l.b16 %v1167_v37  ;;  %v1170_v41 = vrot.slane %v2832_v15, 5 }
 0x115   : > { %v1320_v52 = vpop.f32.mrf.mxu2  ;;  %v3590_v12 = vadd.f32 %v1615_v29, %v1531_v45 }
 0x116   : > { %v1394_v32 = vadd.f32 %v1320_v52, %v996_v17  ;;  %v3605_v45 = vpack.c.b16 %v1222_v35, %v1221_v10 }
 0x117   : > { %4202 = vst [vmem:[#allocation17_spill] sm:$0xff] %v3590_v12  ;;  %2653 = vmatmul.msk.bf16.gmra.mxu3 %vm704_vm3, %v3586_v55 }
 0x118   : > { %4204 = vst [vmem:[#allocation15_spill] sm:$0xff] %v3605_v45 }
 0x119   : > { %v1618_v44 = vpop.f32.mrf.mxu0 }
 0x11a   : > { %v1458_v34 = vpop.f32.mrf.mxu3  ;;  %v1000_v36 = vpop.f32.mrf.mxu1 }
 0x11b   : > { %v1532_v6 = vadd.f32 %v1458_v34, %v1394_v32  ;;  %v1001_v29 = vadd.f32 %v1000_v36, %v3514_v30  ;;  %v2833_v32 = vld [vmem:[%s2971_s30 + $0x98] sm:$0x1]  ;;  %v3612_v36 = vld [vmem:[%s2971_s30 + $0x90] sm:$0xff] }
 0x11c   : > { %2673 = vmatmul.msk.bf16.gmra.mxu0 %vm704_vm3, %v3279_v53  ;;  %v1173_v4 = vrot.slane %v2833_v32, 5  ;;  %4205 = vst [vmem:[#allocation38_spill] sm:$0xff] %v3612_v36 }
 0x11d   : > { %v1322_v17 = vpop.f32.mrf.mxu2  ;;  %2594 = vmatmul.msk.bf16.gmra.mxu1 %vm704_vm3, %v3586_v55  ;;  %v3603_v9 = vadd.f32 %v1618_v44, %v1532_v6  ;;  %v2834_v6 = vld [vmem:[%s2971_s30 + $0x90] sm:$0xf] }
 0x11e   : > { %v1395_v46 = vadd.f32 %v1322_v17, %v998_v19  ;;  %v2611_v44 = vrot.slane %v2834_v6, 9  ;;  %v1172_v19 = vrot.slane %v1170_v41, 4 }
 0x11f   : > { %4203 = vst [vmem:[#allocation18_spill] sm:$0xff] %v3603_v9 }
 0x120   : > { %v1171_v15 = vsel %vm3287_vm6, %v2611_v44, %v1170_v41  ;;  %v2835_v44 = vld [vmem:[%s2971_s30 + $0xa0] sm:$0xf] }
 0x121   : > { %v1620_v52 = vpop.f32.mrf.mxu0 }
 0x122   : > { %v1460_v30 = vpop.f32.mrf.mxu3  ;;  %2630 = vmatmul.msk.bf16.gmra.mxu2 %vm704_vm3, %v3605_v45  ;;  %v1002_v37 = vpop.f32.mrf.mxu1  ;;  %v2837_v45 = vld [vmem:[%s2971_s30 + $0x9c] sm:$0xf] }
 0x123   : > { %v1533_v34 = vadd.f32 %v1460_v30, %v1395_v46  ;;  %v1003_v12 = vadd.f32 %v1002_v37, %v3528_v28  ;;  %v1174_v46 = vsel %vm3287_vm6, %v1172_v19, %v1173_v4  ;;  %v1223_v37 = vunpack.c.l.b16 %v1171_v15 }
 0x124   : > { %v1224_v6 = vunpack.c.l.b16 %v1174_v46  ;;  %v1177_v19 = vrot.slane %v2835_v44, 5  ;;  %v2836_v46 = vld [vmem:[%s2971_s30 + $0xa4] sm:$0x1] }
 0x125   : > { %v1325_v10 = vpop.f32.mrf.mxu2  ;;  %v3616_v35 = vadd.f32 %v1620_v52, %v1533_v34  ;;  %v4207_v52 = vld [vmem:[#allocation9_spill] sm:$0xff] }
 0x126   : > { %v1396_v17 = vadd.f32 %v1325_v10, %v1001_v29  ;;  %v3630_v4 = vpack.c.b16 %v1224_v6, %v1223_v37 }
 0x127   : > { %4206 = vst [vmem:[#allocation39_spill] sm:$0xff] %v3616_v35  ;;  %2654 = vmatmul.msk.bf16.gmra.mxu3 %vm704_vm3, %v3612_v36 }
 0x128   : > { %4209 = vst [vmem:[#allocation41_spill] sm:$0xff] %v3630_v4 }
 0x129   : > { %v1623_v32 = vpop.f32.mrf.mxu0 }
 0x12a   : > { %v1463_v30 = vpop.f32.mrf.mxu3  ;;  %v1005_v28 = vpop.f32.mrf.mxu1 }
 0x12b   : > { %v1534_v9 = vadd.f32 %v1463_v30, %v1396_v17  ;;  %v1180_v30 = vrot.slane %v2836_v46, 5 }
 0x12c   : > { %2674 = vmatmul.msk.bf16.gmra.mxu0 %vm704_vm3, %v4207_v52  ;;  %v3637_v52 = vld [vmem:[%s2971_s30 + $0x9c] sm:$0xff] }
 0x12d   : > { %v1327_v29 = vpop.f32.mrf.mxu2  ;;  %2595 = vmatmul.msk.bf16.gmra.mxu1 %vm704_vm3, %v3612_v36  ;;  %v3628_v41 = vadd.f32 %v1623_v32, %v1534_v9  ;;  %4210 = vst [vmem:[#allocation42_spill] sm:$0xff] %v3637_v52  ;;  %v2612_v36 = vrot.slane %v2837_v45, 9  ;;  %v1179_v9 = vrot.slane %v1177_v19, 4 }
 0x12e   : > { %v1397_v34 = vadd.f32 %v1327_v29, %v1003_v12  ;;  %v1006_v12 = vadd.f32 %v1005_v28, %v3367_v42  ;;  %v4212_v28 = vld [vmem:[#allocation10_spill] sm:$0xff] }
 0x12f   : > { %4208 = vst [vmem:[#allocation40_spill] sm:$0xff] %v3628_v41  ;;  %v1178_v29 = vsel %vm3287_vm6, %v2612_v36, %v1177_v19 }
 0x130   : > { %v1225_v45 = vunpack.c.l.b16 %v1178_v29 }
 0x131   : > { %v1625_v10 = vpop.f32.mrf.mxu0 }
 0x132   : > { %v1465_v15 = vpop.f32.mrf.mxu3  ;;  %2631 = vmatmul.msk.bf16.gmra.mxu2 %vm704_vm3, %v3630_v4  ;;  %v1007_v17 = vpop.f32.mrf.mxu1 }
 0x133   : > { %v1535_v35 = vadd.f32 %v1465_v15, %v1397_v34  ;;  %v1181_v34 = vsel %vm3287_vm6, %v1179_v9, %v1180_v30  ;;  %v4215_v9 = vld [vmem:[#allocation12_spill] sm:$0xff] }
 0x134   : > { %v1226_v41 = vunpack.c.l.b16 %v1181_v34  ;;  %v4216_v34 = vld [vmem:[#allocation13_spill] sm:$0xff] }
 0x135   : > { %v1330_v32 = vpop.f32.mrf.mxu2  ;;  %v3641_v37 = vadd.f32 %v1625_v10, %v1535_v35  ;;  %v1008_v35 = vadd.f32 %v1007_v17, %v3382_v23  ;;  %v3663_v17 = vld [vmem:[%s2971_s30 + $0xa8] sm:$0xff] }
 0x136   : > { %v1398_v6 = vadd.f32 %v1330_v32, %v1006_v12  ;;  %v3656_v30 = vpack.c.b16 %v1226_v41, %v1225_v45  ;;  %v1184_v12 = vrot.slane %v4215_v9, 5  ;;  %4217 = vst [vmem:[#allocation12_spill] sm:$0xff] %v3663_v17 }
 0x137   : > { %4211 = vst [vmem:[#allocation43_spill] sm:$0xff] %v3641_v37  ;;  %2655 = vmatmul.msk.bf16.gmra.mxu3 %vm704_vm3, %v3637_v52  ;;  %v4218_v37 = vld [vmem:[#allocation11_spill] sm:$0xff] }
 0x138   : > { %4214 = vst [vmem:[#allocation45_spill] sm:$0xff] %v3656_v30 }
 0x139   : > { %v1628_v44 = vpop.f32.mrf.mxu0 }
 0x13a   : > { %v1468_v15 = vpop.f32.mrf.mxu3  ;;  %v1010_v46 = vpop.f32.mrf.mxu1 }
 0x13b   : > { %v1536_v42 = vadd.f32 %v1468_v15, %v1398_v6  ;;  %v1187_v15 = vrot.slane %v4216_v34, 5 }
 0x13c   : > { %2675 = vmatmul.msk.bf16.gmra.mxu0 %vm704_vm3, %v4212_v28  ;;  %v2613_v28 = vrot.slane %v4218_v37, 9 }
 0x13d   : > { %v1332_v10 = vpop.f32.mrf.mxu2  ;;  %2596 = vmatmul.msk.bf16.gmra.mxu1 %vm704_vm3, %v3637_v52  ;;  %v3654_v36 = vadd.f32 %v1628_v44, %v1536_v42  ;;  %v1186_v44 = vrot.slane %v1184_v12, 4  ;;  %v1011_v42 = vadd.f32 %v1010_v46, %v3402_v0 }
 0x13e   : > { %v1399_v19 = vadd.f32 %v1332_v10, %v1008_v35  ;;  %v1185_v10 = vsel %vm3287_vm6, %v2613_v28, %v1184_v12  ;;  %v3681_v28 = vld [vmem:[%s2971_s30 + $0xc0] sm:$0xf] }
 0x13f   : > { %4213 = vst [vmem:[#allocation44_spill] sm:$0xff] %v3654_v36  ;;  %v1227_v34 = vunpack.c.l.b16 %v1185_v10  ;;  %v4220_v36 = vld [vmem:[#allocation16_spill] sm:$0xff]  ;;  %v1561_v10 = vshrl.u32 %v3681_v28, 16 }
 0x140   : > { %4221 = vst [vmem:[#allocation11_spill] sm:$0xff] %v3681_v28 }
 0x141   : > { %v1630_v32 = vpop.f32.mrf.mxu0 }
 0x142   : > { %v1470_v29 = vpop.f32.mrf.mxu3  ;;  %2632 = vmatmul.msk.bf16.gmra.mxu2 %vm704_vm3, %v3656_v30  ;;  %v1012_v6 = vpop.f32.mrf.mxu1 }
 0x143   : > { %v1537_v23 = vadd.f32 %v1470_v29, %v1399_v19  ;;  %v1188_v19 = vsel %vm3287_vm6, %v1186_v44, %v1187_v15 }
 0x144   : > { %v1228_v0 = vunpack.c.l.b16 %v1188_v19 }
 0x145   : > { %v1335_v41 = vpop.f32.mrf.mxu2  ;;  %v3667_v45 = vadd.f32 %v1630_v32, %v1537_v23  ;;  %v1013_v32 = vadd.f32 %v1012_v6, %v3422_v26  ;;  %v1564_v26 = vshll.u32 %v3681_v28, 16 }
 0x146   : > { %v1400_v35 = vadd.f32 %v1335_v41, %v1011_v42  ;;  %v3685_v44 = vpack.c.b16 %v1228_v0, %v1227_v34  ;;  %v3688_v42 = vld [vmem:[%s2971_s30 + $0xc4] sm:$0xf]  ;;  %v4225_v41 = vld [vmem:[#allocation20_spill] sm:$0xff]  ;;  %v4226_v34 = vld [vmem:[#allocation21_spill] sm:$0xff] }
 0x147   : > { %4219 = vst [vmem:[#allocation13_spill] sm:$0xff] %v3667_v45  ;;  %2656 = vmatmul.msk.bf16.gmra.mxu3 %vm704_vm3, %v3663_v17  ;;  %v1570_v6 = vshll.u32 %v3688_v42, 16  ;;  %v1194_v0 = vrot.slane %v4226_v34, 5  ;;  %v1566_v30 = vrot.slane %v1564_v26, 5 }
 0x148   : > { %4223 = vst [vmem:[#allocation47_spill] sm:$0xff] %v3685_v44 }
 0x149   : > { %v1633_v9 = vpop.f32.mrf.mxu0  ;;  %4224 = vst [vmem:[#allocation48_spill] sm:$0xff] %v3688_v42 }
 0x14a   : > { %v1473_v37 = vpop.f32.mrf.mxu3  ;;  %v1015_v29 = vpop.f32.mrf.mxu1 }
 0x14b   : > { %v1538_v46 = vadd.f32 %v1473_v37, %v1400_v35  ;;  %v1191_v35 = vrot.slane %v4225_v41, 5  ;;  %v1574_v37 = vshrl.u32 %v3688_v42, 16  ;;  %v1016_v28 = vadd.f32 %v1015_v29, %v3442_v2 }
 0x14c   : > { %2676 = vmatmul.msk.bf16.gmra.mxu0 %vm704_vm3, %v4220_v36  ;;  %v1563_v36 = vrot.slane %v1561_v10, 4  ;;  %v1572_v42 = vrot.slane %v1570_v6, 5 }
 0x14d   : > { %v1337_v23 = vpop.f32.mrf.mxu2  ;;  %2597 = vmatmul.msk.bf16.gmra.mxu1 %vm704_vm3, %v3663_v17  ;;  %v3683_v12 = vadd.f32 %v1633_v9, %v1538_v46  ;;  %v1576_v52 = vrot.slane %v1574_v37, 4 }
 0x14e   : > { %v1401_v15 = vadd.f32 %v1337_v23, %v1013_v32  ;;  %v3699_v32 = vld [vmem:[%s2971_s30 + $0xb4] sm:$0xff]  ;;  %v4227_v23 = vld [vmem:[#allocation19_spill] sm:$0xff]  ;;  %v1567_v29 = vor.u32 %v1566_v30, %v1563_v36 }
 0x14f   : > { %4222 = vst [vmem:[#allocation46_spill] sm:$0xff] %v3683_v12  ;;  %v2614_v41 = vrot.slane %v4227_v23, 9  ;;  %v1193_v12 = vrot.slane %v1191_v35, 4  ;;  %v1577_v10 = vor.u32 %v1576_v52, %v1572_v42 }
 0x151   : > { %v1635_v19 = vpop.f32.mrf.mxu0  ;;  %v1578_v36 = vrot.slane %v1577_v10, 4 }
 0x152   : > { %v1475_v45 = vpop.f32.mrf.mxu3  ;;  %2633 = vmatmul.msk.bf16.gmra.mxu2 %vm704_vm3, %v3685_v44  ;;  %v1017_v9 = vpop.f32.mrf.mxu1  ;;  %v3706_v44 = vld [vmem:[%s2971_s30 + $0xc8] sm:$0x1] }
 0x153   : > { %v1539_v46 = vadd.f32 %v1475_v45, %v1401_v15  ;;  %v1192_v45 = vsel %vm3287_vm6, %v2614_v41, %v1191_v35  ;;  %v1195_v15 = vsel %vm3287_vm6, %v1193_v12, %v1194_v0  ;;  %v1580_v26 = vshll.u32 %v3706_v44, 16 }
 0x154   : > { %v1229_v37 = vunpack.c.l.b16 %v1192_v45  ;;  %v1018_v34 = vadd.f32 %v1017_v9, %v3461_v22  ;;  %v1568_v12 = vrot.slane %v1567_v29, 4 }
 0x155   : > { %v1340_v17 = vpop.f32.mrf.mxu2  ;;  %v3703_v4 = vadd.f32 %v1635_v19, %v1539_v46  ;;  %v1582_v52 = vrot.slane %v1580_v26, 5 }
 0x156   : > { %v1402_v53 = vadd.f32 %v1340_v17, %v1016_v28  ;;  %v1230_v17 = vunpack.c.l.b16 %v1195_v15  ;;  %v3731_v15 = vld [vmem:[%s2971_s30 + $0xc0] sm:$0xff] }
 0x157   : > { %2657 = vmatmul.msk.bf16.gmra.mxu3 %vm704_vm3, %v3699_v32  ;;  %v1583_v22 = vsel %vm2997_vm2, %v1578_v36, %v1582_v52 }
 0x158   : > { %v3722_v46 = vpack.c.b16 %v1230_v17, %v1229_v37  ;;  %v1588_v10 = vunpack.c.l.b16 %v1583_v22 }
 0x159   : > { %v1638_v2 = vpop.f32.mrf.mxu0 }
 0x15a   : > { %v1478_v6 = vpop.f32.mrf.mxu3  ;;  %v1020_v19 = vpop.f32.mrf.mxu1 }
 0x15b   : > { %v1540_v28 = vadd.f32 %v1478_v6, %v1402_v53  ;;  %v1573_v53 = vsel %vm2997_vm2, %v1568_v12, %v1572_v42 }
 0x15c   : > { %2677 = vmatmul.msk.bf16.gmra.mxu0 %vm704_vm3, %v3296_v33  ;;  %v1587_v29 = vunpack.c.l.b16 %v1573_v53 }
 0x15d   : > { %v1342_v35 = vpop.f32.mrf.mxu2  ;;  %2598 = vmatmul.msk.bf16.gmra.mxu1 %vm704_vm3, %v3699_v32  ;;  %v3720_v30 = vadd.f32 %v1638_v2, %v1540_v28  ;;  %v1021_v2 = vadd.f32 %v1020_v19, %v3482_v25 }
 0x15e   : > { %v1403_v0 = vadd.f32 %v1342_v35, %v1018_v34  ;;  %v3738_v42 = vpack.c.b16 %v1588_v10, %v1587_v29 }
 0x161   : > { %v1640_v23 = vpop.f32.mrf.mxu0 }
 0x162   : > { %v1480_v9 = vpop.f32.mrf.mxu3  ;;  %2634 = vmatmul.msk.bf16.gmra.mxu2 %vm704_vm3, %v3722_v46  ;;  %v1022_v41 = vpop.f32.mrf.mxu1 }
 0x163   : > { %v1541_v45 = vadd.f32 %v1480_v9, %v1403_v0  ;;  %v1023_v25 = vadd.f32 %v1022_v41, %v3499_v62 }
 0x165   : > { %v1345_v26 = vpop.f32.mrf.mxu2  ;;  %v3734_v6 = vadd.f32 %v1640_v23, %v1541_v45 }
 0x166   : > { %v1404_v37 = vadd.f32 %v1345_v26, %v1021_v2 }
 0x167   : > { %2658 = vmatmul.msk.bf16.gmra.mxu3 %vm704_vm3, %v3731_v15 }
 0x169   : > { %v1643_v17 = vpop.f32.mrf.mxu0 }
 0x16a   : > { %v1483_v28 = vpop.f32.mrf.mxu3  ;;  %v1025_v34 = vpop.f32.mrf.mxu1 }
 0x16b   : > { %v1542_v35 = vadd.f32 %v1483_v28, %v1404_v37  ;;  %v1026_v22 = vadd.f32 %v1025_v34, %v3384_v58 }
 0x16c   : > { %2678 = vmatmul.msk.bf16.gmra.mxu0 %vm704_vm3, %v3738_v42 }
 0x16d   : > { %v1347_v19 = vpop.f32.mrf.mxu2  ;;  %2684 = vmatmul.msk.bf16.vlgmr.msra.gmra.mxu1 %vm704_vm3, %v3315_v48  ;;  %v3745_v12 = vadd.f32 %v1643_v17, %v1542_v35 }
 0x16e   : > { %v1405_v36 = vadd.f32 %v1347_v19, %v1023_v25 }
 0x171   : > { %v1645_v52 = vpop.f32.mrf.mxu0 }
 0x172   : > { %v1485_v0 = vpop.f32.mrf.mxu3  ;;  %2708 = vmatmul.msk.bf16.vlgmr.msra.gmra.mxu2 %vm704_vm3, %v3330_v21  ;;  %v1027_v23 = vpop.f32.mrf.mxu1 }
 0x173   : > { %v1543_v53 = vadd.f32 %v1485_v0, %v1405_v36  ;;  %v1028_v21 = vadd.f32 %v1027_v23, %v3406_v20 }
 0x175   : > { %v1350_v9 = vpop.f32.mrf.mxu2  ;;  %v3750_v45 = vadd.f32 %v1645_v52, %v1543_v53 }
 0x176   : > { %v1406_v62 = vadd.f32 %v1350_v9, %v1026_v22 }
 0x177   : > { %2728 = vmatmul.msk.bf16.vlgmr.msra.gmra.mxu3 %vm704_vm3, %v3237_v50 }
 0x179   : > { %v1648_v48 = vpop.f32.mrf.mxu0 }
 0x17a   : > { %v1488_v41 = vpop.f32.mrf.mxu3  ;;  %v1030_v2 = vpop.f32.mrf.mxu1 }
 0x17b   : > { %v1544_v29 = vadd.f32 %v1488_v41, %v1406_v62  ;;  %v1031_v34 = vadd.f32 %v1030_v2, %v3426_v13 }
 0x17c   : > { %2749 = vmatmul.msk.bf16.vlgmr.msra.gmra.mxu0 %vm704_vm3, %v3344_v47 }
 0x17d   : > { %v1352_v10 = vpop.f32.mrf.mxu2  ;;  %2685 = vmatmul.msk.bf16.gmra.mxu1 %vm704_vm3, %v3344_v47  ;;  %v3759_v58 = vadd.f32 %v1648_v48, %v1544_v29 }
 0x17e   : > { %v1407_v26 = vadd.f32 %v1352_v10, %v1028_v21 }
 0x181   : > { %v1650_v37 = vpop.f32.mrf.mxu0 }
 0x182   : > { %v1490_v17 = vpop.f32.mrf.mxu3  ;;  %2709 = vmatmul.msk.bf16.gmra.mxu2 %vm704_vm3, %v3350_v57  ;;  %v1032_v50 = vpop.f32.mrf.mxu1 }
 0x183   : > { %v1545_v28 = vadd.f32 %v1490_v17, %v1407_v26  ;;  %v1033_v57 = vadd.f32 %v1032_v50, %v3448_v40 }
 0x185   : > { %v1355_v35 = vpop.f32.mrf.mxu2  ;;  %v3764_v25 = vadd.f32 %v1650_v37, %v1545_v28 }
 0x186   : > { %v1408_v20 = vadd.f32 %v1355_v35, %v1031_v34 }
 0x187   : > { %2729 = vmatmul.msk.bf16.gmra.mxu3 %vm704_vm3, %v3313_v43 }
 0x189   : > { %v1653_v47 = vpop.f32.mrf.mxu0 }
 0x18a   : > { %v1493_v19 = vpop.f32.mrf.mxu3  ;;  %v1035_v36 = vpop.f32.mrf.mxu1 }
 0x18b   : > { %v1546_v52 = vadd.f32 %v1493_v19, %v1408_v20  ;;  %v1036_v62 = vadd.f32 %v1035_v36, %v3465_v61 }
 0x18c   : > { %2750 = vmatmul.msk.bf16.gmra.mxu0 %vm704_vm3, %v3364_v7 }
 0x18d   : > { %v1357_v0 = vpop.f32.mrf.mxu2  ;;  %2686 = vmatmul.msk.bf16.gmra.mxu1 %vm704_vm3, %v3364_v7  ;;  %v3773_v13 = vadd.f32 %v1653_v47, %v1546_v52 }
 0x18e   : > { %v1409_v23 = vadd.f32 %v1357_v0, %v1033_v57 }
 0x191   : > { %v1655_v53 = vpop.f32.mrf.mxu0 }
 0x192   : > { %v1495_v22 = vpop.f32.mrf.mxu3  ;;  %2710 = vmatmul.msk.bf16.gmra.mxu2 %vm704_vm3, %v3372_v14  ;;  %v1037_v43 = vpop.f32.mrf.mxu1 }
 0x193   : > { %v1547_v9 = vadd.f32 %v1495_v22, %v1409_v23  ;;  %v1038_v14 = vadd.f32 %v1037_v43, %v3484_v39 }
 0x195   : > { %v1360_v48 = vpop.f32.mrf.mxu2  ;;  %v3778_v41 = vadd.f32 %v1655_v53, %v1547_v9  ;;  %v4228_v53 = vld [vmem:[#allocation24_spill] sm:$0xff] }
 0x196   : > { %v1410_v40 = vadd.f32 %v1360_v48, %v1036_v62  ;;  %v4229_v62 = vld [vmem:[#allocation14_spill] sm:$0xff] }
 0x197   : > { %2730 = vmatmul.msk.bf16.gmra.mxu3 %vm704_vm3, %v3009_v56 }
 0x199   : > { %v1658_v7 = vpop.f32.mrf.mxu0 }
 0x19a   : > { %v1498_v2 = vpop.f32.mrf.mxu3  ;;  %v1040_v29 = vpop.f32.mrf.mxu1 }
 0x19b   : > { %v1548_v21 = vadd.f32 %v1498_v2, %v1410_v40  ;;  %v1041_v28 = vadd.f32 %v1040_v29, %v3506_v63  ;;  %v4230_v2 = vld [vmem:[#allocation28_spill] sm:$0xff]  ;;  %v4231_v29 = vld [vmem:[#allocation25_spill] sm:$0xff] }
 0x19c   : > { %2751 = vmatmul.msk.bf16.gmra.mxu0 %vm704_vm3, %v3392_v3 }
 0x19d   : > { %v1362_v10 = vpop.f32.mrf.mxu2  ;;  %2687 = vmatmul.msk.bf16.gmra.mxu1 %vm704_vm3, %v3392_v3  ;;  %v3787_v61 = vadd.f32 %v1658_v7, %v1548_v21 }
 0x19e   : > { %v1411_v26 = vadd.f32 %v1362_v10, %v1038_v14 }
 0x1a1   : > { %v1660_v37 = vpop.f32.mrf.mxu0 }
 0x1a2   : > { %v1500_v17 = vpop.f32.mrf.mxu3  ;;  %2711 = vmatmul.msk.bf16.gmra.mxu2 %vm704_vm3, %v3400_v11  ;;  %v1042_v56 = vpop.f32.mrf.mxu1 }
 0x1a3   : > { %v1549_v50 = vadd.f32 %v1500_v17, %v1411_v26  ;;  %v1043_v11 = vadd.f32 %v1042_v56, %v3521_v51  ;;  %v4232_v17 = vld [vmem:[#allocation29_spill] sm:$0xff] }
 0x1a5   : > { %v1365_v34 = vpop.f32.mrf.mxu2  ;;  %v3792_v35 = vadd.f32 %v1660_v37, %v1549_v50 }
 0x1a6   : > { %v1412_v39 = vadd.f32 %v1365_v34, %v1041_v28  ;;  %v4233_v28 = vld [vmem:[#allocation26_spill] sm:$0xff] }
 0x1a7   : > { %2731 = vmatmul.msk.bf16.gmra.mxu3 %vm704_vm3, %v3083_v31 }
 0x1a9   : > { %v1663_v3 = vpop.f32.mrf.mxu0 }
 0x1aa   : > { %v1503_v20 = vpop.f32.mrf.mxu3  ;;  %v1045_v47 = vpop.f32.mrf.mxu1 }
 0x1ab   : > { %v1550_v19 = vadd.f32 %v1503_v20, %v1412_v39  ;;  %v1046_v22 = vadd.f32 %v1045_v47, %v4228_v53  ;;  %v4234_v47 = vld [vmem:[#allocation22_spill] sm:$0xff] }
 0x1ac   : > { %2752 = vmatmul.msk.bf16.gmra.mxu0 %vm704_vm3, %v3424_v59 }
 0x1ad   : > { %v1367_v36 = vpop.f32.mrf.mxu2  ;;  %2688 = vmatmul.msk.bf16.gmra.mxu1 %vm704_vm3, %v3424_v59  ;;  %v3801_v63 = vadd.f32 %v1663_v3, %v1550_v19 }
 0x1ae   : > { %v1413_v52 = vadd.f32 %v1367_v36, %v1043_v11 }
 0x1b1   : > { %v1665_v57 = vpop.f32.mrf.mxu0 }
 0x1b2   : > { %v1505_v0 = vpop.f32.mrf.mxu3  ;;  %2712 = vmatmul.msk.bf16.gmra.mxu2 %vm704_vm3, %v3434_v49  ;;  %v1047_v31 = vpop.f32.mrf.mxu1 }
 0x1b3   : > { %v1551_v23 = vadd.f32 %v1505_v0, %v1413_v52  ;;  %v1048_v49 = vadd.f32 %v1047_v31, %v4231_v29  ;;  %v4236_v0 = vld [vmem:[#allocation27_spill] sm:$0xff] }
 0x1b5   : > { %v1370_v43 = vpop.f32.mrf.mxu2  ;;  %v3806_v9 = vadd.f32 %v1665_v57, %v1551_v23  ;;  %v4235_v57 = vld [vmem:[#allocation31_spill] sm:$0xff] }
 0x1b6   : > { %v1414_v51 = vadd.f32 %v1370_v43, %v1046_v22 }
 0x1b7   : > { %2732 = vmatmul.msk.bf16.gmra.mxu3 %vm704_vm3, %v4229_v62  ;;  %v4237_v62 = vld [vmem:[#allocation33_spill] sm:$0xff] }
 0x1b9   : > { %v1668_v59 = vpop.f32.mrf.mxu0 }
 0x1ba   : > { %v1508_v48 = vpop.f32.mrf.mxu3  ;;  %v1050_v40 = vpop.f32.mrf.mxu1 }
 0x1bb   : > { %v1552_v7 = vadd.f32 %v1508_v48, %v1414_v51  ;;  %v1051_v34 = vadd.f32 %v1050_v40, %v4233_v28  ;;  %v4238_v40 = vld [vmem:[#allocation30_spill] sm:$0xff] }
 0x1bc   : > { %2753 = vmatmul.msk.bf16.gmra.mxu0 %vm704_vm3, %v4230_v2 }
 0x1bd   : > { %v1372_v21 = vpop.f32.mrf.mxu2  ;;  %2689 = vmatmul.msk.bf16.gmra.mxu1 %vm704_vm3, %v4230_v2  ;;  %v3815_v14 = vadd.f32 %v1668_v59, %v1552_v7 }
 0x1be   : > { %v1415_v10 = vadd.f32 %v1372_v21, %v1048_v49  ;;  %v4239_v21 = vld [vmem:[#allocation8_spill] sm:$0xff] }
 0x1c1   : > { %v1670_v26 = vpop.f32.mrf.mxu0 }
 0x1c2   : > { %v1510_v37 = vpop.f32.mrf.mxu3  ;;  %2713 = vmatmul.msk.bf16.gmra.mxu2 %vm704_vm3, %v4232_v17  ;;  %v1052_v56 = vpop.f32.mrf.mxu1 }
 0x1c3   : > { %v1553_v50 = vadd.f32 %v1510_v37, %v1415_v10  ;;  %v1053_v31 = vadd.f32 %v1052_v56, %v4236_v0  ;;  %v4240_v56 = vld [vmem:[#allocation35_spill] sm:$0xff] }
 0x1c5   : > { %v1375_v39 = vpop.f32.mrf.mxu2  ;;  %v3820_v3 = vadd.f32 %v1670_v26, %v1553_v50  ;;  %v4241_v50 = vld [vmem:[#allocation32_spill] sm:$0xff] }
 0x1c6   : > { %v1416_v20 = vadd.f32 %v1375_v39, %v1051_v34 }
 0x1c7   : > { %2733 = vmatmul.msk.bf16.gmra.mxu3 %vm704_vm3, %v4234_v47 }
 0x1c9   : > { %v1673_v19 = vpop.f32.mrf.mxu0 }
 0x1ca   : > { %v1513_v11 = vpop.f32.mrf.mxu3  ;;  %v1055_v36 = vpop.f32.mrf.mxu1 }
 0x1cb   : > { %v1554_v52 = vadd.f32 %v1513_v11, %v1416_v20  ;;  %v1056_v7 = vadd.f32 %v1055_v36, %v4238_v40 }
 0x1cc   : > { %2754 = vmatmul.msk.bf16.gmra.mxu0 %vm704_vm3, %v4235_v57 }
 0x1cd   : > { %v1377_v23 = vpop.f32.mrf.mxu2  ;;  %2690 = vmatmul.msk.bf16.gmra.mxu1 %vm704_vm3, %v4235_v57  ;;  %v3829_v53 = vadd.f32 %v1673_v19, %v1554_v52  ;;  %v4242_v52 = vld [vmem:[#allocation34_spill] sm:$0xff] }
 0x1ce   : > { %v1417_v22 = vadd.f32 %v1377_v23, %v1053_v31 }
 0x1d1   : > { %v1675_v43 = vpop.f32.mrf.mxu0 }
 0x1d2   : > { %v1515_v51 = vpop.f32.mrf.mxu3  ;;  %2714 = vmatmul.msk.bf16.gmra.mxu2 %vm704_vm3, %v4237_v62  ;;  %v1057_v59 = vpop.f32.mrf.mxu1 }
 0x1d3   : > { %v1555_v48 = vadd.f32 %v1515_v51, %v1417_v22  ;;  %v1058_v28 = vadd.f32 %v1057_v59, %v4241_v50  ;;  %v4243_v59 = vld [vmem:[#allocation36_spill] sm:$0xff] }
 0x1d5   : > { %v1380_v2 = vpop.f32.mrf.mxu2  ;;  %v3834_v29 = vadd.f32 %v1675_v43, %v1555_v48 }
 0x1d6   : > { %v1418_v49 = vadd.f32 %v1380_v2, %v1056_v7 }
 0x1d7   : > { %2734 = vmatmul.msk.bf16.gmra.mxu3 %vm704_vm3, %v4239_v21 }
 0x1d9   : > { %v1678_v10 = vpop.f32.mrf.mxu0 }
 0x1da   : > { %v1518_v26 = vpop.f32.mrf.mxu3  ;;  %v1060_v37 = vpop.f32.mrf.mxu1 }
 0x1db   : > { %v1556_v17 = vadd.f32 %v1518_v26, %v1418_v49  ;;  %v1061_v57 = vadd.f32 %v1060_v37, %v4242_v52 }
 0x1dc   : > { %2755 = vmatmul.msk.bf16.gmra.mxu0 %vm704_vm3, %v4240_v56 }
 0x1dd   : > { %v1382_v34 = vpop.f32.mrf.mxu2  ;;  %2691 = vmatmul.msk.bf16.gmra.mxu1 %vm704_vm3, %v4240_v56  ;;  %v3843_v39 = vadd.f32 %v1678_v10, %v1556_v17  ;;  %v2306_v17 = vld [vmem:[#allocation4] sm:$0x3] }
 0x1de   : > { %v1419_v20 = vadd.f32 %v1382_v34, %v1058_v28 }
 0x1e1   : > { %v1680_v47 = vpop.f32.mrf.mxu0 }
 0x1e2   : > { %v1520_v19 = vpop.f32.mrf.mxu3  ;;  %2715 = vmatmul.msk.bf16.gmra.mxu2 %vm704_vm3, %v3536_v24  ;;  %v1062_v11 = vpop.f32.mrf.mxu1 }
 0x1e3   : > { %v1557_v36 = vadd.f32 %v1520_v19, %v1419_v20  ;;  %v1063_v24 = vadd.f32 %v1062_v11, %v4243_v59  ;;  %v3866_v20 = vperm.slane %v2306_v17, 0 }
 0x1e5   : > { %v1385_v0 = vpop.f32.mrf.mxu2  ;;  %v3848_v31 = vadd.f32 %v1680_v47, %v1557_v36 }
 0x1e6   : > { %v1420_v23 = vadd.f32 %v1385_v0, %v1061_v57 }
 0x1e7   : > { %2735 = vmatmul.msk.bf16.gmra.mxu3 %vm704_vm3, %v3105_v60 }
 0x1e9   : > { %v1683_v22 = vpop.f32.mrf.mxu0 }
 0x1ea   : > { %v1523_v43 = vpop.f32.mrf.mxu3  ;;  %v1752_v51 = vpop.f32.mrf.mxu1 }
 0x1eb   : > { %v1558_v62 = vadd.f32 %v1523_v43, %v1420_v23  ;;  %v1832_v10 = vadd.f32 %v1752_v51, %v3551_v16  ;;  %v3871_v16 = vperm.slane %v2306_v17, 1  ;;  %v4244_v23 = vld [vmem:[#allocation37_spill] sm:$0xff] }
 0x1ec   : > { %2756 = vmatmul.msk.bf16.gmra.mxu0 %vm704_vm3, %v3553_v1 }
 0x1ed   : > { %v1387_v48 = vpop.f32.mrf.mxu2  ;;  %2692 = vmatmul.msk.bf16.gmra.mxu1 %vm704_vm3, %v3553_v1  ;;  %v3857_v40 = vadd.f32 %v1683_v22, %v1558_v62  ;;  %v4245_v62 = vld [vmem:[#allocation23_spill] sm:$0xff] }
 0x1ee   : > { %v1421_v7 = vadd.f32 %v1387_v48, %v1063_v24 }
 0x1f1   : > { %v1685_v2 = vpop.f32.mrf.mxu0 }
 0x1f2   : > { %v1525_v49 = vpop.f32.mrf.mxu3  ;;  %2716 = vmatmul.msk.bf16.gmra.mxu2 %vm704_vm3, %v3560_v8  ;;  %v1754_v60 = vpop.f32.mrf.mxu1 }
 0x1f3   : > { %v1559_v21 = vadd.f32 %v1525_v49, %v1421_v7  ;;  %v1833_v47 = vadd.f32 %v1754_v60, %v3564_v5  ;;  %v4246_v49 = vld [vmem:[#allocation15_spill] sm:$0xff] }
 0x1f5   : > { %v1890_v26 = vpop.f32.mrf.mxu2  ;;  %v3862_v37 = vadd.f32 %v1685_v2, %v1559_v21  ;;  %v4247_v21 = vld [vmem:[#allocation17_spill] sm:$0xff] }
 0x1f6   : > { %v1970_v1 = vadd.f32 %v1890_v26, %v1832_v10 }
 0x1f7   : > { %2736 = vmatmul.msk.bf16.gmra.mxu3 %vm704_vm3, %v3193_v18 }
 0x1f9   : > { %v2194_v56 = vpop.f32.mrf.mxu0 }
 0x1fa   : > { %v2050_v50 = vpop.f32.mrf.mxu3  ;;  %v1757_v28 = vpop.f32.mrf.mxu1 }
 0x1fb   : > { %v2130_v34 = vadd.f32 %v2050_v50, %v1970_v1  ;;  %v1834_v22 = vadd.f32 %v1757_v28, %v4244_v23 }
 0x1fc   : > { %2757 = vmatmul.msk.bf16.gmra.mxu0 %vm704_vm3, %v3579_v38 }
 0x1fd   : > { %v2274_v8 = vadd.f32 %v2194_v56, %v2130_v34  ;;  %v1892_v19 = vpop.f32.mrf.mxu2  ;;  %2693 = vmatmul.msk.bf16.gmra.mxu1 %vm704_vm3, %v3579_v38  ;;  %v4248_v34 = vld [vmem:[#allocation38_spill] sm:$0xff] }
 0x1fe   : > { %v1971_v11 = vadd.f32 %v1892_v19, %v1833_v47 }
 0x1ff   : > { %v2308_v18 = vmul.f32 %v3866_v20, %v2274_v8 }
 0x201   : > { %v2341_v36 = vadd.f32 %v3871_v16, %v2308_v18  ;;  %v2196_v52 = vpop.f32.mrf.mxu0  ;;  %v4249_v18 = vld [vmem:[#allocation18_spill] sm:$0xff] }
 0x202   : > { %v2052_v57 = vpop.f32.mrf.mxu3  ;;  %2717 = vmatmul.msk.bf16.gmra.mxu2 %vm704_vm3, %v3586_v55  ;;  %v1759_v5 = vpop.f32.mrf.mxu1 }
 0x203   : > { %2374 = vst.msk [vmem:[%s3880_s7] sm:$0xff] %vm2373_vm7, %v2341_v36  ;;  %v2131_v38 = vadd.f32 %v2052_v57, %v1971_v11  ;;  %v1835_v10 = vadd.f32 %v1759_v5, %v4247_v21  ;;  %v4250_v57 = vld [vmem:[#allocation9_spill] sm:$0xff]  ;;  %v4253_v21 = vld [vmem:[#allocation42_spill] sm:$0xff] }
 0x205   : > { %v2275_v0 = vadd.f32 %v2196_v52, %v2131_v38  ;;  %v1895_v43 = vpop.f32.mrf.mxu2 }
 0x206   : > { %v1972_v59 = vadd.f32 %v1895_v43, %v1834_v22 }
 0x207   : > { %v2309_v51 = vmul.f32 %v3866_v20, %v2275_v0  ;;  %2737 = vmatmul.msk.bf16.gmra.mxu3 %vm704_vm3, %v4245_v62 }
 0x209   : > { %v2342_v24 = vadd.f32 %v3871_v16, %v2309_v51  ;;  %v2199_v48 = vpop.f32.mrf.mxu0  ;;  %v4251_v51 = vld [vmem:[#allocation41_spill] sm:$0xff] }
 0x20a   : > { %v2055_v7 = vpop.f32.mrf.mxu3  ;;  %v1762_v55 = vpop.f32.mrf.mxu1 }
 0x20b   : > { %2375 = vst.msk [vmem:[%s3880_s7 + $0x8] sm:$0xff] %vm2373_vm7, %v2342_v24  ;;  %v2132_v2 = vadd.f32 %v2055_v7, %v1972_v59  ;;  %v1836_v11 = vadd.f32 %v1762_v55, %v4249_v18  ;;  %v4252_v59 = vld [vmem:[#allocation39_spill] sm:$0xff] }
 0x20c   : > { %2758 = vmatmul.msk.bf16.gmra.mxu0 %vm704_vm3, %v4246_v49 }
 0x20d   : > { %v2276_v60 = vadd.f32 %v2199_v48, %v2132_v2  ;;  %v1897_v26 = vpop.f32.mrf.mxu2  ;;  %2694 = vmatmul.msk.bf16.gmra.mxu1 %vm704_vm3, %v4246_v49 }
 0x20e   : > { %v1973_v17 = vadd.f32 %v1897_v26, %v1835_v10 }
 0x20f   : > { %v2310_v1 = vmul.f32 %v3866_v20, %v2276_v60 }
 0x211   : > { %v2343_v56 = vadd.f32 %v3871_v16, %v2310_v1  ;;  %v2201_v50 = vpop.f32.mrf.mxu0 }
 0x212   : > { %v2057_v28 = vpop.f32.mrf.mxu3  ;;  %2718 = vmatmul.msk.bf16.gmra.mxu2 %vm704_vm3, %v4248_v34  ;;  %v1764_v8 = vpop.f32.mrf.mxu1  ;;  %v4255_v34 = vld [vmem:[#allocation10_spill] sm:$0xff] }
 0x213   : > { %2376 = vst.msk [vmem:[%s3880_s7 + $0x10] sm:$0xff] %vm2373_vm7, %v2343_v56  ;;  %v2133_v47 = vadd.f32 %v2057_v28, %v1973_v17  ;;  %v1837_v24 = vadd.f32 %v1764_v8, %v4252_v59  ;;  %v4254_v17 = vld [vmem:[#allocation40_spill] sm:$0xff] }
 0x214   : > { %v4258_v59 = vld [vmem:[#allocation12_spill] sm:$0xff] }
 0x215   : > { %v2277_v19 = vadd.f32 %v2201_v50, %v2133_v47  ;;  %v1900_v36 = vpop.f32.mrf.mxu2 }
 0x216   : > { %v1974_v5 = vadd.f32 %v1900_v36, %v1836_v11 }
 0x217   : > { %v2311_v52 = vmul.f32 %v3866_v20, %v2277_v19  ;;  %2738 = vmatmul.msk.bf16.gmra.mxu3 %vm704_vm3, %v4250_v57 }
 0x219   : > { %v2344_v38 = vadd.f32 %v3871_v16, %v2311_v52  ;;  %v2204_v0 = vpop.f32.mrf.mxu0  ;;  %v4256_v52 = vld [vmem:[#allocation45_spill] sm:$0xff] }
 0x21a   : > { %v2060_v23 = vpop.f32.mrf.mxu3  ;;  %v1767_v22 = vpop.f32.mrf.mxu1 }
 0x21b   : > { %2377 = vst.msk [vmem:[%s3880_s7 + $0x18] sm:$0xff] %vm2373_vm7, %v2344_v38  ;;  %v2134_v43 = vadd.f32 %v2060_v23, %v1974_v5  ;;  %v1838_v56 = vadd.f32 %v1767_v22, %v4254_v17  ;;  %v4257_v5 = vld [vmem:[#allocation43_spill] sm:$0xff] }
 0x21c   : > { %2759 = vmatmul.msk.bf16.gmra.mxu0 %vm704_vm3, %v4251_v51 }
 0x21d   : > { %v2278_v62 = vadd.f32 %v2204_v0, %v2134_v43  ;;  %v1902_v48 = vpop.f32.mrf.mxu2  ;;  %2695 = vmatmul.msk.bf16.gmra.mxu1 %vm704_vm3, %v4251_v51 }
 0x21e   : > { %v1975_v55 = vadd.f32 %v1902_v48, %v1837_v24 }
 0x21f   : > { %v2312_v7 = vmul.f32 %v3866_v20, %v2278_v62 }
 0x221   : > { %v2345_v2 = vadd.f32 %v3871_v16, %v2312_v7  ;;  %v2206_v49 = vpop.f32.mrf.mxu0 }
 0x222   : > { %v2062_v60 = vpop.f32.mrf.mxu3  ;;  %2719 = vmatmul.msk.bf16.gmra.mxu2 %vm704_vm3, %v4253_v21  ;;  %v1769_v10 = vpop.f32.mrf.mxu1  ;;  %v4260_v21 = vld [vmem:[#allocation16_spill] sm:$0xff] }
 0x223   : > { %2378 = vst.msk [vmem:[%s3880_s7 + $0x20] sm:$0xff] %vm2373_vm7, %v2345_v2  ;;  %v2135_v26 = vadd.f32 %v2062_v60, %v1975_v55  ;;  %v1839_v38 = vadd.f32 %v1769_v10, %v4257_v5  ;;  %v4259_v55 = vld [vmem:[#allocation44_spill] sm:$0xff] }
 0x225   : > { %v2279_v1 = vadd.f32 %v2206_v49, %v2135_v26  ;;  %v1905_v50 = vpop.f32.mrf.mxu2 }
 0x226   : > { %v1976_v8 = vadd.f32 %v1905_v50, %v1838_v56 }
 0x227   : > { %v2313_v28 = vmul.f32 %v3866_v20, %v2279_v1  ;;  %2739 = vmatmul.msk.bf16.gmra.mxu3 %vm704_vm3, %v4255_v34 }
 0x229   : > { %v2346_v47 = vadd.f32 %v3871_v16, %v2313_v28  ;;  %v2209_v19 = vpop.f32.mrf.mxu0  ;;  %v4261_v28 = vld [vmem:[#allocation47_spill] sm:$0xff] }
 0x22a   : > { %v2065_v18 = vpop.f32.mrf.mxu3  ;;  %v1772_v11 = vpop.f32.mrf.mxu1 }
 0x22b   : > { %2379 = vst.msk [vmem:[%s3880_s7 + $0x28] sm:$0xff] %vm2373_vm7, %v2346_v47  ;;  %v2136_v36 = vadd.f32 %v2065_v18, %v1976_v8  ;;  %v1840_v2 = vadd.f32 %v1772_v11, %v4259_v55  ;;  %v4262_v8 = vld [vmem:[#allocation13_spill] sm:$0xff] }
 0x22c   : > { %2760 = vmatmul.msk.bf16.gmra.mxu0 %vm704_vm3, %v4256_v52  ;;  %v3969_v55 = vld [vmem:[%s2971_s30 + $0xd0] sm:$0xf] }
 0x22d   : > { %v2280_v57 = vadd.f32 %v2209_v19, %v2136_v36  ;;  %v1907_v0 = vpop.f32.mrf.mxu2  ;;  %2696 = vmatmul.msk.bf16.gmra.mxu1 %vm704_vm3, %v4256_v52 }
 0x22e   : > { %v1977_v22 = vadd.f32 %v1907_v0, %v1839_v38 }
 0x22f   : > { %v2314_v23 = vmul.f32 %v3866_v20, %v2280_v57 }
 0x231   : > { %v2347_v43 = vadd.f32 %v3871_v16, %v2314_v23  ;;  %v2211_v51 = vpop.f32.mrf.mxu0  ;;  %v4263_v23 = vld [vmem:[#allocation46_spill] sm:$0xff] }
 0x232   : > { %v2067_v62 = vpop.f32.mrf.mxu3  ;;  %2720 = vmatmul.msk.bf16.gmra.mxu2 %vm704_vm3, %v4258_v59  ;;  %v1774_v24 = vpop.f32.mrf.mxu1 }
 0x233   : > { %2380 = vst.msk [vmem:[%s3880_s7 + $0x30] sm:$0xff] %vm2373_vm7, %v2347_v43  ;;  %v2137_v48 = vadd.f32 %v2067_v62, %v1977_v22  ;;  %v1841_v47 = vadd.f32 %v1774_v24, %v4262_v8  ;;  %v1726_v8 = vrot.slane %v3706_v44, 5 }
 0x235   : > { %v2281_v7 = vadd.f32 %v2211_v51, %v2137_v48  ;;  %v1910_v49 = vpop.f32.mrf.mxu2  ;;  %v4264_v48 = vld [vmem:[#allocation48_spill] sm:$0xff] }
 0x236   : > { %v1978_v10 = vadd.f32 %v1910_v49, %v1840_v2 }
 0x237   : > { %v2315_v60 = vmul.f32 %v3866_v20, %v2281_v7  ;;  %2740 = vmatmul.msk.bf16.gmra.mxu3 %vm704_vm3, %v4260_v21  ;;  %v3966_v7 = vld [vmem:[%s2971_s30 + $0xcc] sm:$0xf]  ;;  %v4265_v21 = vld [vmem:[#allocation11_spill] sm:$0xff] }
 0x239   : > { %v2348_v26 = vadd.f32 %v3871_v16, %v2315_v60  ;;  %v2214_v1 = vpop.f32.mrf.mxu0 }
 0x23a   : > { %v2070_v17 = vpop.f32.mrf.mxu3  ;;  %v1777_v56 = vpop.f32.mrf.mxu1 }
 0x23b   : > { %2381 = vst.msk [vmem:[%s3880_s7 + $0x38] sm:$0xff] %vm2373_vm7, %v2348_v26  ;;  %v2138_v50 = vadd.f32 %v2070_v17, %v1978_v10  ;;  %v1842_v22 = vadd.f32 %v1777_v56, %v4263_v23  ;;  %v2679_v10 = vrot.slane %v4265_v21, 9  ;;  %v2006_v26 = vshll.u32 %v3966_v7, 16 }
 0x23c   : > { %2761 = vmatmul.msk.bf16.gmra.mxu0 %vm704_vm3, %v4261_v28  ;;  %v2016_v17 = vshrl.u32 %v3969_v55, 16 }
 0x23d   : > { %v2282_v34 = vadd.f32 %v2214_v1, %v2138_v50  ;;  %v1912_v19 = vpop.f32.mrf.mxu2  ;;  %2697 = vmatmul.msk.bf16.gmra.mxu1 %vm704_vm3, %v4261_v28  ;;  %v2012_v1 = vshll.u32 %v3969_v55, 16 }
 0x23e   : > { %v1979_v11 = vadd.f32 %v1912_v19, %v1841_v47 }
 0x23f   : > { %v2316_v18 = vmul.f32 %v3866_v20, %v2282_v34 }
 0x241   : > { %v2349_v36 = vadd.f32 %v3871_v16, %v2316_v18  ;;  %v2216_v52 = vpop.f32.mrf.mxu0 }
 0x242   : > { %v2072_v57 = vpop.f32.mrf.mxu3  ;;  %2721 = vmatmul.msk.bf16.gmra.mxu2 %vm704_vm3, %v3699_v32  ;;  %v1779_v5 = vpop.f32.mrf.mxu1  ;;  %v1723_v32 = vrot.slane %v4264_v48, 5 }
 0x243   : > { %2382 = vst.msk [vmem:[%s3880_s7 + $0x40] sm:$0xff] %vm2373_vm7, %v2349_v36  ;;  %v2139_v38 = vadd.f32 %v2072_v57, %v1979_v11  ;;  %v1843_v50 = vadd.f32 %v1779_v5, %v3703_v4  ;;  %v2008_v36 = vrot.slane %v2006_v26, 5  ;;  %v2018_v57 = vrot.slane %v2016_v17, 4 }
 0x244   : > { %v1725_v34 = vrot.slane %v1723_v32, 4  ;;  %v1724_v18 = vsel %vm3287_vm6, %v2679_v10, %v1723_v32  ;;  %v2165_v17 = vrot.slane %v3969_v55, 5 }
 0x245   : > { %v2283_v0 = vadd.f32 %v2216_v52, %v2139_v38  ;;  %v1915_v43 = vpop.f32.mrf.mxu2  ;;  %v2014_v52 = vrot.slane %v2012_v1, 5  ;;  %v257_v38 = vld [vmem:[%s2971_s30 + $0xd4] sm:$0x1] }
 0x246   : > { %v1980_v62 = vadd.f32 %v1915_v43, %v1842_v22  ;;  %v1731_v22 = vunpack.c.l.b16 %v1724_v18  ;;  %v2167_v55 = vrot.slane %v2165_v17, 4  ;;  %v2785_v18 = vld [vmem:[%s2971_s30 + $0xcc] sm:$0xff] }
 0x247   : > { %v2317_v51 = vmul.f32 %v3866_v20, %v2283_v0  ;;  %2741 = vmatmul.msk.bf16.gmra.mxu3 %vm704_vm3, %v3296_v33  ;;  %v2003_v33 = vshrl.u32 %v3966_v7, 16 }
 0x249   : > { %v2350_v59 = vadd.f32 %v3871_v16, %v2317_v51  ;;  %v2219_v24 = vpop.f32.mrf.mxu0  ;;  %v2005_v11 = vrot.slane %v2003_v33, 4 }
 0x24a   : > { %v2075_v2 = vpop.f32.mrf.mxu3  ;;  %v1782_v49 = vpop.f32.mrf.mxu1 }
 0x24b   : > { %2383 = vst.msk [vmem:[%s3880_s7 + $0x48] sm:$0xff] %vm2373_vm7, %v2350_v59  ;;  %v2140_v60 = vadd.f32 %v2075_v2, %v1980_v62  ;;  %v2009_v51 = vor.u32 %v2008_v36, %v2005_v11  ;;  %v2019_v62 = vor.u32 %v2018_v57, %v2014_v52  ;;  %v2022_v59 = vshll.u32 %v257_v38, 16 }
 0x24c   : > { %2762 = vmatmul.msk.bf16.gmra.mxu0 %vm704_vm3, %v3722_v46  ;;  %v1844_v48 = vadd.f32 %v1782_v49, %v3720_v30 }
 0x24d   : > { %v2284_v56 = vadd.f32 %v2219_v24, %v2140_v60  ;;  %v1917_v28 = vpop.f32.mrf.mxu2  ;;  %2698 = vmatmul.msk.bf16.gmra.mxu1 %vm704_vm3, %v3722_v46  ;;  %v1727_v46 = vsel %vm3287_vm6, %v1725_v34, %v1726_v8  ;;  %v2010_v21 = vrot.slane %v2009_v51, 4  ;;  %v2020_v10 = vrot.slane %v2019_v62, 4 }
 0x24e   : > { %v1981_v19 = vadd.f32 %v1917_v28, %v1843_v50  ;;  %v1732_v43 = vunpack.c.l.b16 %v1727_v46  ;;  %v2024_v33 = vrot.slane %v2022_v59, 5  ;;  %v2744_v28 = vrot.slane %v3966_v7, 9 }
 0x24f   : > { %v2318_v47 = vmul.f32 %v3866_v20, %v2284_v56 }
 0x250   : > { %v1733_v60 = vpack.c.b16 %v1732_v43, %v1731_v22  ;;  %v2025_v49 = vsel %vm2997_vm2, %v2020_v10, %v2024_v33  ;;  %v2166_v7 = vsel %vm3287_vm6, %v2744_v28, %v2165_v17 }
 0x251   : > { %v2351_v4 = vadd.f32 %v3871_v16, %v2318_v47  ;;  %v2221_v5 = vpop.f32.mrf.mxu0 }
 0x252   : > { %v2077_v0 = vpop.f32.mrf.mxu3  ;;  %2722 = vmatmul.msk.bf16.gmra.mxu2 %vm704_vm3, %v3731_v15  ;;  %v1784_v44 = vpop.f32.mrf.mxu1 }
 0x253   : > { %2384 = vst.msk [vmem:[%s3880_s7 + $0x50] sm:$0xff] %vm2373_vm7, %v2351_v4  ;;  %v2141_v23 = vadd.f32 %v2077_v0, %v1981_v19  ;;  %v1845_v8 = vadd.f32 %v1784_v44, %v3734_v6  ;;  %v2168_v19 = vrot.slane %v257_v38, 5  ;;  %v2173_v44 = vunpack.c.l.b16 %v2166_v7 }
 0x255   : > { %v2285_v24 = vadd.f32 %v2221_v5, %v2141_v23  ;;  %v1920_v32 = vpop.f32.mrf.mxu2  ;;  %v2169_v6 = vsel %vm3287_vm6, %v2167_v55, %v2168_v19 }
 0x256   : > { %v1982_v15 = vadd.f32 %v1920_v32, %v1844_v48  ;;  %v2174_v23 = vunpack.c.l.b16 %v2169_v6 }
 0x257   : > { %v2319_v2 = vmul.f32 %v3866_v20, %v2285_v24  ;;  %2742 = vmatmul.msk.bf16.gmra.mxu3 %vm704_vm3, %v3738_v42  ;;  %v2015_v42 = vsel %vm2997_vm2, %v2010_v21, %v2014_v52  ;;  %v2030_v52 = vunpack.c.l.b16 %v2025_v49 }
 0x258   : > { %v2029_v57 = vunpack.c.l.b16 %v2015_v42  ;;  %v2175_v59 = vpack.c.b16 %v2174_v23, %v2173_v44 }
 0x259   : > { %v2352_v26 = vadd.f32 %v3871_v16, %v2319_v2  ;;  %v2224_v1 = vpop.f32.mrf.mxu0 }
 0x25a   : > { %v2080_v56 = vpop.f32.mrf.mxu3  ;;  %v1787_v50 = vpop.f32.mrf.mxu1  ;;  %v2031_v0 = vpack.c.b16 %v2030_v52, %v2029_v57 }
 0x25b   : > { %2385 = vst.msk [vmem:[%s3880_s7 + $0x58] sm:$0xff] %vm2373_vm7, %v2352_v26  ;;  %v2142_v30 = vadd.f32 %v2080_v56, %v1982_v15  ;;  %v1846_v43 = vadd.f32 %v1787_v50, %v3745_v12 }
 0x25c   : > { %2763 = vmatmul.msk.bf16.gmra.mxu0 %vm704_vm3, %v1733_v60 }
 0x25d   : > { %v2286_v34 = vadd.f32 %v2224_v1, %v2142_v30  ;;  %v1922_v47 = vpop.f32.mrf.mxu2  ;;  %2699 = vmatmul.msk.bf16.gmra.mxu1 %vm704_vm3, %v1733_v60 }
 0x25e   : > { %v1983_v36 = vadd.f32 %v1922_v47, %v1845_v8 }
 0x25f   : > { %v2320_v11 = vmul.f32 %v3866_v20, %v2286_v34 }
 0x261   : > { %v2353_v27 = vadd.f32 %v3871_v16, %v2320_v11  ;;  %v2226_v4 = vpop.f32.mrf.mxu0 }
 0x262   : > { %v2082_v5 = vpop.f32.mrf.mxu3  ;;  %2723 = vmatmul.msk.bf16.gmra.mxu2 %vm704_vm3, %v2785_v18  ;;  %v1789_v46 = vpop.f32.mrf.mxu1 }
 0x263   : > { %2386 = vst.msk [vmem:[%s3880_s7 + $0x60] sm:$0xff] %vm2373_vm7, %v2353_v27  ;;  %v2143_v38 = vadd.f32 %v2082_v5, %v1983_v36  ;;  %v1847_v12 = vadd.f32 %v1789_v46, %v3750_v45 }
 0x265   : > { %v2287_v22 = vadd.f32 %v2226_v4, %v2143_v38  ;;  %v1925_v51 = vpop.f32.mrf.mxu2 }
 0x266   : > { %v1984_v54 = vadd.f32 %v1925_v51, %v1846_v43 }
 0x267   : > { %v2321_v62 = vmul.f32 %v3866_v20, %v2287_v22  ;;  %2743 = vmatmul.msk.bf16.gmra.mxu3 %vm704_vm3, %v2031_v0 }
 0x269   : > { %v2354_v24 = vadd.f32 %v3871_v16, %v2321_v62  ;;  %v2229_v48 = vpop.f32.mrf.mxu0 }
 0x26a   : > { %v2085_v32 = vpop.f32.mrf.mxu3  ;;  %v1792_v2 = vpop.f32.mrf.mxu1 }
 0x26b   : > { %2387 = vst.msk [vmem:[%s3880_s7 + $0x68] sm:$0xff] %vm2373_vm7, %v2354_v24  ;;  %v2144_v15 = vadd.f32 %v2085_v32, %v1984_v54  ;;  %v1848_v42 = vadd.f32 %v1792_v2, %v3759_v58 }
 0x26c   : > { %2764 = vmatmul.msk.bf16.gmra.mxu0 %vm704_vm3, %v2175_v59 }
 0x26d   : > { %v2288_v60 = vadd.f32 %v2229_v48, %v2144_v15  ;;  %v1927_v21 = vpop.f32.mrf.mxu2 }
 0x26e   : > { %v1985_v33 = vadd.f32 %v1927_v21, %v1847_v12 }
 0x26f   : > { %v2322_v10 = vmul.f32 %v3866_v20, %v2288_v60 }
 0x271   : > { %v2355_v26 = vadd.f32 %v3871_v16, %v2322_v10  ;;  %v2231_v1 = vpop.f32.mrf.mxu0 }
 0x272   : > { %v2087_v17 = vpop.f32.mrf.mxu3  ;;  %v1794_v56 = vpop.f32.mrf.mxu1 }
 0x273   : > { %2388 = vst.msk [vmem:[%s3880_s7 + $0x70] sm:$0xff] %vm2373_vm7, %v2355_v26  ;;  %v2145_v50 = vadd.f32 %v2087_v17, %v1985_v33  ;;  %v1849_v11 = vadd.f32 %v1794_v56, %v3764_v25 }
 0x275   : > { %v2289_v30 = vadd.f32 %v2231_v1, %v2145_v50  ;;  %v1930_v49 = vpop.f32.mrf.mxu2 }
 0x276   : > { %v1986_v45 = vadd.f32 %v1930_v49, %v1848_v42 }
 0x277   : > { %v2323_v28 = vmul.f32 %v3866_v20, %v2289_v30 }
 0x279   : > { %v2356_v34 = vadd.f32 %v3871_v16, %v2323_v28  ;;  %v2234_v8 = vpop.f32.mrf.mxu0 }
 0x27a   : > { %v2090_v47 = vpop.f32.mrf.mxu3  ;;  %v1797_v55 = vpop.f32.mrf.mxu1 }
 0x27b   : > { %2389 = vst.msk [vmem:[%s3880_s7 + $0x78] sm:$0xff] %vm2373_vm7, %v2356_v34  ;;  %v2146_v19 = vadd.f32 %v2090_v47, %v1986_v45  ;;  %v1850_v46 = vadd.f32 %v1797_v55, %v3773_v13 }
 0x27d   : > { %v2290_v18 = vadd.f32 %v2234_v8, %v2146_v19  ;;  %v1932_v36 = vpop.f32.mrf.mxu2 }
 0x27e   : > { %v1987_v58 = vadd.f32 %v1932_v36, %v1849_v11 }
 0x27f   : > { %v2324_v57 = vmul.f32 %v3866_v20, %v2290_v18 }
 0x281   : > { %v2357_v52 = vadd.f32 %v3871_v16, %v2324_v57  ;;  %v2236_v27 = vpop.f32.mrf.mxu0 }
 0x282   : > { %v2092_v4 = vpop.f32.mrf.mxu3  ;;  %v1799_v7 = vpop.f32.mrf.mxu1 }
 0x283   : > { %2390 = vst.msk [vmem:[%s3880_s7 + $0x80] sm:$0xff] %vm2373_vm7, %v2357_v52  ;;  %v2147_v6 = vadd.f32 %v2092_v4, %v1987_v58  ;;  %v1851_v54 = vadd.f32 %v1799_v7, %v3778_v41 }
 0x285   : > { %v2291_v5 = vadd.f32 %v2236_v27, %v2147_v6  ;;  %v1935_v38 = vpop.f32.mrf.mxu2 }
 0x286   : > { %v1988_v25 = vadd.f32 %v1935_v38, %v1850_v46 }
 0x287   : > { %v2325_v0 = vmul.f32 %v3866_v20, %v2291_v5 }
 0x289   : > { %v2358_v44 = vadd.f32 %v3871_v16, %v2325_v0  ;;  %v2239_v23 = vpop.f32.mrf.mxu0 }
 0x28a   : > { %v2095_v22 = vpop.f32.mrf.mxu3  ;;  %v1802_v43 = vpop.f32.mrf.mxu1 }
 0x28b   : > { %2391 = vst.msk [vmem:[%s3880_s7 + $0x88] sm:$0xff] %vm2373_vm7, %v2358_v44  ;;  %v2148_v51 = vadd.f32 %v2095_v22, %v1988_v25  ;;  %v1852_v21 = vadd.f32 %v1802_v43, %v3787_v61 }
 0x28d   : > { %v2292_v62 = vadd.f32 %v2239_v23, %v2148_v51  ;;  %v1937_v59 = vpop.f32.mrf.mxu2 }
 0x28e   : > { %v1989_v13 = vadd.f32 %v1937_v59, %v1851_v54 }
 0x28f   : > { %v2326_v24 = vmul.f32 %v3866_v20, %v2292_v62 }
 0x291   : > { %v2359_v48 = vadd.f32 %v3871_v16, %v2326_v24  ;;  %v2241_v32 = vpop.f32.mrf.mxu0 }
 0x292   : > { %v2097_v2 = vpop.f32.mrf.mxu3  ;;  %v1804_v15 = vpop.f32.mrf.mxu1 }
 0x293   : > { %2392 = vst.msk [vmem:[%s3880_s7 + $0x90] sm:$0xff] %vm2373_vm7, %v2359_v48  ;;  %v2149_v60 = vadd.f32 %v2097_v2, %v1989_v13  ;;  %v1853_v42 = vadd.f32 %v1804_v15, %v3792_v35 }
 0x295   : > { %v2293_v12 = vadd.f32 %v2241_v32, %v2149_v60  ;;  %v1940_v10 = vpop.f32.mrf.mxu2 }
 0x296   : > { %v1990_v41 = vadd.f32 %v1940_v10, %v1852_v21 }
 0x297   : > { %v2327_v33 = vmul.f32 %v3866_v20, %v2293_v12 }
 0x299   : > { %v2360_v26 = vadd.f32 %v3871_v16, %v2327_v33  ;;  %v2244_v1 = vpop.f32.mrf.mxu0 }
 0x29a   : > { %v2100_v17 = vpop.f32.mrf.mxu3  ;;  %v1807_v56 = vpop.f32.mrf.mxu1 }
 0x29b   : > { %2393 = vst.msk [vmem:[%s3880_s7 + $0x98] sm:$0xff] %vm2373_vm7, %v2360_v26  ;;  %v2150_v50 = vadd.f32 %v2100_v17, %v1990_v41  ;;  %v1854_v18 = vadd.f32 %v1807_v56, %v3801_v63 }
 0x29d   : > { %v2294_v30 = vadd.f32 %v2244_v1, %v2150_v50  ;;  %v1942_v49 = vpop.f32.mrf.mxu2 }
 0x29e   : > { %v1991_v61 = vadd.f32 %v1942_v49, %v1853_v42 }
 0x29f   : > { %v2328_v28 = vmul.f32 %v3866_v20, %v2294_v30 }
 0x2a1   : > { %v2361_v45 = vadd.f32 %v3871_v16, %v2328_v28  ;;  %v2246_v34 = vpop.f32.mrf.mxu0 }
 0x2a2   : > { %v2102_v8 = vpop.f32.mrf.mxu3  ;;  %v1809_v47 = vpop.f32.mrf.mxu1 }
 0x2a3   : > { %2394 = vst.msk [vmem:[%s3880_s7 + $0xa0] sm:$0xff] %vm2373_vm7, %v2361_v45  ;;  %v2151_v55 = vadd.f32 %v2102_v8, %v1991_v61  ;;  %v1855_v6 = vadd.f32 %v1809_v47, %v3806_v9 }
 0x2a5   : > { %v2295_v19 = vadd.f32 %v2246_v34, %v2151_v55  ;;  %v1945_v11 = vpop.f32.mrf.mxu2 }
 0x2a6   : > { %v1992_v35 = vadd.f32 %v1945_v11, %v1854_v18 }
 0x2a7   : > { %v2329_v36 = vmul.f32 %v3866_v20, %v2295_v19 }
 0x2a9   : > { %v2362_v57 = vadd.f32 %v3871_v16, %v2329_v36  ;;  %v2249_v58 = vpop.f32.mrf.mxu0 }
 0x2aa   : > { %v2105_v52 = vpop.f32.mrf.mxu3  ;;  %v1812_v27 = vpop.f32.mrf.mxu1 }
 0x2ab   : > { %2395 = vst.msk [vmem:[%s3880_s7 + $0xa8] sm:$0xff] %vm2373_vm7, %v2362_v57  ;;  %v2152_v4 = vadd.f32 %v2105_v52, %v1992_v35  ;;  %v1856_v43 = vadd.f32 %v1812_v27, %v3815_v14 }
 0x2ad   : > { %v2296_v7 = vadd.f32 %v2249_v58, %v2152_v4  ;;  %v1947_v5 = vpop.f32.mrf.mxu2 }
 0x2ae   : > { %v1993_v63 = vadd.f32 %v1947_v5, %v1855_v6 }
 0x2af   : > { %v2330_v46 = vmul.f32 %v3866_v20, %v2296_v7 }
 0x2b1   : > { %v2363_v38 = vadd.f32 %v3871_v16, %v2330_v46  ;;  %v2251_v0 = vpop.f32.mrf.mxu0 }
 0x2b2   : > { %v2107_v25 = vpop.f32.mrf.mxu3  ;;  %v1814_v44 = vpop.f32.mrf.mxu1 }
 0x2b3   : > { %2396 = vst.msk [vmem:[%s3880_s7 + $0xb0] sm:$0xff] %vm2373_vm7, %v2363_v38  ;;  %v2153_v23 = vadd.f32 %v2107_v25, %v1993_v63  ;;  %v1857_v2 = vadd.f32 %v1814_v44, %v3820_v3 }
 0x2b5   : > { %v2297_v22 = vadd.f32 %v2251_v0, %v2153_v23  ;;  %v1950_v51 = vpop.f32.mrf.mxu2 }
 0x2b6   : > { %v1994_v9 = vadd.f32 %v1950_v51, %v1856_v43 }
 0x2b7   : > { %v2331_v62 = vmul.f32 %v3866_v20, %v2297_v22 }
 0x2b9   : > { %v2364_v54 = vadd.f32 %v3871_v16, %v2331_v62  ;;  %v2254_v59 = vpop.f32.mrf.mxu0 }
 0x2ba   : > { %v2110_v24 = vpop.f32.mrf.mxu3  ;;  %v1817_v13 = vpop.f32.mrf.mxu1 }
 0x2bb   : > { %2397 = vst.msk [vmem:[%s3880_s7 + $0xb8] sm:$0xff] %vm2373_vm7, %v2364_v54  ;;  %v2154_v48 = vadd.f32 %v2110_v24, %v1994_v9  ;;  %v1858_v1 = vadd.f32 %v1817_v13, %v3829_v53 }
 0x2bd   : > { %v2298_v32 = vadd.f32 %v2254_v59, %v2154_v48  ;;  %v1952_v15 = vpop.f32.mrf.mxu2 }
 0x2be   : > { %v1995_v14 = vadd.f32 %v1952_v15, %v1857_v2 }
 0x2bf   : > { %v2332_v60 = vmul.f32 %v3866_v20, %v2298_v32 }
 0x2c1   : > { %v2365_v12 = vadd.f32 %v3871_v16, %v2332_v60  ;;  %v2256_v21 = vpop.f32.mrf.mxu0 }
 0x2c2   : > { %v2112_v10 = vpop.f32.mrf.mxu3  ;;  %v1819_v33 = vpop.f32.mrf.mxu1 }
 0x2c3   : > { %2398 = vst.msk [vmem:[%s3880_s7 + $0xc0] sm:$0xff] %vm2373_vm7, %v2365_v12  ;;  %v2155_v41 = vadd.f32 %v2112_v10, %v1995_v14  ;;  %v1859_v45 = vadd.f32 %v1819_v33, %v3834_v29 }
 0x2c5   : > { %v2299_v26 = vadd.f32 %v2256_v21, %v2155_v41  ;;  %v1955_v17 = vpop.f32.mrf.mxu2 }
 0x2c6   : > { %v1996_v3 = vadd.f32 %v1955_v17, %v1858_v1 }
 0x2c7   : > { %v2333_v56 = vmul.f32 %v3866_v20, %v2299_v26 }
 0x2c9   : > { %v2366_v50 = vadd.f32 %v3871_v16, %v2333_v56  ;;  %v2259_v30 = vpop.f32.mrf.mxu0 }
 0x2ca   : > { %v2115_v42 = vpop.f32.mrf.mxu3  ;;  %v1822_v28 = vpop.f32.mrf.mxu1 }
 0x2cb   : > { %2399 = vst.msk [vmem:[%s3880_s7 + $0xc8] sm:$0xff] %vm2373_vm7, %v2366_v50  ;;  %v2156_v49 = vadd.f32 %v2115_v42, %v1996_v3  ;;  %v1860_v36 = vadd.f32 %v1822_v28, %v3843_v39 }
 0x2cd   : > { %v2300_v61 = vadd.f32 %v2259_v30, %v2156_v49  ;;  %v1957_v34 = vpop.f32.mrf.mxu2 }
 0x2ce   : > { %v1997_v53 = vadd.f32 %v1957_v34, %v1859_v45 }
 0x2cf   : > { %v2334_v8 = vmul.f32 %v3866_v20, %v2300_v61 }
 0x2d1   : > { %v2367_v47 = vadd.f32 %v3871_v16, %v2334_v8  ;;  %v2261_v55 = vpop.f32.mrf.mxu0 }
 0x2d2   : > { %v2117_v19 = vpop.f32.mrf.mxu3  ;;  %v1824_v57 = vpop.f32.mrf.mxu1 }
 0x2d3   : > { %2400 = vst.msk [vmem:[%s3880_s7 + $0xd0] sm:$0xff] %vm2373_vm7, %v2367_v47  ;;  %v2157_v18 = vadd.f32 %v2117_v19, %v1997_v53  ;;  %v1861_v5 = vadd.f32 %v1824_v57, %v3848_v31 }
 0x2d5   : > { %v2301_v11 = vadd.f32 %v2261_v55, %v2157_v18  ;;  %v1960_v35 = vpop.f32.mrf.mxu2 }
 0x2d6   : > { %v1998_v29 = vadd.f32 %v1960_v35, %v1860_v36 }
 0x2d7   : > { %v2335_v58 = vmul.f32 %v3866_v20, %v2301_v11 }
 0x2d9   : > { %v2368_v52 = vadd.f32 %v3871_v16, %v2335_v58  ;;  %v2264_v27 = vpop.f32.mrf.mxu0 }
 0x2da   : > { %v2120_v4 = vpop.f32.mrf.mxu3  ;;  %v1827_v38 = vpop.f32.mrf.mxu1 }
 0x2db   : > { %2401 = vst.msk [vmem:[%s3880_s7 + $0xd8] sm:$0xff] %vm2373_vm7, %v2368_v52  ;;  %v2158_v7 = vadd.f32 %v2120_v4, %v1998_v29  ;;  %v1862_v43 = vadd.f32 %v1827_v38, %v3857_v40 }
 0x2dd   : > { %v2302_v6 = vadd.f32 %v2264_v27, %v2158_v7  ;;  %v1962_v46 = vpop.f32.mrf.mxu2 }
 0x2de   : > { %v1999_v39 = vadd.f32 %v1962_v46, %v1861_v5 }
 0x2df   : > { %v2336_v63 = vmul.f32 %v3866_v20, %v2302_v6 }
 0x2e1   : > { %v2369_v0 = vadd.f32 %v3871_v16, %v2336_v63  ;;  %v2266_v25 = vpop.f32.mrf.mxu0 }
 0x2e2   : > { %v2122_v44 = vpop.f32.mrf.mxu3  ;;  %v1829_v54 = vpop.f32.mrf.mxu1 }
 0x2e3   : > { %2402 = vst.msk [vmem:[%s3880_s7 + $0xe0] sm:$0xff] %vm2373_vm7, %v2369_v0  ;;  %v2159_v23 = vadd.f32 %v2122_v44, %v1999_v39  ;;  %v1863_v32 = vadd.f32 %v1829_v54, %v3862_v37 }
 0x2e5   : > { %v2303_v22 = vadd.f32 %v2266_v25, %v2159_v23  ;;  %v1965_v51 = vpop.f32.mrf.mxu2 }
 0x2e6   : > { %v2000_v62 = vadd.f32 %v1965_v51, %v1862_v43 }
 0x2e7   : > { %v2337_v31 = vmul.f32 %v3866_v20, %v2303_v22 }
 0x2e9   : > { %v2370_v9 = vadd.f32 %v3871_v16, %v2337_v31  ;;  %v2269_v59 = vpop.f32.mrf.mxu0 }
 0x2ea   : > { %v2125_v24 = vpop.f32.mrf.mxu3 }
 0x2eb   : > { %2403 = vst.msk [vmem:[%s3880_s7 + $0xe8] sm:$0xff] %vm2373_vm7, %v2370_v9  ;;  %v2160_v13 = vadd.f32 %v2125_v24, %v2000_v62 }
 0x2ed   : > { %v2304_v48 = vadd.f32 %v2269_v59, %v2160_v13  ;;  %v1967_v2 = vpop.f32.mrf.mxu2 }
 0x2ee   : > { %v2001_v15 = vadd.f32 %v1967_v2, %v1863_v32 }
 0x2ef   : > { %v2338_v40 = vmul.f32 %v3866_v20, %v2304_v48 }
 0x2f1   : > { %v2371_v60 = vadd.f32 %v3871_v16, %v2338_v40  ;;  %v2271_v21 = vpop.f32.mrf.mxu0 }
 0x2f2   : > { %v2127_v14 = vpop.f32.mrf.mxu3 }
 0x2f3   : > { %2404 = vst.msk [vmem:[%s3880_s7 + $0xf0] sm:$0xff] %vm2373_vm7, %v2371_v60  ;;  %v2161_v12 = vadd.f32 %v2127_v14, %v2001_v15 }
 0x2f5   : > { %v2305_v10 = vadd.f32 %v2271_v21, %v2161_v12 }
 0x2f7   : > { %v2339_v33 = vmul.f32 %v3866_v20, %v2305_v10 }
 0x2f9   : > { %v2372_v41 = vadd.f32 %v3871_v16, %v2339_v33 }
 0x2fb   : > { %2405 = vst.msk [vmem:[%s3880_s7 + $0xf8] sm:$0xff] %vm2373_vm7, %v2372_v41 }
 0x2fc PF: > { %s15_s12 = sadd.s32 1, %s2912_s12  }
 0x2fd   : > { %p12_p7 = scmp.ge.s32.totalorder %s15_s12, 4  }
 0x2ff   :  { %14 = sbr.rel (!%p12_p7) target bundleno = 2 (0x2), region = 79 }
 0x304   :  { %2427 = vsyncpa [#allocation3], 1 }
 0x305   :  { %2429 = vsyncpa [#allocation3 + $0x1], 1 }
 0x306   :  { %2430 = vsyncpa [#allocation5], 1 }

// kernel: _lambda_.3
= control target key start
LH: loop header
LB: loop body
LE: loop exit
PB: predicated region body
PF: predicated region fallthrough
CT: control target
= control target key end

     0   :  { %s1671_s12 = smov 0   ;;  %s1673_s13 = smov 0   ;;  %s2054_s0 = inlined_call_operand.vmem [shape: bf16[512,144], index: 0, kind: input, shape index: {}]   ;;  %s2055_s1 = inlined_call_operand.vmem [shape: bf16[144,128], index: 1, kind: input, shape index: {}]   ;;  %s2056_s2 = inlined_call_operand.vmem [shape: f32[2,128], index: 2, kind: input, shape index: {}]   ;;  %s2057_s3 = inlined_call_operand.vmem [shape: bf16[512,128], index: 3, kind: output, shape index: {}]  }
   0x1   :  { %s1675_s14 = smov 0  }
   0x2 LB: > { %s25_s15 = sadd.s32 1, %s1645_s13  ;;  %p1141_p0 = scmp.ge.s32.totalorder %s1649_s14, 1  ;;  %s1649_s14 = sphi %s1675_s14, %s13_s14   ;;  %s1645_s13 = sphi %s1673_s13, %s2059_s13   ;;  %s1641_s12 = sphi %s1671_s12, %s2058_s12  }
   0x3   : > { %p27_p1 = scmp.ge.s32.totalorder %s25_s15, 2  ;;  %p171_p2 = scmp.lt.s32.totalorder %s1649_s14, 3 }
   0x5   : > { %s2061_s15 = smov (%p27_p1, %s25_s15), 0  ;;  %p172_p3 = pnand %p1141_p0, %p171_p2 }
   0x6   : > { %s1142_s20 = sshll.u32 (!%p172_p3), %s1641_s12, 5 }
   0x7   : > { %175 = sbr.rel (%p172_p3) target bundleno = 327 (0x147), region = 32  ;;  %p208_p4 = scmp.lt.s32.totalorder (!%p172_p3), %s1142_s20, 63 }
   0xc   : > { %v1369_v0 = vld [vmem:[%s2055_s1 + $0x38] sm:$0xff]  ;;  %v1370_v1 = vld [vmem:[%s2055_s1 + $0x40] sm:$0xff]  ;;  %v1368_v2 = vld [vmem:[%s2055_s1 + $0x30] sm:$0xff]  ;;  %s2063_s20 = smov (!%p208_p4, %s1142_s20), 63  ;;  %vm480_vm0 = vcmask 130048  }
   0xd   : > { %529 = vmatpush.bf16.msra.mxu0 %v1369_v0  ;;  %1466 = vmatpush.bf16.msra.mxu2 %v1369_v0  ;;  %s1329_s23 = sshll.u32 %s2063_s20, 3  ;;  %v1367_v3 = vld [vmem:[%s2055_s1 + $0x28] sm:$0xff]  ;;  %v1366_v7 = vld [vmem:[%s2055_s1 + $0x20] sm:$0xff]  ;;  %v1365_v11 = vld [vmem:[%s2055_s1 + $0x18] sm:$0xff]  ;;  %s1146_s17 = sshll.u32 %s2063_s20, 2 }
   0xe   : > { %625 = vmatpush.bf16.msra.mxu1 %v1370_v1  ;;  %1474 = vmatpush.bf16.msra.mxu3 %v1370_v1  ;;  %s1704_s26 = scalar_lea.vmem %s2054_s0, %s1329_s23  ;;  %v1364_v12 = vld [vmem:[%s2055_s1 + $0x10] sm:$0xff]  ;;  %v1363_v16 = vld [vmem:[%s2055_s1 + $0x8] sm:$0xff]  ;;  %v1362_v20 = vld [vmem:[%s2055_s1] sm:$0xff]  ;;  %s1844_s21 = scalar_lea.vmem %s2057_s3, %s1146_s17 }
   0xf   : > { %v1330_v4 = vld [vmem:[%s1704_s26 + $0x4] sm:$0xf]  ;;  %v1151_v5 = vld [vmem:[%s1704_s26 + $0x8] sm:$0xf0]  ;;  %v1348_v8 = vld [vmem:[%s1704_s26 + $0x94] sm:$0xf] }
  0x10   : > { %v1154_v6 = vor.u32 %v1330_v4, %v1151_v5  ;;  %v1223_v9 = vld [vmem:[%s1704_s26 + $0x98] sm:$0xf0]  ;;  %v1332_v13 = vld [vmem:[%s1704_s26 + $0x14] sm:$0xf]  ;;  %v1350_v17 = vld [vmem:[%s1704_s26 + $0xa4] sm:$0xf] }
  0x11   : > { %530 = vmatpush.bf16.msra.mxu0 %v1368_v2  ;;  %1467 = vmatpush.bf16.msra.mxu2 %v1368_v2  ;;  %v1226_v10 = vor.u32 %v1348_v8, %v1223_v9  ;;  %v1159_v14 = vld [vmem:[%s1704_s26 + $0x18] sm:$0xf0]  ;;  %v1231_v18 = vld [vmem:[%s1704_s26 + $0xa8] sm:$0xf0]  ;;  %v1149_v21 = vld [vmem:[%s1704_s26] sm:$0xf] }
  0x12   : > { %1311 = vmatmul.msk.bf16.vlgmr.msra.gmra.mxu1 %vm480_vm0, %v1154_v6  ;;  %v1162_v15 = vor.u32 %v1332_v13, %v1159_v14  ;;  %v1234_v19 = vor.u32 %v1350_v17, %v1231_v18  ;;  %v1331_v22 = vld [vmem:[%s1704_s26 + $0x4] sm:$0xf0]  ;;  %v1213_v23 = vld [vmem:[%s1704_s26 + $0x80] sm:$0xf]  ;;  %v1334_v27 = vld [vmem:[%s1704_s26 + $0x24] sm:$0xf] }
  0x13   : > { %1320 = vmatmul.msk.bf16.vlgmr.msra.gmra.mxu3 %vm480_vm0, %v1226_v10  ;;  %v1347_v24 = vld [vmem:[%s1704_s26 + $0x84] sm:$0xf0]  ;;  %v1150_v25 = vor.u32 %v1331_v22, %v1149_v21  ;;  %v1167_v28 = vld [vmem:[%s1704_s26 + $0x28] sm:$0xf0]  ;;  %v1352_v30 = vld [vmem:[%s1704_s26 + $0xb4] sm:$0xf] }
  0x14   : > { %v1214_v26 = vor.u32 %v1347_v24, %v1213_v23  ;;  %v1170_v29 = vor.u32 %v1334_v27, %v1167_v28  ;;  %v1239_v31 = vld [vmem:[%s1704_s26 + $0xb8] sm:$0xf0]  ;;  %v1157_v33 = vld [vmem:[%s1704_s26 + $0x10] sm:$0xf]  ;;  %v1333_v34 = vld [vmem:[%s1704_s26 + $0x14] sm:$0xf0] }
  0x15   : > { %531 = vmatpush.bf16.msra.mxu0 %v1367_v3  ;;  %1468 = vmatpush.bf16.msra.mxu2 %v1367_v3  ;;  %v1242_v32 = vor.u32 %v1352_v30, %v1239_v31  ;;  %v1221_v35 = vld [vmem:[%s1704_s26 + $0x90] sm:$0xf]  ;;  %v1349_v36 = vld [vmem:[%s1704_s26 + $0x94] sm:$0xf0]  ;;  %v1158_v37 = vor.u32 %v1333_v34, %v1157_v33  ;;  %v1336_v39 = vld [vmem:[%s1704_s26 + $0x34] sm:$0xf] }
  0x16   : > { %v1222_v38 = vor.u32 %v1349_v36, %v1221_v35  ;;  %v1175_v40 = vld [vmem:[%s1704_s26 + $0x38] sm:$0xf0]  ;;  %v1354_v42 = vld [vmem:[%s1704_s26 + $0xc4] sm:$0xf]  ;;  %v1247_v43 = vld [vmem:[%s1704_s26 + $0xc8] sm:$0xf0] }
  0x17   : > { %v1178_v41 = vor.u32 %v1336_v39, %v1175_v40  ;;  %v1250_v44 = vor.u32 %v1354_v42, %v1247_v43  ;;  %v1165_v45 = vld [vmem:[%s1704_s26 + $0x20] sm:$0xf]  ;;  %v1335_v46 = vld [vmem:[%s1704_s26 + $0x24] sm:$0xf0]  ;;  %v1338_v51 = vld [vmem:[%s1704_s26 + $0x44] sm:$0xf] }
  0x18   : > { %v1229_v47 = vld [vmem:[%s1704_s26 + $0xa0] sm:$0xf]  ;;  %v1351_v48 = vld [vmem:[%s1704_s26 + $0xa4] sm:$0xf0]  ;;  %v1166_v49 = vor.u32 %v1335_v46, %v1165_v45  ;;  %v1183_v52 = vld [vmem:[%s1704_s26 + $0x48] sm:$0xf0] }
  0x19   : > { %532 = vmatpush.bf16.msra.mxu0 %v1366_v7  ;;  %1469 = vmatpush.bf16.msra.mxu2 %v1366_v7  ;;  %v1230_v50 = vor.u32 %v1351_v48, %v1229_v47  ;;  %v1186_v53 = vor.u32 %v1338_v51, %v1183_v52  ;;  %v1356_v54 = vld [vmem:[%s1704_s26 + $0xd4] sm:$0xf]  ;;  %v1255_v55 = vld [vmem:[%s1704_s26 + $0xd8] sm:$0xf0]  ;;  %v1173_v57 = vld [vmem:[%s1704_s26 + $0x30] sm:$0xf] }
  0x1a   : > { %v1258_v56 = vor.u32 %v1356_v54, %v1255_v55  ;;  %v1337_v58 = vld [vmem:[%s1704_s26 + $0x34] sm:$0xf0]  ;;  %v1237_v59 = vld [vmem:[%s1704_s26 + $0xb0] sm:$0xf]  ;;  %v1340_v63 = vld [vmem:[%s1704_s26 + $0x54] sm:$0xf] }
  0x1b   : > { %v1353_v60 = vld [vmem:[%s1704_s26 + $0xb4] sm:$0xf0]  ;;  %v1174_v61 = vor.u32 %v1337_v58, %v1173_v57  ;;  %v1191_v0 = vld [vmem:[%s1704_s26 + $0x58] sm:$0xf0]  ;;  %v1358_v2 = vld [vmem:[%s1704_s26 + $0xe4] sm:$0xf] }
  0x1c   : > { %v1238_v62 = vor.u32 %v1353_v60, %v1237_v59  ;;  %v1194_v1 = vor.u32 %v1340_v63, %v1191_v0  ;;  %v1263_v3 = vld [vmem:[%s1704_s26 + $0xe8] sm:$0xf0]  ;;  %v1181_v5 = vld [vmem:[%s1704_s26 + $0x40] sm:$0xf]  ;;  %v1339_v6 = vld [vmem:[%s1704_s26 + $0x44] sm:$0xf0] }
  0x1d   : > { %533 = vmatpush.bf16.msra.mxu0 %v1365_v11  ;;  %1470 = vmatpush.bf16.msra.mxu2 %v1365_v11  ;;  %v1266_v4 = vor.u32 %v1358_v2, %v1263_v3  ;;  %v1245_v7 = vld [vmem:[%s1704_s26 + $0xc0] sm:$0xf]  ;;  %v1355_v8 = vld [vmem:[%s1704_s26 + $0xc4] sm:$0xf0]  ;;  %v1182_v9 = vor.u32 %v1339_v6, %v1181_v5  ;;  %v1342_v11 = vld [vmem:[%s1704_s26 + $0x64] sm:$0xf] }
  0x1e   : > { %v1246_v10 = vor.u32 %v1355_v8, %v1245_v7  ;;  %v1360_v14 = vld [vmem:[%s1704_s26 + $0xf4] sm:$0xf]  ;;  %v1189_v17 = vld [vmem:[%s1704_s26 + $0x50] sm:$0xf]  ;;  %v1341_v18 = vld [vmem:[%s1704_s26 + $0x54] sm:$0xf0] }
  0x1f   : > { %v1190_v21 = vor.u32 %v1341_v18, %v1189_v17  ;;  %v1344_v23 = vld [vmem:[%s1704_s26 + $0x74] sm:$0xf]  ;;  %v1207_v24 = vld [vmem:[%s1704_s26 + $0x78] sm:$0xf0]  ;;  %v1343_v27 = vld [vmem:[%s1704_s26 + $0x64] sm:$0xf0] }
  0x20   : > { %v1261_v28 = vld [vmem:[%s1704_s26 + $0xe0] sm:$0xf]  ;;  %v1215_v33 = vld [vmem:[%s1704_s26 + $0x88] sm:$0xf0]  ;;  %v1205_v36 = vld [vmem:[%s1704_s26 + $0x70] sm:$0xf] }
  0x21   : > { %534 = vmatpush.bf16.msra.mxu0 %v1364_v12  ;;  %1471 = vmatpush.bf16.msra.mxu2 %v1364_v12  ;;  %v1199_v12 = vld [vmem:[%s1704_s26 + $0x68] sm:$0xf0]  ;;  %v1361_v39 = vld [vmem:[%s1704_s26 + $0xf4] sm:$0xf0] }
  0x22   : > { %1312 = vmatmul.msk.bf16.gmra.mxu1 %vm480_vm0, %v1162_v15  ;;  %v1202_v13 = vor.u32 %v1342_v11, %v1199_v12  ;;  %v1271_v15 = vld [vmem:[%s1704_s26 + $0xf8] sm:$0xf0] }
  0x23   : > { %1321 = vmatmul.msk.bf16.gmra.mxu3 %vm480_vm0, %v1234_v19  ;;  %v1253_v19 = vld [vmem:[%s1704_s26 + $0xd0] sm:$0xf] }
  0x25   : > { %535 = vmatpush.bf16.msra.mxu0 %v1363_v16  ;;  %1472 = vmatpush.bf16.msra.mxu2 %v1363_v16  ;;  %v1274_v16 = vor.u32 %v1360_v14, %v1271_v15 }
  0x29   : > { %536 = vmatpush.bf16.msra.mxu0 %v1362_v20  ;;  %1473 = vmatpush.bf16.msra.mxu2 %v1362_v20  ;;  %v1357_v20 = vld [vmem:[%s1704_s26 + $0xd4] sm:$0xf0] }
  0x2a   : > { %v1254_v22 = vor.u32 %v1357_v20, %v1253_v19 }
  0x2c   : > { %537 = vmatmul.bf16.vlgmr.msra.gmra.mxu0 %v1150_v25  ;;  %577 = vmatmul.bf16.vlgmr.msra.gmra.mxu2 %v1214_v26  ;;  %v1210_v25 = vor.u32 %v1344_v23, %v1207_v24  ;;  %v1197_v26 = vld [vmem:[%s1704_s26 + $0x60] sm:$0xf] }
  0x2d   : > { %v1198_v30 = vor.u32 %v1343_v27, %v1197_v26 }
  0x32   : > { %1313 = vmatmul.msk.bf16.gmra.mxu1 %vm480_vm0, %v1170_v29  ;;  %v1359_v29 = vld [vmem:[%s1704_s26 + $0xe4] sm:$0xf0] }
  0x33   : > { %1322 = vmatmul.msk.bf16.gmra.mxu3 %vm480_vm0, %v1242_v32  ;;  %v1262_v31 = vor.u32 %v1359_v29, %v1261_v28  ;;  %v1346_v32 = vld [vmem:[%s1704_s26 + $0x84] sm:$0xf] }
  0x34   : > { %v1218_v34 = vor.u32 %v1346_v32, %v1215_v33 }
  0x3c   : > { %542 = vmatmul.bf16.gmra.mxu0 %v1158_v37  ;;  %582 = vmatmul.bf16.gmra.mxu2 %v1222_v38  ;;  %v1345_v37 = vld [vmem:[%s1704_s26 + $0x74] sm:$0xf0]  ;;  %v1269_v38 = vld [vmem:[%s1704_s26 + $0xf0] sm:$0xf] }
  0x3d   : > { %v1206_v40 = vor.u32 %v1345_v37, %v1205_v36 }
  0x42   : > { %1314 = vmatmul.msk.bf16.gmra.mxu1 %vm480_vm0, %v1178_v41  ;;  %v1270_v41 = vor.u32 %v1361_v39, %v1269_v38 }
  0x43   : > { %1323 = vmatmul.msk.bf16.gmra.mxu3 %vm480_vm0, %v1250_v44  ;;  %v707_v44 = vld [vmem:[%s2056_s2] sm:$0x3] }
  0x44   : > { %v1807_v46 = vperm.slane %v707_v44, 0 }
  0x4c   : > { %547 = vmatmul.bf16.gmra.mxu0 %v1166_v49  ;;  %587 = vmatmul.bf16.gmra.mxu2 %v1230_v50  ;;  %v1809_v49 = vperm.slane %v707_v44, 1 }
  0x52   : > { %1315 = vmatmul.msk.bf16.gmra.mxu1 %vm480_vm0, %v1186_v53 }
  0x53   : > { %1324 = vmatmul.msk.bf16.gmra.mxu3 %vm480_vm0, %v1258_v56 }
  0x5c   : > { %552 = vmatmul.bf16.gmra.mxu0 %v1174_v61  ;;  %592 = vmatmul.bf16.gmra.mxu2 %v1238_v62 }
  0x62   : > { %1316 = vmatmul.msk.bf16.gmra.mxu1 %vm480_vm0, %v1194_v1 }
  0x63   : > { %1325 = vmatmul.msk.bf16.gmra.mxu3 %vm480_vm0, %v1266_v4 }
  0x6c   : > { %557 = vmatmul.bf16.gmra.mxu0 %v1182_v9  ;;  %597 = vmatmul.bf16.gmra.mxu2 %v1246_v10 }
  0x72   : > { %1317 = vmatmul.msk.bf16.gmra.mxu1 %vm480_vm0, %v1202_v13 }
  0x73   : > { %1326 = vmatmul.msk.bf16.gmra.mxu3 %vm480_vm0, %v1274_v16 }
  0x7c   : > { %562 = vmatmul.bf16.gmra.mxu0 %v1190_v21  ;;  %602 = vmatmul.bf16.gmra.mxu2 %v1254_v22 }
  0x82   : > { %1318 = vmatmul.msk.bf16.gmra.mxu1 %vm480_vm0, %v1210_v25 }
  0x8c   : > { %567 = vmatmul.bf16.gmra.mxu0 %v1198_v30  ;;  %607 = vmatmul.bf16.gmra.mxu2 %v1262_v31 }
  0x8f   : > { %v627_v35 = vpop.f32.mrf.mxu1 }
  0x92   : > { %1319 = vmatmul.msk.bf16.gmra.mxu1 %vm480_vm0, %v1218_v34 }
  0x96   : > { %v672_v45 = vpop.f32.mrf.mxu3 }
  0x97   : > { %v629_v42 = vpop.f32.mrf.mxu1 }
  0x9c   : > { %572 = vmatmul.bf16.gmra.mxu0 %v1206_v40  ;;  %612 = vmatmul.bf16.gmra.mxu2 %v1270_v41 }
  0x9e   : > { %v674_v55 = vpop.f32.mrf.mxu3 }
  0x9f   : > { %v632_v43 = vpop.f32.mrf.mxu1 }
  0xa6   : > { %v677_v4 = vpop.f32.mrf.mxu3 }
  0xa7   : > { %v634_v50 = vpop.f32.mrf.mxu1 }
  0xa9   : > { %v538_v47 = vpop.f32.mrf.mxu0 }
  0xaa   : > { %v628_v48 = vadd.f32 %v627_v35, %v538_v47 }
  0xac   : > { %v709_v51 = vmul.f32 %v1807_v46, %v628_v48 }
  0xae   : > { %v742_v52 = vadd.f32 %v1809_v49, %v709_v51  ;;  %v679_v20 = vpop.f32.mrf.mxu3 }
  0xaf   : > { %v1813_v54 = vpop.f32.mrf.mxu2  ;;  %v637_v59 = vpop.f32.mrf.mxu1 }
  0xb0   : > { %v774_v53 = vsub.f32 0.0, %v742_v52 }
  0xb1   : > { %v540_v56 = vpop.f32.mrf.mxu0 }
  0xb2   : > { %v806_v57 = vmul.f32 1.442695, %v774_v53  ;;  %v630_v58 = vadd.f32 %v629_v42, %v540_v56 }
  0xb4   : > { %v710_v60 = vmul.f32 %v1807_v46, %v630_v58  ;;  %1499 = vpow2.f32 %v806_v57 }
  0xb6   : > { %v743_v61 = vadd.f32 %v1809_v49, %v710_v60 }
  0xb7   : > { %v1817_v63 = vpop.f32.mrf.mxu2  ;;  %v639_v3 = vpop.f32.mrf.mxu1 }
  0xb8   : > { %v775_v62 = vsub.f32 0.0, %v743_v61 }
  0xb9   : > { %v543_v0 = vpop.f32.mrf.mxu0 }
  0xba   : > { %v808_v1 = vmul.f32 1.442695, %v775_v62  ;;  %v633_v2 = vadd.f32 %v632_v43, %v543_v0  ;;  %v1500_v5 = vpop.eup %1499  ;;  %v682_v43 = vpop.f32.mrf.mxu3 }
  0xbb   : > { %v870_v8 = vadd.f32 1.0, %v1500_v5 }
  0xbc   : > { %1501 = vpow2.f32 %v808_v1  ;;  %v711_v6 = vmul.f32 %v1807_v46, %v633_v2 }
  0xbd   : > { %1503 = vrcp.f32 %v870_v8 }
  0xbe   : > { %v1821_v7 = vadd.f32 %v1809_v49, %v711_v6 }
  0xbf   : > { %v583_v10 = vpop.f32.mrf.mxu2  ;;  %v1824_v16 = vpop.f32.mrf.mxu1 }
  0xc0   : > { %v776_v9 = vsub.f32 0.0, %v1821_v7  ;;  %v673_v11 = vadd.f32 %v672_v45, %v583_v10 }
  0xc1   : > { %v545_v12 = vpop.f32.mrf.mxu0 }
  0xc2   : > { %v1502_v13 = vpop.eup %1501  ;;  %v810_v14 = vmul.f32 1.442695, %v776_v9  ;;  %v635_v15 = vadd.f32 %v634_v50, %v545_v12  ;;  %v727_v18 = vmul.f32 %v1807_v46, %v673_v11  ;;  %v684_v5 = vpop.f32.mrf.mxu3 }
  0xc3   : > { %v871_v17 = vadd.f32 1.0, %v1502_v13  ;;  %v1504_v26 = vpop.eup %1503 }
  0xc4   : > { %1505 = vpow2.f32 %v810_v14  ;;  %v712_v19 = vmul.f32 %v1807_v46, %v635_v15  ;;  %v1829_v21 = vadd.f32 %v1809_v49, %v727_v18  ;;  %v934_v36 = vmul.f32 %v1504_v26, %v742_v52 }
  0xc5   : > { %1507 = vrcp.f32 %v871_v17 }
  0xc6   : > { %v1832_v22 = vadd.f32 %v1809_v49, %v712_v19  ;;  %v792_v23 = vsub.f32 0.0, %v1829_v21 }
  0xc7   : > { %v585_v25 = vpop.f32.mrf.mxu2  ;;  %v1837_v33 = vpop.f32.mrf.mxu1 }
  0xc8   : > { %v777_v24 = vsub.f32 0.0, %v1832_v22  ;;  %v842_v27 = vmul.f32 1.442695, %v792_v23  ;;  %v675_v28 = vadd.f32 %v674_v55, %v585_v25 }
  0xc9   : > { %v548_v29 = vpop.f32.mrf.mxu0 }
  0xca   : > { %v1506_v30 = vpop.eup %1505  ;;  %v812_v31 = vmul.f32 1.442695, %v777_v24  ;;  %v638_v32 = vadd.f32 %v637_v59, %v548_v29  ;;  %1509 = vpow2.f32 %v842_v27  ;;  %v728_v35 = vmul.f32 %v1807_v46, %v675_v28 }
  0xcb   : > { %v1508_v34 = vpop.eup %1507  ;;  %v872_v41 = vadd.f32 1.0, %v1506_v30 }
  0xcc   : > { %v935_v37 = vmul.f32 %v1508_v34, %v743_v61  ;;  %1511 = vpow2.f32 %v812_v31  ;;  %v713_v38 = vmul.f32 %v1807_v46, %v638_v32  ;;  %v1847_v39 = vadd.f32 %v1809_v49, %v728_v35 }
  0xcd   : > { %1513 = vrcp.f32 %v872_v41 }
  0xce   : > { %v1374_v40 = vpack.c.bf16 %v935_v37, %v934_v36  ;;  %v1850_v42 = vadd.f32 %v1809_v49, %v713_v38  ;;  %v793_v44 = vsub.f32 0.0, %v1847_v39  ;;  %v687_v38 = vpop.f32.mrf.mxu3 }
  0xcf   : > { %v588_v47 = vpop.f32.mrf.mxu2  ;;  %v1855_v56 = vpop.f32.mrf.mxu1 }
  0xd0   : > { %1375 = vst [vmem:[%s1844_s21] sm:$0xff] %v1374_v40   ;;  %v778_v45 = vsub.f32 0.0, %v1850_v42  ;;  %v1510_v48 = vpop.eup %1509  ;;  %v844_v50 = vmul.f32 1.442695, %v793_v44  ;;  %v678_v51 = vadd.f32 %v677_v4, %v588_v47 }
  0xd1   : > { %v550_v52 = vpop.f32.mrf.mxu0  ;;  %v888_v61 = vadd.f32 1.0, %v1510_v48 }
  0xd2   : > { %v1512_v53 = vpop.eup %1511  ;;  %v640_v55 = vadd.f32 %v639_v3, %v550_v52  ;;  %1515 = vpow2.f32 %v844_v50  ;;  %v814_v58 = vmul.f32 1.442695, %v778_v45  ;;  %v729_v59 = vmul.f32 %v1807_v46, %v678_v51 }
  0xd3   : > { %v873_v57 = vadd.f32 1.0, %v1512_v53  ;;  %v1514_v2 = vpop.eup %1513 }
  0xd4   : > { %v714_v60 = vmul.f32 %v1807_v46, %v640_v55  ;;  %v1860_v62 = vadd.f32 %v1809_v49, %v729_v59  ;;  %v936_v18 = vmul.f32 %v1514_v2, %v1821_v7 }
  0xd5   : > { %1517 = vrcp.f32 %v873_v57 }
  0xd6   : > { %v1863_v0 = vadd.f32 %v1809_v49, %v714_v60  ;;  %1519 = vpow2.f32 %v814_v58  ;;  %v794_v1 = vsub.f32 0.0, %v1860_v62 }
  0xd7   : > { %v590_v4 = vpop.f32.mrf.mxu2  ;;  %1521 = vrcp.f32 %v888_v61  ;;  %v1868_v14 = vpop.f32.mrf.mxu1 }
  0xd8   : > { %v779_v3 = vsub.f32 0.0, %v1863_v0  ;;  %v1516_v6 = vpop.eup %1515  ;;  %v846_v8 = vmul.f32 1.442695, %v794_v1  ;;  %v680_v9 = vadd.f32 %v679_v20, %v590_v4 }
  0xd9   : > { %v553_v10 = vpop.f32.mrf.mxu0  ;;  %v889_v11 = vadd.f32 1.0, %v1516_v6 }
  0xda   : > { %v816_v12 = vmul.f32 1.442695, %v779_v3  ;;  %v643_v13 = vadd.f32 %v1824_v16, %v553_v10  ;;  %1523 = vpow2.f32 %v846_v8  ;;  %v730_v17 = vmul.f32 %v1807_v46, %v680_v9  ;;  %v689_v8 = vpop.f32.mrf.mxu3 }
  0xdb   : > { %v1518_v15 = vpop.eup %1517  ;;  %1525 = vrcp.f32 %v889_v11 }
  0xdc   : > { %v937_v19 = vmul.f32 %v1518_v15, %v1832_v22  ;;  %v715_v23 = vmul.f32 %v1807_v46, %v643_v13  ;;  %v1520_v20 = vpop.eup %1519  ;;  %1527 = vpow2.f32 %v816_v12  ;;  %v1875_v24 = vadd.f32 %v1809_v49, %v730_v17 }
  0xdd   : > { %v1522_v26 = vpop.eup %1521  ;;  %v874_v28 = vadd.f32 1.0, %v1520_v20 }
  0xde   : > { %v1379_v16 = vpack.c.bf16 %v937_v19, %v936_v18  ;;  %v1878_v25 = vadd.f32 %v1809_v49, %v715_v23  ;;  %v795_v27 = vsub.f32 0.0, %v1875_v24  ;;  %v952_v35 = vmul.f32 %v1522_v26, %v1829_v21 }
  0xdf   : > { %v593_v22 = vpop.f32.mrf.mxu2  ;;  %v1885_v37 = vpop.f32.mrf.mxu1 }
  0xe0   : > { %1451 = vst [vmem:[%s1844_s21 + $0x8] sm:$0xff] %v1379_v16   ;;  %v780_v7 = vsub.f32 0.0, %v1878_v25  ;;  %v1524_v29 = vpop.eup %1523  ;;  %v848_v30 = vmul.f32 1.442695, %v795_v27  ;;  %v683_v31 = vadd.f32 %v682_v43, %v593_v22 }
  0xe1   : > { %v555_v32 = vpop.f32.mrf.mxu0  ;;  %v1526_v34 = vpop.eup %1525  ;;  %v890_v50 = vadd.f32 1.0, %v1524_v29 }
  0xe2   : > { %v645_v36 = vadd.f32 %v1837_v33, %v555_v32  ;;  %v1528_v40 = vpop.eup %1527  ;;  %v953_v41 = vmul.f32 %v1526_v34, %v1847_v39  ;;  %1529 = vpow2.f32 %v848_v30  ;;  %v818_v44 = vmul.f32 1.442695, %v780_v7 }
  0xe3   : > { %v731_v45 = vmul.f32 %v1807_v46, %v683_v31  ;;  %1531 = vrcp.f32 %v874_v28  ;;  %v875_v47 = vadd.f32 1.0, %v1528_v40 }
  0xe4   : > { %v716_v43 = vmul.f32 %v1807_v46, %v645_v36  ;;  %v1419_v48 = vpack.c.bf16 %v953_v41, %v952_v35  ;;  %v692_v36 = vpop.f32.mrf.mxu3 }
  0xe5   : > { %v1891_v21 = vadd.f32 %v1809_v49, %v731_v45  ;;  %1533 = vrcp.f32 %v875_v47 }
  0xe6   : > { %v1894_v33 = vadd.f32 %v1809_v49, %v716_v43  ;;  %1459 = vst [vmem:[%s1844_s21 + $0x48] sm:$0xff] %v1419_v48   ;;  %1535 = vpow2.f32 %v818_v44 }
  0xe7   : > { %v796_v39 = vsub.f32 0.0, %v1891_v21  ;;  %v595_v52 = vpop.f32.mrf.mxu2  ;;  %1537 = vrcp.f32 %v890_v50  ;;  %v1900_v2 = vpop.f32.mrf.mxu1 }
  0xe8   : > { %v781_v51 = vsub.f32 0.0, %v1894_v33  ;;  %v1530_v53 = vpop.eup %1529  ;;  %v685_v57 = vadd.f32 %v684_v5, %v595_v52 }
  0xe9   : > { %v850_v55 = vmul.f32 1.442695, %v796_v39  ;;  %v558_v58 = vpop.f32.mrf.mxu0  ;;  %v1532_v59 = vpop.eup %1531  ;;  %v891_v60 = vadd.f32 1.0, %v1530_v53 }
  0xea   : > { %v820_v61 = vmul.f32 1.442695, %v781_v51  ;;  %v648_v1 = vadd.f32 %v1855_v56, %v558_v58  ;;  %v732_v3 = vmul.f32 %v1807_v46, %v685_v57  ;;  %v938_v5 = vmul.f32 %v1532_v59, %v1850_v42 }
  0xeb   : > { %1539 = vpow2.f32 %v850_v55  ;;  %v1534_v4 = vpop.eup %1533 }
  0xec   : > { %1541 = vrcp.f32 %v891_v60  ;;  %v717_v6 = vmul.f32 %v1807_v46, %v648_v1  ;;  %v1536_v9 = vpop.eup %1535  ;;  %v939_v10 = vmul.f32 %v1534_v4, %v1863_v0  ;;  %v1907_v11 = vadd.f32 %v1809_v49, %v732_v3 }
  0xed   : > { %1543 = vpow2.f32 %v820_v61  ;;  %v1538_v12 = vpop.eup %1537  ;;  %v876_v17 = vadd.f32 1.0, %v1536_v9  ;;  %v694_v9 = vpop.f32.mrf.mxu3 }
  0xee   : > { %v1910_v56 = vadd.f32 %v1809_v49, %v717_v6  ;;  %v1384_v13 = vpack.c.bf16 %v939_v10, %v938_v5  ;;  %v797_v15 = vsub.f32 0.0, %v1907_v11  ;;  %v954_v26 = vmul.f32 %v1538_v12, %v1860_v62 }
  0xef   : > { %v598_v19 = vpop.f32.mrf.mxu2  ;;  %v1917_v28 = vpop.f32.mrf.mxu1 }
  0xf0   : > { %v782_v18 = vsub.f32 0.0, %v1910_v56  ;;  %1452 = vst [vmem:[%s1844_s21 + $0x10] sm:$0xff] %v1384_v13   ;;  %v852_v42 = vmul.f32 1.442695, %v797_v15  ;;  %v688_v20 = vadd.f32 %v687_v38, %v598_v19 }
  0xf1   : > { %v1540_v23 = vpop.eup %1539  ;;  %v560_v0 = vpop.f32.mrf.mxu0 }
  0xf2   : > { %v1542_v16 = vpop.eup %1541  ;;  %v650_v27 = vadd.f32 %v1868_v14, %v560_v0  ;;  %1545 = vpow2.f32 %v852_v42  ;;  %v822_v29 = vmul.f32 1.442695, %v782_v18  ;;  %v733_v30 = vmul.f32 %v1807_v46, %v688_v20 }
  0xf3   : > { %v1544_v7 = vpop.eup %1543  ;;  %v955_v22 = vmul.f32 %v1542_v16, %v1875_v24  ;;  %1547 = vrcp.f32 %v876_v17  ;;  %v892_v62 = vadd.f32 1.0, %v1540_v23 }
  0xf4   : > { %v877_v31 = vadd.f32 1.0, %v1544_v7  ;;  %v718_v32 = vmul.f32 %v1807_v46, %v650_v27  ;;  %v1923_v35 = vadd.f32 %v1809_v49, %v733_v30 }
  0xf5   : > { %v1424_v34 = vpack.c.bf16 %v955_v22, %v954_v26 }
  0xf6   : > { %1549 = vrcp.f32 %v877_v31  ;;  %v1926_v14 = vadd.f32 %v1809_v49, %v718_v32  ;;  %v798_v24 = vsub.f32 0.0, %v1923_v35 }
  0xf7   : > { %1460 = vst [vmem:[%s1844_s21 + $0x50] sm:$0xff] %v1424_v34   ;;  %1551 = vpow2.f32 %v822_v29  ;;  %v600_v40 = vpop.f32.mrf.mxu2  ;;  %v1932_v51 = vpop.f32.mrf.mxu1 }
  0xf8   : > { %v783_v38 = vsub.f32 0.0, %v1926_v14  ;;  %v1546_v41 = vpop.eup %1545  ;;  %v854_v44 = vmul.f32 1.442695, %v798_v24  ;;  %v690_v45 = vadd.f32 %v689_v8, %v600_v40  ;;  %1553 = vrcp.f32 %v892_v62 }
  0xf9   : > { %v563_v47 = vpop.f32.mrf.mxu0  ;;  %v1548_v43 = vpop.eup %1547  ;;  %v893_v48 = vadd.f32 1.0, %v1546_v41 }
  0xfa   : > { %v824_v50 = vmul.f32 1.442695, %v783_v38  ;;  %v653_v39 = vadd.f32 %v1885_v37, %v563_v47  ;;  %1555 = vpow2.f32 %v854_v44  ;;  %v734_v52 = vmul.f32 %v1807_v46, %v690_v45 }
  0xfb   : > { %1557 = vrcp.f32 %v893_v48  ;;  %v940_v58 = vmul.f32 %v1548_v43, %v1878_v25 }
  0xfc   : > { %v1550_v53 = vpop.eup %1549  ;;  %v719_v55 = vmul.f32 %v1807_v46, %v653_v39  ;;  %1559 = vpow2.f32 %v824_v50  ;;  %v1939_v60 = vadd.f32 %v1809_v49, %v734_v52 }
  0xfd   : > { %v1552_v57 = vpop.eup %1551  ;;  %v941_v59 = vmul.f32 %v1550_v53, %v1894_v33 }
  0xfe   : > { %v1942_v37 = vadd.f32 %v1809_v49, %v719_v55  ;;  %v799_v1 = vsub.f32 0.0, %v1939_v60  ;;  %v1554_v3 = vpop.eup %1553  ;;  %v878_v4 = vadd.f32 1.0, %v1552_v57 }
  0xff   : > { %v1389_v61 = vpack.c.bf16 %v941_v59, %v940_v58  ;;  %v603_v8 = vpop.f32.mrf.mxu2  ;;  %v1948_v17 = vpop.f32.mrf.mxu1  ;;  %v956_v19 = vmul.f32 %v1554_v3, %v1891_v21 }
 0x100   : > { %v784_v6 = vsub.f32 0.0, %v1942_v37  ;;  %v1556_v5 = vpop.eup %1555  ;;  %v856_v25 = vmul.f32 1.442695, %v799_v1  ;;  %v693_v33 = vadd.f32 %v692_v36, %v603_v8  ;;  %v697_v36 = vpop.f32.mrf.mxu3 }
 0x101   : > { %1453 = vst [vmem:[%s1844_s21 + $0x18] sm:$0xff] %v1389_v61   ;;  %v565_v10 = vpop.f32.mrf.mxu0  ;;  %v1558_v12 = vpop.eup %1557  ;;  %v894_v26 = vadd.f32 1.0, %v1556_v5 }
 0x102   : > { %v826_v13 = vmul.f32 1.442695, %v784_v6  ;;  %v655_v15 = vadd.f32 %v1900_v2, %v565_v10  ;;  %v1560_v18 = vpop.eup %1559  ;;  %v957_v23 = vmul.f32 %v1558_v12, %v1907_v11  ;;  %1561 = vpow2.f32 %v856_v25 }
 0x103   : > { %v735_v42 = vmul.f32 %v1807_v46, %v693_v33  ;;  %1563 = vrcp.f32 %v878_v4  ;;  %v879_v20 = vadd.f32 1.0, %v1560_v18 }
 0x104   : > { %v720_v0 = vmul.f32 %v1807_v46, %v655_v15  ;;  %v1429_v16 = vpack.c.bf16 %v957_v23, %v956_v19  ;;  %1565 = vpow2.f32 %v826_v13 }
 0x105   : > { %v1955_v2 = vadd.f32 %v1809_v49, %v735_v42  ;;  %1567 = vrcp.f32 %v879_v20 }
 0x106   : > { %v1958_v27 = vadd.f32 %v1809_v49, %v720_v0  ;;  %1461 = vst [vmem:[%s1844_s21 + $0x58] sm:$0xff] %v1429_v16   ;;  %1569 = vrcp.f32 %v894_v26 }
 0x107   : > { %v800_v21 = vsub.f32 0.0, %v1955_v2  ;;  %v605_v7 = vpop.f32.mrf.mxu2  ;;  %v1964_v38 = vpop.f32.mrf.mxu1 }
 0x108   : > { %v785_v11 = vsub.f32 0.0, %v1958_v27  ;;  %v1562_v22 = vpop.eup %1561  ;;  %v695_v30 = vadd.f32 %v694_v9, %v605_v7  ;;  %v699_v10 = vpop.f32.mrf.mxu3 }
 0x109   : > { %v858_v29 = vmul.f32 1.442695, %v800_v21  ;;  %v568_v31 = vpop.f32.mrf.mxu0  ;;  %v1564_v32 = vpop.eup %1563  ;;  %v895_v34 = vadd.f32 1.0, %v1562_v22 }
 0x10a   : > { %v828_v62 = vmul.f32 1.442695, %v785_v11  ;;  %v658_v24 = vadd.f32 %v1917_v28, %v568_v31  ;;  %v1566_v40 = vpop.eup %1565  ;;  %v736_v41 = vmul.f32 %v1807_v46, %v695_v30  ;;  %v942_v47 = vmul.f32 %v1564_v32, %v1910_v56 }
 0x10b   : > { %1571 = vpow2.f32 %v858_v29  ;;  %v1568_v44 = vpop.eup %1567  ;;  %v880_v28 = vadd.f32 1.0, %v1566_v40 }
 0x10c   : > { %1573 = vrcp.f32 %v895_v34  ;;  %v721_v45 = vmul.f32 %v1807_v46, %v658_v24  ;;  %v943_v43 = vmul.f32 %v1568_v44, %v1926_v14  ;;  %v1971_v48 = vadd.f32 %v1809_v49, %v736_v41  ;;  %v1570_v39 = vpop.eup %1569 }
 0x10d   : > { %1575 = vpow2.f32 %v828_v62  ;;  %v958_v1 = vmul.f32 %v1570_v39, %v1923_v35 }
 0x10e   : > { %v1974_v50 = vadd.f32 %v1809_v49, %v721_v45  ;;  %v1394_v52 = vpack.c.bf16 %v943_v43, %v942_v47  ;;  %v801_v53 = vsub.f32 0.0, %v1971_v48  ;;  %1577 = vrcp.f32 %v880_v28 }
 0x10f   : > { %v608_v57 = vpop.f32.mrf.mxu2  ;;  %v667_v6 = vpop.f32.mrf.mxu1 }
 0x110   : > { %v786_v55 = vsub.f32 0.0, %v1974_v50  ;;  %1454 = vst [vmem:[%s1844_s21 + $0x20] sm:$0xff] %v1394_v52   ;;  %v860_v56 = vmul.f32 1.442695, %v801_v53  ;;  %v698_v59 = vadd.f32 %v697_v36, %v608_v57  ;;  %v668_v25 = vadd.f32 %v667_v6, %v1813_v54  ;;  %v702_v44 = vpop.f32.mrf.mxu3 }
 0x111   : > { %v1572_v58 = vpop.eup %1571  ;;  %v570_v14 = vpop.f32.mrf.mxu0 }
 0x112   : > { %v1574_v61 = vpop.eup %1573  ;;  %v830_v3 = vmul.f32 1.442695, %v786_v55  ;;  %v660_v4 = vadd.f32 %v1932_v51, %v570_v14  ;;  %1579 = vpow2.f32 %v860_v56  ;;  %v737_v5 = vmul.f32 %v1807_v46, %v698_v59 }
 0x113   : > { %v1576_v8 = vpop.eup %1575  ;;  %v959_v9 = vmul.f32 %v1574_v61, %v1939_v60  ;;  %v896_v35 = vadd.f32 1.0, %v1572_v58  ;;  %v725_v60 = vmul.f32 %v1807_v46, %v668_v25 }
 0x114   : > { %v881_v33 = vadd.f32 1.0, %v1576_v8  ;;  %v722_v12 = vmul.f32 %v1807_v46, %v660_v4  ;;  %v1986_v15 = vadd.f32 %v1809_v49, %v737_v5  ;;  %v1578_v54 = vpop.eup %1577 }
 0x115   : > { %v1434_v13 = vpack.c.bf16 %v959_v9, %v958_v1  ;;  %v1996_v23 = vadd.f32 %v1809_v49, %v725_v60  ;;  %v944_v34 = vmul.f32 %v1578_v54, %v1942_v37 }
 0x116   : > { %1581 = vrcp.f32 %v881_v33  ;;  %v1989_v51 = vadd.f32 %v1809_v49, %v722_v12  ;;  %v802_v18 = vsub.f32 0.0, %v1986_v15 }
 0x117   : > { %1462 = vst [vmem:[%s1844_s21 + $0x60] sm:$0xff] %v1434_v13   ;;  %1583 = vpow2.f32 %v830_v3  ;;  %v610_v42 = vpop.f32.mrf.mxu2  ;;  %v790_v7 = vsub.f32 0.0, %v1996_v23  ;;  %v669_v29 = vpop.f32.mrf.mxu1 }
 0x118   : > { %v787_v19 = vsub.f32 0.0, %v1989_v51  ;;  %v1580_v20 = vpop.eup %1579  ;;  %1585 = vrcp.f32 %v896_v35  ;;  %v862_v0 = vmul.f32 1.442695, %v802_v18  ;;  %v700_v16 = vadd.f32 %v699_v10, %v610_v42  ;;  %v704_v10 = vpop.f32.mrf.mxu3 }
 0x119   : > { %v573_v26 = vpop.f32.mrf.mxu0  ;;  %v897_v21 = vadd.f32 1.0, %v1580_v20  ;;  %v670_v31 = vadd.f32 %v669_v29, %v1817_v63  ;;  %v838_v62 = vmul.f32 1.442695, %v790_v7 }
 0x11a   : > { %v832_v11 = vmul.f32 1.442695, %v787_v19  ;;  %v663_v22 = vadd.f32 %v1948_v17, %v573_v26  ;;  %1587 = vpow2.f32 %v862_v0  ;;  %v738_v30 = vmul.f32 %v1807_v46, %v700_v16 }
 0x11b   : > { %1589 = vrcp.f32 %v897_v21  ;;  %v726_v41 = vmul.f32 %v1807_v46, %v670_v31 }
 0x11c   : > { %v1582_v32 = vpop.eup %1581  ;;  %v723_v36 = vmul.f32 %v1807_v46, %v663_v22  ;;  %1591 = vpow2.f32 %v832_v11  ;;  %v2006_v17 = vadd.f32 %v1809_v49, %v738_v30 }
 0x11d   : > { %v1584_v24 = vpop.eup %1583  ;;  %v945_v40 = vmul.f32 %v1582_v32, %v1958_v27  ;;  %v2014_v43 = vadd.f32 %v1809_v49, %v726_v41  ;;  %1593 = vpow2.f32 %v838_v62 }
 0x11e   : > { %v2010_v63 = vadd.f32 %v1809_v49, %v723_v36  ;;  %v1586_v45 = vpop.eup %1585  ;;  %v803_v47 = vsub.f32 0.0, %v2006_v17  ;;  %v882_v28 = vadd.f32 1.0, %v1584_v24 }
 0x11f   : > { %v1399_v37 = vpack.c.bf16 %v945_v40, %v944_v34  ;;  %v613_v39 = vpop.f32.mrf.mxu2  ;;  %v791_v55 = vsub.f32 0.0, %v2014_v43  ;;  %v960_v59 = vmul.f32 %v1586_v45, %v1955_v2 }
 0x120   : > { %v788_v27 = vsub.f32 0.0, %v2010_v63  ;;  %v1588_v52 = vpop.eup %1587  ;;  %v864_v53 = vmul.f32 1.442695, %v803_v47  ;;  %v703_v57 = vadd.f32 %v702_v44, %v613_v39 }
 0x121   : > { %1455 = vst [vmem:[%s1844_s21 + $0x28] sm:$0xff] %v1399_v37   ;;  %v575_v58 = vpop.f32.mrf.mxu0  ;;  %v1590_v56 = vpop.eup %1589  ;;  %v840_v4 = vmul.f32 1.442695, %v791_v55  ;;  %v898_v2 = vadd.f32 1.0, %v1588_v52 }
 0x122   : > { %v834_v14 = vmul.f32 1.442695, %v788_v27  ;;  %v665_v61 = vadd.f32 %v1964_v38, %v575_v58  ;;  %v1592_v1 = vpop.eup %1591  ;;  %v961_v3 = vmul.f32 %v1590_v56, %v1971_v48  ;;  %1595 = vpow2.f32 %v864_v53 }
 0x123   : > { %v739_v6 = vmul.f32 %v1807_v46, %v703_v57  ;;  %1597 = vrcp.f32 %v882_v28  ;;  %v883_v8 = vadd.f32 1.0, %v1592_v1  ;;  %v1594_v33 = vpop.eup %1593 }
 0x124   : > { %v724_v9 = vmul.f32 %v1807_v46, %v665_v61  ;;  %v1439_v5 = vpack.c.bf16 %v961_v3, %v960_v59  ;;  %1599 = vpow2.f32 %v834_v14  ;;  %v886_v19 = vadd.f32 1.0, %v1594_v33 }
 0x125   : > { %v2025_v25 = vadd.f32 %v1809_v49, %v739_v6  ;;  %1601 = vrcp.f32 %v883_v8 }
 0x126   : > { %v757_v38 = vadd.f32 %v1809_v49, %v724_v9  ;;  %1463 = vst [vmem:[%s1844_s21 + $0x68] sm:$0xff] %v1439_v5   ;;  %1603 = vpow2.f32 %v840_v4 }
 0x127   : > { %v804_v48 = vsub.f32 0.0, %v2025_v25  ;;  %v615_v13 = vpop.f32.mrf.mxu2  ;;  %1605 = vrcp.f32 %v898_v2 }
 0x128   : > { %v789_v12 = vsub.f32 0.0, %v757_v38  ;;  %v1596_v35 = vpop.eup %1595  ;;  %v705_v18 = vadd.f32 %v704_v10, %v615_v13 }
 0x129   : > { %v866_v60 = vmul.f32 1.442695, %v804_v48  ;;  %v1598_v54 = vpop.eup %1597  ;;  %v899_v42 = vadd.f32 1.0, %v1596_v35 }
 0x12a   : > { %v836_v20 = vmul.f32 1.442695, %v789_v12  ;;  %v1600_v0 = vpop.eup %1599  ;;  %v740_v16 = vmul.f32 %v1807_v46, %v705_v18  ;;  %v946_v11 = vmul.f32 %v1598_v54, %v1974_v50 }
 0x12b   : > { %1607 = vpow2.f32 %v866_v60  ;;  %v1602_v26 = vpop.eup %1601  ;;  %v884_v34 = vadd.f32 1.0, %v1600_v0 }
 0x12c   : > { %1609 = vrcp.f32 %v899_v42  ;;  %v1604_v21 = vpop.eup %1603  ;;  %v947_v7 = vmul.f32 %v1602_v26, %v1989_v51  ;;  %v773_v22 = vadd.f32 %v1809_v49, %v740_v16 }
 0x12d   : > { %1611 = vpow2.f32 %v836_v20  ;;  %v887_v29 = vadd.f32 1.0, %v1604_v21  ;;  %v1606_v32 = vpop.eup %1605 }
 0x12e   : > { %1613 = vrcp.f32 %v886_v19  ;;  %v1404_v30 = vpack.c.bf16 %v947_v7, %v946_v11  ;;  %v805_v31 = vsub.f32 0.0, %v773_v22  ;;  %v962_v50 = vmul.f32 %v1606_v32, %v1986_v15 }
 0x12f   : > { %1615 = vrcp.f32 %v887_v29 }
 0x130   : > { %1456 = vst [vmem:[%s1844_s21 + $0x30] sm:$0xff] %v1404_v30   ;;  %v868_v46 = vmul.f32 1.442695, %v805_v31 }
 0x131   : > { %v1608_v62 = vpop.eup %1607 }
 0x132   : > { %v1610_v36 = vpop.eup %1609  ;;  %1617 = vpow2.f32 %v868_v46  ;;  %v900_v45 = vadd.f32 1.0, %v1608_v62 }
 0x133   : > { %v1612_v24 = vpop.eup %1611  ;;  %v963_v51 = vmul.f32 %v1610_v36, %v2006_v17  ;;  %1619 = vrcp.f32 %v884_v34 }
 0x134   : > { %v1614_v49 = vpop.eup %1613  ;;  %v885_v40 = vadd.f32 1.0, %v1612_v24 }
 0x135   : > { %v1444_v41 = vpack.c.bf16 %v963_v51, %v962_v50  ;;  %v1616_v44 = vpop.eup %1615  ;;  %v950_v37 = vmul.f32 %v1614_v49, %v1996_v23 }
 0x136   : > { %1621 = vrcp.f32 %v885_v40  ;;  %v951_v47 = vmul.f32 %v1616_v44, %v2014_v43 }
 0x137   : > { %1464 = vst [vmem:[%s1844_s21 + $0x70] sm:$0xff] %v1444_v41   ;;  %1623 = vrcp.f32 %v900_v45 }
 0x138   : > { %v1618_v28 = vpop.eup %1617  ;;  %v1414_v27 = vpack.c.bf16 %v951_v47, %v950_v37 }
 0x139   : > { %v1620_v15 = vpop.eup %1619  ;;  %v901_v17 = vadd.f32 1.0, %v1618_v28 }
 0x13a   : > { %1458 = vst [vmem:[%s1844_s21 + $0x40] sm:$0xff] %v1414_v27   ;;  %v948_v52 = vmul.f32 %v1620_v15, %v2010_v63 }
 0x13b   : > { %1625 = vrcp.f32 %v901_v17 }
 0x13c   : > { %v1622_v39 = vpop.eup %1621 }
 0x13d   : > { %v949_v53 = vmul.f32 %v1622_v39, %v757_v38  ;;  %v1624_v57 = vpop.eup %1623 }
 0x13e   : > { %v964_v23 = vmul.f32 %v1624_v57, %v2025_v25 }
 0x13f   : > { %v1409_v55 = vpack.c.bf16 %v949_v53, %v948_v52 }
 0x141   : > { %1457 = vst [vmem:[%s1844_s21 + $0x38] sm:$0xff] %v1409_v55   ;;  %v1626_v58 = vpop.eup %1625 }
 0x142   : > { %v965_v56 = vmul.f32 %v1626_v58, %v773_v22 }
 0x144   : > { %v1449_v43 = vpack.c.bf16 %v965_v56, %v964_v23 }
 0x146   : > { %1465 = vst [vmem:[%s1844_s21 + $0x78] sm:$0xff] %v1449_v43  }
 0x147 PF: > { %s13_s14 = sadd.s32 1, %s1649_s14   ;;  %s2058_s12 = smov %s1645_s13 }
 0x148   : > { %p10_p5 = scmp.ge.s32.totalorder %s13_s14, 4   ;;  %s2059_s13 = smov %s2061_s15 }
 0x14a   :  { %12 = sbr.rel (!%p10_p5) target bundleno = 2 (0x2), region = 68 }

</bundles_post_ra>
